<compile_context>
chip_gen: v6e
topology: v6e:2x2x1
jax: 0.10.0
libtpu: 0.0.40
codegen_flags: <defaults>
</compile_context>

<pallas_src>
import jax
import jax.numpy as jnp
from jax.experimental import pallas as pl
from jax.experimental.pallas import tpu as pltpu

NUM_FILTERS = 128   # num_filters
NUM_CLASS = 8       # num_class
CF = 64             # config['network']['e2cnn']['out_dim'][2]
C_S4 = 64           # convs4 is Conv2d(64, 64, 1)
C_S2 = 32           # convs2 is Conv2d(32, 32, 1)

TILE_HW_MAX = 2048  # pixels per grid step (multiple of 128)


def ssb_kernel(f_ref, s4_ref, s2_ref, w1_ref, w2_ref, w3_ref, wl_ref,
               shifts_ref, out_ref, xcat_ref):
    # blocks are channels-major: (1, C, T); weights are (Cout, K) bf16.
    F = NUM_FILTERS
    f = f_ref[0]                              # (CF, T) bf16

    sh1 = shifts_ref[:, 0:1]                  # (F, 1) f32
    sh2 = shifts_ref[:, 1:2]                  # (F, 1) f32 (bu1 folded in)
    sh3 = shifts_ref[:, 2:3]                  # (F, 1) f32
    bl = shifts_ref[:NUM_CLASS, 3:4]          # (8, 1) f32

    # stage 1: aspp_conv1 (1x1 conv, BN folded into w1/sh1) + ReLU
    b1 = jnp.maximum(
        jnp.dot(w1_ref[...], f, preferred_element_type=jnp.float32) + sh1, 0.0
    ).astype(jnp.bfloat16)

    # stage 2: single K=192 dot.  Weight columns already carry the per-batch
    # aspp gate and the folded conv_up1 / convs4 / conv_up2-BN products:
    #   [ (wu1@wu2a*sc2).T * gate | (wc4@wu2b*sc2).T ] @ [ b1 ; s4 ]
    xcat_ref[0:F, :] = b1
    xcat_ref[F:F + C_S4, :] = s4_ref[0]
    t2 = jnp.dot(w2_ref[0], xcat_ref[...], preferred_element_type=jnp.float32)
    y2 = jnp.maximum(t2 + sh2, 0.0).astype(jnp.bfloat16)

    # stage 3: single K=160 dot (convs2 / conv_up3-BN folded), scratch reused:
    #   [ (wu3a*sc3).T | (wc2@wu3b*sc3).T ] @ [ y2 ; s2 ]
    xcat_ref[0:F, :] = y2
    xcat_ref[F:F + C_S2, :] = s2_ref[0]
    t3 = jnp.dot(w3_ref[...], xcat_ref[0:F + C_S2, :],
                 preferred_element_type=jnp.float32)
    y3 = jnp.maximum(t3 + sh3, 0.0).astype(jnp.bfloat16)

    # last 1x1 conv + softmax over the channel (sublane) axis (exact denom).
    logits = jnp.dot(wl_ref[...], y3, preferred_element_type=jnp.float32) + bl
    m = jnp.max(logits, axis=0, keepdims=True)
    e = jnp.exp(logits - m)
    out_ref[0] = (e / jnp.sum(e, axis=0, keepdims=True)).astype(out_ref.dtype)


def fold_bn(gamma, beta, rmean, rvar, eps=1e-5):
    scale = gamma / jnp.sqrt(rvar + eps)
    shift = beta - rmean * scale
    return scale[None, :], shift[None, :]


def make_params(key):
    ks = list(jax.random.split(key, 24))
    k = iter(ks)
    F = NUM_FILTERS

    def w(shape, s=0.05):
        return jax.random.normal(next(k), shape, jnp.float32) * s

    def bn(c):
        gamma = 1.0 + 0.1 * jax.random.normal(next(k), (c,), jnp.float32)
        beta = 0.1 * jax.random.normal(next(k), (c,), jnp.float32)
        rmean = 0.1 * jax.random.normal(next(k), (c,), jnp.float32)
        rvar = jnp.abs(jax.random.normal(next(k), (c,), jnp.float32)) + 0.5
        return fold_bn(gamma, beta, rmean, rvar)

    P = {}
    P['w1'] = w((CF, F)); P['sc1'], P['sh1'] = bn(F)
    P['w2'] = w((CF, F))
    P['wu1'] = w((F, F)); P['bu1'] = w((1, F))
    P['wc4'] = w((C_S4, C_S4))
    P['wu2a'] = w((F, F)); P['wu2b'] = w((C_S4, F)); P['sc2'], P['sh2'] = bn(F)
    P['wc2'] = w((C_S2, C_S2))
    P['wu3a'] = w((F, F)); P['wu3b'] = w((C_S2, F)); P['sc3'], P['sh3'] = bn(F)
    P['wl'] = w((F, NUM_CLASS)); P['bl'] = w((1, NUM_CLASS))
    return P


def _round_up(x, m):
    return ((x + m - 1) // m) * m


def _pick_tile(hw, n):
    """HW tile (multiple of 128) and padded HW; keeps >=2 grid steps if N==1."""
    hw128 = _round_up(hw, 128)
    num_tiles = max(1, -(-hw128 // TILE_HW_MAX))
    if n == 1 and num_tiles == 1 and hw128 > 128:
        num_tiles = 2          # both v7x TensorCores get work
    t = _round_up(-(-hw128 // num_tiles), 128)
    return t, t * num_tiles


@jax.jit
def ssb_forward(s2, s4, final, params):
    """s2:(N,32,H2,W2)  s4:(N,64,H4,W4)  final:(N,CF,Hf,Wf) -> (N,NUM_CLASS,Hf,Wf)."""
    N, cf, Hf, Wf = final.shape
    HW = Hf * Wf
    F = NUM_FILTERS

    # aspp_conv2: AdaptiveAvgPool2d(1) -> 1x1 conv -> sigmoid.  The bilinear
    # upsample of a 1x1 map is a constant broadcast, so only the per-batch
    # gate vector is needed; it is folded into the stage-2 weights below.
    pooled = jnp.mean(final, axis=(2, 3))                     # (N, CF) f32
    gate = jax.nn.sigmoid(pooled @ params['w2'])              # (N, F)  f32

    # glue: bilinear resize of s2/s4 to final's resolution (matches
    # F.interpolate(..., mode='bilinear', align_corners=False)).
    # bf16 BEFORE resize halves the dominant resize HBM traffic.
    # TODO(synk): integer-factor resizes could be fused into the kernel via
    # strided reads; kept in the wrapper here for generality.
    s4r = jax.image.resize(s4.astype(jnp.bfloat16), (N, C_S4, Hf, Wf),
                           method='bilinear', antialias=False)
    s2r = jax.image.resize(s2.astype(jnp.bfloat16), (N, C_S2, Hf, Wf),
                           method='bilinear', antialias=False)

    # channels-major (N, C, HW): pure reshape, no transpose.
    f_cm = final.reshape(N, cf, HW).astype(jnp.bfloat16)
    s4_cm = s4r.reshape(N, C_S4, HW)
    s2_cm = s2r.reshape(N, C_S2, HW)

    # Exact algebraic folding in f32 (eval BNs are affine; conv_up1/convs4/
    # convs2 feed the next conv with no nonlinearity in between).
    w1k = (params['w1'] * params['sc1']).T                       # (F, CF)
    aup = ((params['wu1'] @ params['wu2a']) * params['sc2']).T   # (F, F)
    as4 = ((params['wc4'] @ params['wu2b']) * params['sc2']).T   # (F, C_S4)
    au3 = (params['wu3a'] * params['sc3']).T                     # (F, F)
    as2 = ((params['wc2'] @ params['wu3b']) * params['sc3']).T   # (F, C_S2)
    wlk = params['wl'].T                                         # (8, F)

    # Fold the gate into the up-projection columns in f32, once per batch,
    # and K-concatenate the paired weights for single MXU dots per stage.
    aup_g = aup[None, :, :] * gate[:, None, :]                   # (N, F, F)
    as4_b = jnp.broadcast_to(as4[None], (N, F, C_S4))
    w2cat = jnp.concatenate([aup_g, as4_b], axis=2).astype(jnp.bfloat16)  # (N,F,192)
    w3cat = jnp.concatenate([au3, as2], axis=1).astype(jnp.bfloat16)      # (F,160)

    sh1 = params['sh1'].reshape(F)
    sh2 = ((params['bu1'] @ params['wu2a']) * params['sc2'] + params['sh2']).reshape(F)
    sh3 = params['sh3'].reshape(F)
    bl = params['bl'].reshape(NUM_CLASS)
    shifts = jnp.zeros((F, 4), jnp.float32)
    shifts = shifts.at[:, 0].set(sh1).at[:, 1].set(sh2).at[:, 2].set(sh3)
    shifts = shifts.at[:NUM_CLASS, 3].set(bl)

    w1k = w1k.astype(jnp.bfloat16)
    wlk = wlk.astype(jnp.bfloat16)

    # Tile HW (always a multiple of 128 -> unmasked lane-dense stores).
    T, HW_pad = _pick_tile(HW, N)
    if HW_pad != HW:
        pad = [(0, 0), (0, 0), (0, HW_pad - HW)]
        f_cm = jnp.pad(f_cm, pad)
        s4_cm = jnp.pad(s4_cm, pad)
        s2_cm = jnp.pad(s2_cm, pad)

    def data_spec(c):
        return pl.BlockSpec((1, c, T), lambda b, t: (b, 0, t))

    def w_spec(shape):
        return pl.BlockSpec(shape, lambda b, t: (0,) * len(shape))

    in_specs = [
        data_spec(cf), data_spec(C_S4), data_spec(C_S2),
        w_spec((F, cf)),
        pl.BlockSpec((1, F, F + C_S4), lambda b, t: (b, 0, 0)),   # per-batch gated W
        w_spec((F, F + C_S2)),
        w_spec((NUM_CLASS, F)),
        w_spec((F, 4)),                                           # packed shifts
    ]

    out = pl.pallas_call(
        ssb_kernel,
        out_shape=jax.ShapeDtypeStruct((N, NUM_CLASS, HW_pad), jnp.float32),
        grid_spec=pltpu.PrefetchScalarGridSpec(
            num_scalar_prefetch=0,
            grid=(N, HW_pad // T),
            in_specs=in_specs,
            out_specs=data_spec(NUM_CLASS),
            scratch_shapes=[pltpu.VMEM((F + C_S4, T), jnp.bfloat16)]),
        compiler_params=pltpu.CompilerParams(
            dimension_semantics=("parallel", "parallel"),
            vmem_limit_bytes=32 * 1024 * 1024),
    )(f_cm, s4_cm, s2_cm, w1k, w2cat, w3cat, wlk, shifts)

    out = out[:, :, :HW]
    return out.reshape(N, NUM_CLASS, Hf, Wf)


def ssb_reference(s2, s4, final, P):
    """Pure-JAX f32 reference of the same forward (unfolded, for correctness)."""
    N, cf, Hf, Wf = final.shape
    HW = Hf * Wf
    s4r = jax.image.resize(s4, (N, C_S4, Hf, Wf), method='bilinear', antialias=False)
    s2r = jax.image.resize(s2, (N, C_S2, Hf, Wf), method='bilinear', antialias=False)
    f = final.transpose(0, 2, 3, 1).reshape(N, HW, cf)
    s4f = s4r.transpose(0, 2, 3, 1).reshape(N, HW, C_S4)
    s2f = s2r.transpose(0, 2, 3, 1).reshape(N, HW, C_S2)

    gate = jax.nn.sigmoid(jnp.mean(f, axis=1, keepdims=True) @ P['w2'])
    b1 = jnp.maximum(f @ P['w1'] * P['sc1'] + P['sh1'], 0.0)
    aspp = b1 * gate
    y = aspp @ P['wu1'] + P['bu1']
    s4c = s4f @ P['wc4']
    y = jnp.maximum((y @ P['wu2a'] + s4c @ P['wu2b']) * P['sc2'] + P['sh2'], 0.0)
    s2c = s2f @ P['wc2']
    y = jnp.maximum((y @ P['wu3a'] + s2c @ P['wu3b']) * P['sc3'] + P['sh3'], 0.0)
    logits = y @ P['wl'] + P['bl']
    out = jax.nn.softmax(logits, axis=-1)
    return out.reshape(N, Hf, Wf, NUM_CLASS).transpose(0, 3, 1, 2)


def _check(y, y_ref, N, Hf, Wf):
    assert y.shape == (N, NUM_CLASS, Hf, Wf)
    assert jnp.allclose(jnp.sum(y, axis=1), 1.0, atol=5e-3)
    max_err = float(jnp.max(jnp.abs(y - y_ref)))
    assert max_err < 2.5e-2, f"max abs err vs reference: {max_err}"


if __name__ == "__main__":
    key = jax.random.PRNGKey(0)
    k_p, k_f, k_s4, k_s2, k_f1, k_s41, k_s21 = jax.random.split(key, 7)
    params = make_params(k_p)

    # Case 1: N=2, final 48x48 -> HW=2304 = 2 tiles of 1152 (batch + HW grid axes).
    N, Hf, Wf = 2, 48, 48
    final = jax.random.normal(k_f, (N, CF, Hf, Wf), jnp.float32)
    s4 = jax.random.normal(k_s4, (N, C_S4, 2 * Hf, 2 * Wf), jnp.float32)
    s2 = jax.random.normal(k_s2, (N, C_S2, 4 * Hf, 4 * Wf), jnp.float32)
    y = jax.block_until_ready(ssb_forward(s2, s4, final, params))
    _check(y, ssb_reference(s2, s4, final, params), N, Hf, Wf)

    # Case 2: N=1, final 16x16 -> HW=256 split into 2 tiles of 128
    # (exercises the N==1 path that keeps both v7x TensorCores busy).
    N1, H1, W1 = 1, 16, 16
    final1 = jax.random.normal(k_f1, (N1, CF, H1, W1), jnp.float32)
    s41 = jax.random.normal(k_s41, (N1, C_S4, 2 * H1, 2 * W1), jnp.float32)
    s21 = jax.random.normal(k_s21, (N1, C_S2, 4 * H1, 4 * W1), jnp.float32)
    y1 = jax.block_until_ready(ssb_forward(s21, s41, final1, params))
    _check(y1, ssb_reference(s21, s41, final1, params), N1, H1, W1)

    # TODO(synk): the use_e2=True (e2cnn equivariant) branch and the
    # asppv3 / asppv3+ dilated-conv variants are not implemented; this kernel
    # implements the default non-equivariant 'mr' (Lite-R-ASPP) head in eval mode.
    print("KERNEL_OK")
</pallas_src>

<mosaic_0001>
module attributes {stable_mosaic.version = 11 : i64} {
  func.func @ssb_kernel(%arg0: i32, %arg1: i32, %arg2: memref<1x64x1152xbf16, #tpu.memory_space<vmem>>, %arg3: memref<1x64x1152xbf16, #tpu.memory_space<vmem>>, %arg4: memref<1x32x1152xbf16, #tpu.memory_space<vmem>>, %arg5: memref<128x64xbf16, #tpu.memory_space<vmem>>, %arg6: memref<1x128x192xbf16, #tpu.memory_space<vmem>>, %arg7: memref<128x160xbf16, #tpu.memory_space<vmem>>, %arg8: memref<8x128xbf16, #tpu.memory_space<vmem>>, %arg9: memref<128x4xf32, #tpu.memory_space<vmem>>, %arg10: memref<1x8x1152xf32, #tpu.memory_space<vmem>>, %arg11: memref<192x1152xbf16, #tpu.memory_space<vmem>>) attributes {dimension_semantics = [#tpu.dimension_semantics<parallel>, #tpu.dimension_semantics<parallel>], iteration_bounds = array<i64: 2, 2>, scalar_prefetch = 0 : i64, scratch_operands = 1 : i64, tpu.core_type = #tpu.core_type<tc>, window_params = [{transform_indices = @transform_0, window_bounds = array<i64: 1, 64, 1152>}, {transform_indices = @transform_1, window_bounds = array<i64: 1, 64, 1152>}, {transform_indices = @transform_2, window_bounds = array<i64: 1, 32, 1152>}, {pipeline_mode = #tpu.pipeline_mode<synchronous>, transform_indices = @transform_3, window_bounds = array<i64: 128, 64>}, {transform_indices = @transform_4, window_bounds = array<i64: 1, 128, 192>}, {pipeline_mode = #tpu.pipeline_mode<synchronous>, transform_indices = @transform_5, window_bounds = array<i64: 128, 160>}, {pipeline_mode = #tpu.pipeline_mode<synchronous>, transform_indices = @transform_6, window_bounds = array<i64: 8, 128>}, {pipeline_mode = #tpu.pipeline_mode<synchronous>, transform_indices = @transform_7, window_bounds = array<i64: 128, 4>}, {transform_indices = @transform_8, window_bounds = array<i64: 1, 8, 1152>}]} {
    %c0 = arith.constant 0 : index
    %c0_0 = arith.constant 0 : index
    %c0_1 = arith.constant 0 : index
    %0 = vector.load %arg2[%c0, %c0_0, %c0_1] : memref<1x64x1152xbf16, #tpu.memory_space<vmem>>, vector<1x64x1152xbf16>
    %1 = vector.shape_cast %0 : vector<1x64x1152xbf16> to vector<64x1152xbf16>
    %c0_2 = arith.constant 0 : index
    %c0_3 = arith.constant 0 : index
    %2 = vector.load %arg9[%c0_2, %c0_3] : memref<128x4xf32, #tpu.memory_space<vmem>>, vector<128x1xf32>
    %c0_4 = arith.constant 0 : index
    %c1 = arith.constant 1 : index
    %3 = vector.load %arg9[%c0_4, %c1] : memref<128x4xf32, #tpu.memory_space<vmem>>, vector<128x1xf32>
    %c0_5 = arith.constant 0 : index
    %c2 = arith.constant 2 : index
    %4 = vector.load %arg9[%c0_5, %c2] : memref<128x4xf32, #tpu.memory_space<vmem>>, vector<128x1xf32>
    %c0_6 = arith.constant 0 : index
    %c3 = arith.constant 3 : index
    %5 = vector.load %arg9[%c0_6, %c3] : memref<128x4xf32, #tpu.memory_space<vmem>>, vector<8x1xf32>
    %c0_7 = arith.constant 0 : index
    %c0_8 = arith.constant 0 : index
    %6 = vector.load %arg5[%c0_7, %c0_8] : memref<128x64xbf16, #tpu.memory_space<vmem>>, vector<128x64xbf16>
    %cst = arith.constant dense<0.000000e+00> : vector<128x1152xf32>
    %7 = tpu.matmul %6, %1, %cst {dimension_numbers = #tpu.dot_dimension_numbers<[1], [0], [0], [1], [0, 0, 1, 1], [], []>} : vector<128x64xbf16>, vector<64x1152xbf16>, vector<128x1152xf32> -> vector<128x1152xf32>
    %8 = vector.broadcast %2 : vector<128x1xf32> to vector<128x1152xf32>
    %9 = arith.addf %7, %8 : vector<128x1152xf32>
    %cst_9 = arith.constant 0.000000e+00 : f32
    %10 = vector.broadcast %cst_9 : f32 to vector<128x1152xf32>
    %11 = arith.maximumf %9, %10 : vector<128x1152xf32>
    %12 = arith.truncf %11 : vector<128x1152xf32> to vector<128x1152xbf16>
    %c0_10 = arith.constant 0 : index
    %c0_11 = arith.constant 0 : index
    %13 = vector.load %arg11[%c0_10, %c0_11] : memref<192x1152xbf16, #tpu.memory_space<vmem>>, vector<128x1152xbf16>
    tpu.vector_store %arg11[%c0_10, %c0_11], %12 {strides = array<i32>} : memref<192x1152xbf16, #tpu.memory_space<vmem>>, vector<128x1152xbf16>,
    %c0_12 = arith.constant 0 : index
    %c0_13 = arith.constant 0 : index
    %c0_14 = arith.constant 0 : index
    %14 = vector.load %arg3[%c0_12, %c0_13, %c0_14] : memref<1x64x1152xbf16, #tpu.memory_space<vmem>>, vector<1x64x1152xbf16>
    %15 = vector.shape_cast %14 : vector<1x64x1152xbf16> to vector<64x1152xbf16>
    %c128 = arith.constant 128 : index
    %c0_15 = arith.constant 0 : index
    %16 = vector.load %arg11[%c128, %c0_15] : memref<192x1152xbf16, #tpu.memory_space<vmem>>, vector<64x1152xbf16>
    tpu.vector_store %arg11[%c128, %c0_15], %15 {strides = array<i32>} : memref<192x1152xbf16, #tpu.memory_space<vmem>>, vector<64x1152xbf16>,
    %c0_16 = arith.constant 0 : index
    %c0_17 = arith.constant 0 : index
    %c0_18 = arith.constant 0 : index
    %17 = vector.load %arg6[%c0_16, %c0_17, %c0_18] : memref<1x128x192xbf16, #tpu.memory_space<vmem>>, vector<1x128x192xbf16>
    %18 = vector.shape_cast %17 : vector<1x128x192xbf16> to vector<128x192xbf16>
    %c0_19 = arith.constant 0 : index
    %c0_20 = arith.constant 0 : index
    %19 = vector.load %arg11[%c0_19, %c0_20] : memref<192x1152xbf16, #tpu.memory_space<vmem>>, vector<192x1152xbf16>
    %cst_21 = arith.constant dense<0.000000e+00> : vector<128x1152xf32>
    %20 = tpu.matmul %18, %19, %cst_21 {dimension_numbers = #tpu.dot_dimension_numbers<[1], [0], [0], [1], [0, 0, 1, 1], [], []>} : vector<128x192xbf16>, vector<192x1152xbf16>, vector<128x1152xf32> -> vector<128x1152xf32>
    %21 = vector.broadcast %3 : vector<128x1xf32> to vector<128x1152xf32>
    %22 = arith.addf %20, %21 : vector<128x1152xf32>
    %cst_22 = arith.constant 0.000000e+00 : f32
    %23 = vector.broadcast %cst_22 : f32 to vector<128x1152xf32>
    %24 = arith.maximumf %22, %23 : vector<128x1152xf32>
    %25 = arith.truncf %24 : vector<128x1152xf32> to vector<128x1152xbf16>
    %c0_23 = arith.constant 0 : index
    %c0_24 = arith.constant 0 : index
    %26 = vector.load %arg11[%c0_23, %c0_24] : memref<192x1152xbf16, #tpu.memory_space<vmem>>, vector<128x1152xbf16>
    tpu.vector_store %arg11[%c0_23, %c0_24], %25 {strides = array<i32>} : memref<192x1152xbf16, #tpu.memory_space<vmem>>, vector<128x1152xbf16>,
    %c0_25 = arith.constant 0 : index
    %c0_26 = arith.constant 0 : index
    %c0_27 = arith.constant 0 : index
    %27 = vector.load %arg4[%c0_25, %c0_26, %c0_27] : memref<1x32x1152xbf16, #tpu.memory_space<vmem>>, vector<1x32x1152xbf16>
    %28 = vector.shape_cast %27 : vector<1x32x1152xbf16> to vector<32x1152xbf16>
    %c128_28 = arith.constant 128 : index
    %c0_29 = arith.constant 0 : index
    %29 = vector.load %arg11[%c128_28, %c0_29] : memref<192x1152xbf16, #tpu.memory_space<vmem>>, vector<32x1152xbf16>
    tpu.vector_store %arg11[%c128_28, %c0_29], %28 {strides = array<i32>} : memref<192x1152xbf16, #tpu.memory_space<vmem>>, vector<32x1152xbf16>,
    %c0_30 = arith.constant 0 : index
    %c0_31 = arith.constant 0 : index
    %30 = vector.load %arg7[%c0_30, %c0_31] : memref<128x160xbf16, #tpu.memory_space<vmem>>, vector<128x160xbf16>
    %c0_32 = arith.constant 0 : index
    %c0_33 = arith.constant 0 : index
    %31 = vector.load %arg11[%c0_32, %c0_33] : memref<192x1152xbf16, #tpu.memory_space<vmem>>, vector<160x1152xbf16>
    %cst_34 = arith.constant dense<0.000000e+00> : vector<128x1152xf32>
    %32 = tpu.matmul %30, %31, %cst_34 {dimension_numbers = #tpu.dot_dimension_numbers<[1], [0], [0], [1], [0, 0, 1, 1], [], []>} : vector<128x160xbf16>, vector<160x1152xbf16>, vector<128x1152xf32> -> vector<128x1152xf32>
    %33 = vector.broadcast %4 : vector<128x1xf32> to vector<128x1152xf32>
    %34 = arith.addf %32, %33 : vector<128x1152xf32>
    %cst_35 = arith.constant 0.000000e+00 : f32
    %35 = vector.broadcast %cst_35 : f32 to vector<128x1152xf32>
    %36 = arith.maximumf %34, %35 : vector<128x1152xf32>
    %37 = arith.truncf %36 : vector<128x1152xf32> to vector<128x1152xbf16>
    %c0_36 = arith.constant 0 : index
    %c0_37 = arith.constant 0 : index
    %38 = vector.load %arg8[%c0_36, %c0_37] : memref<8x128xbf16, #tpu.memory_space<vmem>>, vector<8x128xbf16>
    %cst_38 = arith.constant dense<0.000000e+00> : vector<8x1152xf32>
    %39 = tpu.matmul %38, %37, %cst_38 {dimension_numbers = #tpu.dot_dimension_numbers<[1], [0], [0], [1], [0, 0, 1, 1], [], []>} : vector<8x128xbf16>, vector<128x1152xbf16>, vector<8x1152xf32> -> vector<8x1152xf32>
    %40 = vector.broadcast %5 : vector<8x1xf32> to vector<8x1152xf32>
    %41 = arith.addf %39, %40 : vector<8x1152xf32>
    %cst_39 = arith.constant dense<0xFF800000> : vector<1152xf32>
    %42 = vector.multi_reduction <maximumf>, %41, %cst_39 [0] : vector<8x1152xf32> to vector<1152xf32>
    %43 = vector.shape_cast %42 : vector<1152xf32> to vector<1x1152xf32>
    %44 = vector.broadcast %43 : vector<1x1152xf32> to vector<8x1152xf32>
    %45 = arith.subf %41, %44 : vector<8x1152xf32>
    %46 = math.exp %45 : vector<8x1152xf32>
    %cst_40 = arith.constant dense<0.000000e+00> : vector<1152xf32>
    %47 = vector.multi_reduction <add>, %46, %cst_40 [0] : vector<8x1152xf32> to vector<1152xf32>
    %48 = vector.shape_cast %47 : vector<1152xf32> to vector<1x1152xf32>
    %49 = vector.broadcast %48 : vector<1x1152xf32> to vector<8x1152xf32>
    %50 = arith.divf %46, %49 : vector<8x1152xf32>
    %c0_41 = arith.constant 0 : index
    %c0_42 = arith.constant 0 : index
    %c0_43 = arith.constant 0 : index
    %51 = vector.load %arg10[%c0_41, %c0_42, %c0_43] : memref<1x8x1152xf32, #tpu.memory_space<vmem>>, vector<1x8x1152xf32>
    %52 = vector.shape_cast %51 : vector<1x8x1152xf32> to vector<8x1152xf32>
    %53 = vector.shape_cast %50 : vector<8x1152xf32> to vector<1x8x1152xf32>
    tpu.vector_store %arg10[%c0_41, %c0_42, %c0_43], %53 {strides = array<i32>} : memref<1x8x1152xf32, #tpu.memory_space<vmem>>, vector<1x8x1152xf32>,
    return
  }
  func.func @transform_0(%arg0: i32, %arg1: i32) -> (i32, i32, i32) {
    %c0_i32 = arith.constant 0 : i32
    %c0_i32_0 = arith.constant 0 : i32
    return %arg0, %c0_i32, %arg1 : i32, i32, i32
  }
  func.func @transform_1(%arg0: i32, %arg1: i32) -> (i32, i32, i32) {
    %c0_i32 = arith.constant 0 : i32
    %c0_i32_0 = arith.constant 0 : i32
    return %arg0, %c0_i32, %arg1 : i32, i32, i32
  }
  func.func @transform_2(%arg0: i32, %arg1: i32) -> (i32, i32, i32) {
    %c0_i32 = arith.constant 0 : i32
    %c0_i32_0 = arith.constant 0 : i32
    return %arg0, %c0_i32, %arg1 : i32, i32, i32
  }
  func.func @transform_3(%arg0: i32, %arg1: i32) -> (i32, i32) {
    %c0_i32 = arith.constant 0 : i32
    %c0_i32_0 = arith.constant 0 : i32
    %c0_i32_1 = arith.constant 0 : i32
    return %c0_i32, %c0_i32_0 : i32, i32
  }
  func.func @transform_4(%arg0: i32, %arg1: i32) -> (i32, i32, i32) {
    %c0_i32 = arith.constant 0 : i32
    %c0_i32_0 = arith.constant 0 : i32
    %c0_i32_1 = arith.constant 0 : i32
    return %arg0, %c0_i32, %c0_i32_0 : i32, i32, i32
  }
  func.func @transform_5(%arg0: i32, %arg1: i32) -> (i32, i32) {
    %c0_i32 = arith.constant 0 : i32
    %c0_i32_0 = arith.constant 0 : i32
    %c0_i32_1 = arith.constant 0 : i32
    return %c0_i32, %c0_i32_0 : i32, i32
  }
  func.func @transform_6(%arg0: i32, %arg1: i32) -> (i32, i32) {
    %c0_i32 = arith.constant 0 : i32
    %c0_i32_0 = arith.constant 0 : i32
    %c0_i32_1 = arith.constant 0 : i32
    return %c0_i32, %c0_i32_0 : i32, i32
  }
  func.func @transform_7(%arg0: i32, %arg1: i32) -> (i32, i32) {
    %c0_i32 = arith.constant 0 : i32
    %c0_i32_0 = arith.constant 0 : i32
    %c0_i32_1 = arith.constant 0 : i32
    return %c0_i32, %c0_i32_0 : i32, i32
  }
  func.func @transform_8(%arg0: i32, %arg1: i32) -> (i32, i32, i32) {
    %c0_i32 = arith.constant 0 : i32
    %c0_i32_0 = arith.constant 0 : i32
    return %arg0, %c0_i32, %arg1 : i32, i32, i32
  }
}

</mosaic_0001>

<bundles_post_ra>
// kernel: ssb_forward.1
= control target key start
LH: loop header
LB: loop body
LE: loop exit
PB: predicated region body
PF: predicated region fallthrough
CT: control target
= control target key end

     0   :  { %s7928_s27 = smov 0   ;;  %s7930_s28 = smov 0   ;;  %s10953_s0 = inlined_call_operand.vmem [shape: bf16[2,64,2304], index: 0, kind: input, shape index: {}]   ;;  %s10954_s1 = inlined_call_operand.vmem [shape: bf16[2,64,2304], index: 1, kind: input, shape index: {}]   ;;  %s10955_s2 = inlined_call_operand.vmem [shape: bf16[2,32,2304], index: 2, kind: input, shape index: {}]   ;;  %s10956_s3 = inlined_call_operand.vmem [shape: bf16[128,64], index: 3, kind: input, shape index: {}]   ;;  %s10957_s4 = inlined_call_operand.vmem [shape: bf16[2,128,192], index: 4, kind: input, shape index: {}]   ;;  %s10958_s5 = inlined_call_operand.vmem [shape: bf16[128,160], index: 5, kind: input, shape index: {}]   ;;  %s10959_s6 = inlined_call_operand.vmem [shape: bf16[8,128], index: 6, kind: input, shape index: {}]   ;;  %s10960_s7 = inlined_call_operand.vmem [shape: f32[128,4], index: 7, kind: input, shape index: {}]   ;;  %s10961_s8 = inlined_call_operand.vmem [shape: f32[2,8,2304], index: 8, kind: output, shape index: {}]  }
   0x1   :  { %s7932_s29 = smov 0   ;;  %s7934_s30 = smov 0  }
   0x2   :  { %s7936_s9 = smov 0   ;;  %s7938_s10 = smov 0  }
   0x3   :  { %s7940_s11 = smov 0  }
   0x4 LB: > { %s27_s12 = sadd.s32 1, %s7867_s9  ;;  %s30_s13 = sadd.s32 1, %s7871_s10  ;;  %s7875_s11 = sphi %s7940_s11, %s18_s11   ;;  %s7871_s10 = sphi %s7938_s10, %s11591_s10   ;;  %s7867_s9 = sphi %s7936_s9, %s11590_s9   ;;  %s7863_s30 = sphi %s7934_s30, %s11589_s30   ;;  %s7859_s29 = sphi %s7932_s29, %s11588_s29   ;;  %s7855_s28 = sphi %s7930_s28, %s11587_s28   ;;  %s7851_s27 = sphi %s7928_s27, %s11586_s27  }
   0x5   : > { %p28_p0 = scmp.ge.s32.totalorder %s27_s12, 2  ;;  %p46_p1 = scmp.ne.s32.totalorder %s7855_s28, %s7851_s27 }
   0x6   : > { %p47_p2 = scmp.eq.s32.totalorder %s7875_s11, 0  ;;  %s39_s18 = sadd.s32 1, %s7855_s28 }
   0x7   : > { %s11593_s12 = smov (%p28_p0, %s27_s12), 0  ;;  %s11595_s13 = smov (!%p28_p0, %s30_s13), %s7871_s10 }
   0x8   : > { %p7971_p3 = por %p47_p2, %p46_p1  ;;  %p32_p4 = scmp.ge.s32.totalorder %s11595_s13, 2 }
   0x9   : > { %s35_s15 = ssub.s32 %s7867_s9, %s11593_s12  ;;  %p6535_p6 = scmp.ge.s32.totalorder %s7875_s11, 4 }
   0xa   : > { %s11597_s13 = smov (%p32_p4, %s11595_s13), 0 }
   0xb   : > { %s34_s16 = ssub.s32 %s7871_s10, %s11597_s13  ;;  %278 = sbr.rel (%p6535_p6) target bundleno = 95 (0x5f), region = 32 }
   0xc   : > { %s36_s17 = sor.u32 %s35_s15, %s34_s16 }
   0xd   : > { %p37_p5 = scmp.eq.s32.totalorder %s36_s17, 0 }
   0xf   : > { %s7983_s19 = scalar_select %p37_p5, %s7855_s28, %s39_s18  }
  0x10   : > { %281 = sbr.rel (!%p7971_p3) target bundleno = 46 (0x2e), region = 36  ;;  %s283_s20 = sand.u32 (%p7971_p3), 1, %s7855_s28  }
  0x11   : > { %s286_s21 = smul.u32 (%p7971_p3), 9, %s7867_s9 }
  0x12   : > { %s7365_s22 = smul.u32 (%p7971_p3), 288, %s283_s20 }
  0x13   : > { %s7366_s23 = smul.u32 (%p7971_p3), 144, %s7871_s10 }
  0x14   : > { %s7999_s17 = scalar_lea.vmem (%p7971_p3), [#allocation3], %s7365_s22 }
  0x15   : > { %s288_s24 = sadd.s32 %s7366_s23, %s286_s21 }
  0x16   : > { %s6536_s25 = sshll.u32 %s288_s24, 2 }
  0x17   : > { %s7994_s16 = scalar_lea.vmem %s10953_s0, %s6536_s25 }
  0x18   : > { %v305_v0 = vld [vmem:[%s7994_s16] sm:$0xff]  ;;  %v307_v1 = vld [vmem:[%s7994_s16 + $0x8] sm:$0xff]  ;;  %v309_v2 = vld [vmem:[%s7994_s16 + $0x10] sm:$0xff] }
  0x19   : > { %306 = vst [vmem:[%s7999_s17] sm:$0xff] %v305_v0  ;;  %308 = vst [vmem:[%s7999_s17 + $0x8] sm:$0xff] %v307_v1  ;;  %v311_v3 = vld [vmem:[%s7994_s16 + $0x18] sm:$0xff]  ;;  %v313_v4 = vld [vmem:[%s7994_s16 + $0x48] sm:$0xff] }
  0x1a   : > { %310 = vst [vmem:[%s7999_s17 + $0x10] sm:$0xff] %v309_v2  ;;  %v315_v5 = vld [vmem:[%s7994_s16 + $0x50] sm:$0xff]  ;;  %312 = vst [vmem:[%s7999_s17 + $0x18] sm:$0xff] %v311_v3  ;;  %v317_v6 = vld [vmem:[%s7994_s16 + $0x58] sm:$0xff] }
  0x1b   : > { %314 = vst [vmem:[%s7999_s17 + $0x24] sm:$0xff] %v313_v4  ;;  %316 = vst [vmem:[%s7999_s17 + $0x2c] sm:$0xff] %v315_v5  ;;  %v319_v7 = vld [vmem:[%s7994_s16 + $0x60] sm:$0xff]  ;;  %v321_v8 = vld [vmem:[%s7994_s16 + $0x90] sm:$0xff] }
  0x1c   : > { %318 = vst [vmem:[%s7999_s17 + $0x34] sm:$0xff] %v317_v6  ;;  %320 = vst [vmem:[%s7999_s17 + $0x3c] sm:$0xff] %v319_v7  ;;  %v323_v9 = vld [vmem:[%s7994_s16 + $0x98] sm:$0xff]  ;;  %v325_v10 = vld [vmem:[%s7994_s16 + $0xa0] sm:$0xff] }
  0x1d   : > { %322 = vst [vmem:[%s7999_s17 + $0x48] sm:$0xff] %v321_v8  ;;  %v327_v11 = vld [vmem:[%s7994_s16 + $0xa8] sm:$0xff]  ;;  %324 = vst [vmem:[%s7999_s17 + $0x50] sm:$0xff] %v323_v9  ;;  %v329_v12 = vld [vmem:[%s7994_s16 + $0xd8] sm:$0xff] }
  0x1e   : > { %326 = vst [vmem:[%s7999_s17 + $0x58] sm:$0xff] %v325_v10  ;;  %328 = vst [vmem:[%s7999_s17 + $0x60] sm:$0xff] %v327_v11  ;;  %v331_v13 = vld [vmem:[%s7994_s16 + $0xe0] sm:$0xff]  ;;  %v333_v14 = vld [vmem:[%s7994_s16 + $0xe8] sm:$0xff] }
  0x1f   : > { %330 = vst [vmem:[%s7999_s17 + $0x6c] sm:$0xff] %v329_v12  ;;  %332 = vst [vmem:[%s7999_s17 + $0x74] sm:$0xff] %v331_v13  ;;  %v335_v15 = vld [vmem:[%s7994_s16 + $0xf0] sm:$0xff]  ;;  %v337_v16 = vld [vmem:[%s7994_s16 + $0x120] sm:$0xff] }
  0x20   : > { %334 = vst [vmem:[%s7999_s17 + $0x7c] sm:$0xff] %v333_v14  ;;  %v339_v17 = vld [vmem:[%s7994_s16 + $0x128] sm:$0xff]  ;;  %336 = vst [vmem:[%s7999_s17 + $0x84] sm:$0xff] %v335_v15  ;;  %v341_v18 = vld [vmem:[%s7994_s16 + $0x130] sm:$0xff] }
  0x21   : > { %338 = vst [vmem:[%s7999_s17 + $0x90] sm:$0xff] %v337_v16  ;;  %340 = vst [vmem:[%s7999_s17 + $0x98] sm:$0xff] %v339_v17  ;;  %v343_v19 = vld [vmem:[%s7994_s16 + $0x138] sm:$0xff]  ;;  %v345_v20 = vld [vmem:[%s7994_s16 + $0x168] sm:$0xff] }
  0x22   : > { %342 = vst [vmem:[%s7999_s17 + $0xa0] sm:$0xff] %v341_v18  ;;  %344 = vst [vmem:[%s7999_s17 + $0xa8] sm:$0xff] %v343_v19  ;;  %v347_v21 = vld [vmem:[%s7994_s16 + $0x170] sm:$0xff]  ;;  %v349_v22 = vld [vmem:[%s7994_s16 + $0x178] sm:$0xff] }
  0x23   : > { %346 = vst [vmem:[%s7999_s17 + $0xb4] sm:$0xff] %v345_v20  ;;  %v351_v23 = vld [vmem:[%s7994_s16 + $0x180] sm:$0xff]  ;;  %348 = vst [vmem:[%s7999_s17 + $0xbc] sm:$0xff] %v347_v21  ;;  %v353_v24 = vld [vmem:[%s7994_s16 + $0x1b0] sm:$0xff] }
  0x24   : > { %350 = vst [vmem:[%s7999_s17 + $0xc4] sm:$0xff] %v349_v22  ;;  %352 = vst [vmem:[%s7999_s17 + $0xcc] sm:$0xff] %v351_v23  ;;  %v355_v25 = vld [vmem:[%s7994_s16 + $0x1b8] sm:$0xff]  ;;  %v357_v26 = vld [vmem:[%s7994_s16 + $0x1c0] sm:$0xff] }
  0x25   : > { %354 = vst [vmem:[%s7999_s17 + $0xd8] sm:$0xff] %v353_v24  ;;  %356 = vst [vmem:[%s7999_s17 + $0xe0] sm:$0xff] %v355_v25  ;;  %v359_v27 = vld [vmem:[%s7994_s16 + $0x1c8] sm:$0xff]  ;;  %v361_v28 = vld [vmem:[%s7994_s16 + $0x1f8] sm:$0xff] }
  0x26   : > { %358 = vst [vmem:[%s7999_s17 + $0xe8] sm:$0xff] %v357_v26  ;;  %v363_v29 = vld [vmem:[%s7994_s16 + $0x200] sm:$0xff]  ;;  %360 = vst [vmem:[%s7999_s17 + $0xf0] sm:$0xff] %v359_v27  ;;  %v365_v30 = vld [vmem:[%s7994_s16 + $0x208] sm:$0xff] }
  0x27   : > { %362 = vst [vmem:[%s7999_s17 + $0xfc] sm:$0xff] %v361_v28  ;;  %364 = vst [vmem:[%s7999_s17 + $0x104] sm:$0xff] %v363_v29  ;;  %v367_v31 = vld [vmem:[%s7994_s16 + $0x210] sm:$0xff]  ;;  %v6537_v32 = vld [vmem:[%s7994_s16 + $0x20] sm:$0xf] }
  0x28   : > { %366 = vst [vmem:[%s7999_s17 + $0x10c] sm:$0xff] %v365_v30  ;;  %368 = vst [vmem:[%s7999_s17 + $0x114] sm:$0xff] %v367_v31  ;;  %v6539_v33 = vld [vmem:[%s7994_s16 + $0x68] sm:$0xf]  ;;  %v6541_v34 = vld [vmem:[%s7994_s16 + $0xb0] sm:$0xf] }
  0x29   : > { %6538 = vst [vmem:[%s7999_s17 + $0x20] sm:$0xf] %v6537_v32  ;;  %v6543_v35 = vld [vmem:[%s7994_s16 + $0xf8] sm:$0xf]  ;;  %6540 = vst [vmem:[%s7999_s17 + $0x44] sm:$0xf] %v6539_v33 }
  0x2a   : > { %6542 = vst [vmem:[%s7999_s17 + $0x68] sm:$0xf] %v6541_v34  ;;  %6544 = vst [vmem:[%s7999_s17 + $0x8c] sm:$0xf] %v6543_v35  ;;  %v6545_v36 = vld [vmem:[%s7994_s16 + $0x140] sm:$0xf] }
  0x2b   : > { %v6547_v37 = vld [vmem:[%s7994_s16 + $0x188] sm:$0xf]  ;;  %v6549_v38 = vld [vmem:[%s7994_s16 + $0x1d0] sm:$0xf]  ;;  %6546 = vst [vmem:[%s7999_s17 + $0xb0] sm:$0xf] %v6545_v36 }
  0x2c   : > { %6548 = vst [vmem:[%s7999_s17 + $0xd4] sm:$0xf] %v6547_v37  ;;  %6550 = vst [vmem:[%s7999_s17 + $0xf8] sm:$0xf] %v6549_v38  ;;  %v6551_v39 = vld [vmem:[%s7994_s16 + $0x218] sm:$0xf] }
  0x2d   : > { %6552 = vst [vmem:[%s7999_s17 + $0x11c] sm:$0xf] %v6551_v39 }
  0x2e PF: > { %398 = sbr.rel (!%p7971_p3) target bundleno = 76 (0x4c), region = 62  ;;  %s400_s18 = sand.u32 (%p7971_p3), 1, %s7855_s28  }
  0x2f   : > { %s403_s20 = smul.u32 (%p7971_p3), 9, %s7867_s9 }
  0x30   : > { %s7367_s21 = smul.u32 (%p7971_p3), 288, %s400_s18 }
  0x31   : > { %s7368_s22 = smul.u32 (%p7971_p3), 144, %s7871_s10 }
  0x32   : > { %s8091_s16 = scalar_lea.vmem (%p7971_p3), [#allocation4], %s7367_s21 }
  0x33   : > { %s405_s23 = sadd.s32 %s7368_s22, %s403_s20 }
  0x34   : > { %s6553_s24 = sshll.u32 %s405_s23, 2 }
  0x35   : > { %s8086_s15 = scalar_lea.vmem %s10954_s1, %s6553_s24 }
  0x36   : > { %v422_v40 = vld [vmem:[%s8086_s15] sm:$0xff]  ;;  %v424_v41 = vld [vmem:[%s8086_s15 + $0x8] sm:$0xff]  ;;  %v426_v42 = vld [vmem:[%s8086_s15 + $0x10] sm:$0xff] }
  0x37   : > { %423 = vst [vmem:[%s8091_s16] sm:$0xff] %v422_v40  ;;  %425 = vst [vmem:[%s8091_s16 + $0x8] sm:$0xff] %v424_v41  ;;  %v428_v43 = vld [vmem:[%s8086_s15 + $0x18] sm:$0xff]  ;;  %v430_v44 = vld [vmem:[%s8086_s15 + $0x48] sm:$0xff] }
  0x38   : > { %427 = vst [vmem:[%s8091_s16 + $0x10] sm:$0xff] %v426_v42  ;;  %v432_v45 = vld [vmem:[%s8086_s15 + $0x50] sm:$0xff]  ;;  %429 = vst [vmem:[%s8091_s16 + $0x18] sm:$0xff] %v428_v43  ;;  %v434_v46 = vld [vmem:[%s8086_s15 + $0x58] sm:$0xff] }
  0x39   : > { %431 = vst [vmem:[%s8091_s16 + $0x24] sm:$0xff] %v430_v44  ;;  %433 = vst [vmem:[%s8091_s16 + $0x2c] sm:$0xff] %v432_v45  ;;  %v436_v47 = vld [vmem:[%s8086_s15 + $0x60] sm:$0xff]  ;;  %v438_v48 = vld [vmem:[%s8086_s15 + $0x90] sm:$0xff] }
  0x3a   : > { %435 = vst [vmem:[%s8091_s16 + $0x34] sm:$0xff] %v434_v46  ;;  %437 = vst [vmem:[%s8091_s16 + $0x3c] sm:$0xff] %v436_v47  ;;  %v440_v49 = vld [vmem:[%s8086_s15 + $0x98] sm:$0xff]  ;;  %v442_v50 = vld [vmem:[%s8086_s15 + $0xa0] sm:$0xff] }
  0x3b   : > { %439 = vst [vmem:[%s8091_s16 + $0x48] sm:$0xff] %v438_v48  ;;  %v444_v51 = vld [vmem:[%s8086_s15 + $0xa8] sm:$0xff]  ;;  %441 = vst [vmem:[%s8091_s16 + $0x50] sm:$0xff] %v440_v49  ;;  %v446_v52 = vld [vmem:[%s8086_s15 + $0xd8] sm:$0xff] }
  0x3c   : > { %443 = vst [vmem:[%s8091_s16 + $0x58] sm:$0xff] %v442_v50  ;;  %445 = vst [vmem:[%s8091_s16 + $0x60] sm:$0xff] %v444_v51  ;;  %v448_v53 = vld [vmem:[%s8086_s15 + $0xe0] sm:$0xff]  ;;  %v450_v54 = vld [vmem:[%s8086_s15 + $0xe8] sm:$0xff] }
  0x3d   : > { %447 = vst [vmem:[%s8091_s16 + $0x6c] sm:$0xff] %v446_v52  ;;  %449 = vst [vmem:[%s8091_s16 + $0x74] sm:$0xff] %v448_v53  ;;  %v452_v55 = vld [vmem:[%s8086_s15 + $0xf0] sm:$0xff]  ;;  %v454_v56 = vld [vmem:[%s8086_s15 + $0x120] sm:$0xff] }
  0x3e   : > { %451 = vst [vmem:[%s8091_s16 + $0x7c] sm:$0xff] %v450_v54  ;;  %v456_v57 = vld [vmem:[%s8086_s15 + $0x128] sm:$0xff]  ;;  %453 = vst [vmem:[%s8091_s16 + $0x84] sm:$0xff] %v452_v55  ;;  %v458_v58 = vld [vmem:[%s8086_s15 + $0x130] sm:$0xff] }
  0x3f   : > { %455 = vst [vmem:[%s8091_s16 + $0x90] sm:$0xff] %v454_v56  ;;  %457 = vst [vmem:[%s8091_s16 + $0x98] sm:$0xff] %v456_v57  ;;  %v460_v59 = vld [vmem:[%s8086_s15 + $0x138] sm:$0xff]  ;;  %v462_v60 = vld [vmem:[%s8086_s15 + $0x168] sm:$0xff] }
  0x40   : > { %459 = vst [vmem:[%s8091_s16 + $0xa0] sm:$0xff] %v458_v58  ;;  %461 = vst [vmem:[%s8091_s16 + $0xa8] sm:$0xff] %v460_v59  ;;  %v464_v61 = vld [vmem:[%s8086_s15 + $0x170] sm:$0xff]  ;;  %v466_v62 = vld [vmem:[%s8086_s15 + $0x178] sm:$0xff] }
  0x41   : > { %463 = vst [vmem:[%s8091_s16 + $0xb4] sm:$0xff] %v462_v60  ;;  %v468_v63 = vld [vmem:[%s8086_s15 + $0x180] sm:$0xff]  ;;  %465 = vst [vmem:[%s8091_s16 + $0xbc] sm:$0xff] %v464_v61  ;;  %v470_v0 = vld [vmem:[%s8086_s15 + $0x1b0] sm:$0xff] }
  0x42   : > { %467 = vst [vmem:[%s8091_s16 + $0xc4] sm:$0xff] %v466_v62  ;;  %469 = vst [vmem:[%s8091_s16 + $0xcc] sm:$0xff] %v468_v63  ;;  %v472_v1 = vld [vmem:[%s8086_s15 + $0x1b8] sm:$0xff]  ;;  %v474_v2 = vld [vmem:[%s8086_s15 + $0x1c0] sm:$0xff] }
  0x43   : > { %471 = vst [vmem:[%s8091_s16 + $0xd8] sm:$0xff] %v470_v0  ;;  %473 = vst [vmem:[%s8091_s16 + $0xe0] sm:$0xff] %v472_v1  ;;  %v476_v3 = vld [vmem:[%s8086_s15 + $0x1c8] sm:$0xff]  ;;  %v478_v4 = vld [vmem:[%s8086_s15 + $0x1f8] sm:$0xff] }
  0x44   : > { %475 = vst [vmem:[%s8091_s16 + $0xe8] sm:$0xff] %v474_v2  ;;  %v480_v5 = vld [vmem:[%s8086_s15 + $0x200] sm:$0xff]  ;;  %477 = vst [vmem:[%s8091_s16 + $0xf0] sm:$0xff] %v476_v3  ;;  %v482_v6 = vld [vmem:[%s8086_s15 + $0x208] sm:$0xff] }
  0x45   : > { %479 = vst [vmem:[%s8091_s16 + $0xfc] sm:$0xff] %v478_v4  ;;  %481 = vst [vmem:[%s8091_s16 + $0x104] sm:$0xff] %v480_v5  ;;  %v484_v7 = vld [vmem:[%s8086_s15 + $0x210] sm:$0xff]  ;;  %v6554_v8 = vld [vmem:[%s8086_s15 + $0x20] sm:$0xf] }
  0x46   : > { %483 = vst [vmem:[%s8091_s16 + $0x10c] sm:$0xff] %v482_v6  ;;  %485 = vst [vmem:[%s8091_s16 + $0x114] sm:$0xff] %v484_v7  ;;  %v6556_v9 = vld [vmem:[%s8086_s15 + $0x68] sm:$0xf]  ;;  %v6558_v10 = vld [vmem:[%s8086_s15 + $0xb0] sm:$0xf] }
  0x47   : > { %6555 = vst [vmem:[%s8091_s16 + $0x20] sm:$0xf] %v6554_v8  ;;  %v6560_v11 = vld [vmem:[%s8086_s15 + $0xf8] sm:$0xf]  ;;  %6557 = vst [vmem:[%s8091_s16 + $0x44] sm:$0xf] %v6556_v9 }
  0x48   : > { %6559 = vst [vmem:[%s8091_s16 + $0x68] sm:$0xf] %v6558_v10  ;;  %6561 = vst [vmem:[%s8091_s16 + $0x8c] sm:$0xf] %v6560_v11  ;;  %v6562_v12 = vld [vmem:[%s8086_s15 + $0x140] sm:$0xf] }
  0x49   : > { %v6564_v13 = vld [vmem:[%s8086_s15 + $0x188] sm:$0xf]  ;;  %v6566_v14 = vld [vmem:[%s8086_s15 + $0x1d0] sm:$0xf]  ;;  %6563 = vst [vmem:[%s8091_s16 + $0xb0] sm:$0xf] %v6562_v12 }
  0x4a   : > { %6565 = vst [vmem:[%s8091_s16 + $0xd4] sm:$0xf] %v6564_v13  ;;  %6567 = vst [vmem:[%s8091_s16 + $0xf8] sm:$0xf] %v6566_v14  ;;  %v6568_v15 = vld [vmem:[%s8086_s15 + $0x218] sm:$0xf] }
  0x4b   : > { %6569 = vst [vmem:[%s8091_s16 + $0x11c] sm:$0xf] %v6568_v15 }
  0x4c PF: > { %515 = sbr.rel (!%p7971_p3) target bundleno = 95 (0x5f), region = 88  ;;  %s517_s17 = sand.u32 (%p7971_p3), 1, %s7855_s28  }
  0x4d   : > { %s520_s18 = smul.u32 (%p7971_p3), 9, %s7867_s9 }
  0x4e   : > { %s7369_s20 = smul.u32 (%p7971_p3), 144, %s517_s17 }
  0x4f   : > { %s7370_s21 = smul.u32 (%p7971_p3), 72, %s7871_s10 }
  0x50   : > { %s8183_s14 = scalar_lea.vmem (%p7971_p3), [#allocation5], %s7369_s20 }
  0x51   : > { %s522_s22 = sadd.s32 %s7370_s21, %s520_s18 }
  0x52   : > { %s6570_s23 = sshll.u32 %s522_s22, 2 }
  0x53   : > { %s8178_s26 = scalar_lea.vmem %s10955_s2, %s6570_s23 }
  0x54   : > { %v539_v16 = vld [vmem:[%s8178_s26] sm:$0xff]  ;;  %v541_v17 = vld [vmem:[%s8178_s26 + $0x8] sm:$0xff]  ;;  %v543_v18 = vld [vmem:[%s8178_s26 + $0x10] sm:$0xff] }
  0x55   : > { %540 = vst [vmem:[%s8183_s14] sm:$0xff] %v539_v16  ;;  %542 = vst [vmem:[%s8183_s14 + $0x8] sm:$0xff] %v541_v17  ;;  %v545_v19 = vld [vmem:[%s8178_s26 + $0x18] sm:$0xff]  ;;  %v547_v20 = vld [vmem:[%s8178_s26 + $0x48] sm:$0xff] }
  0x56   : > { %544 = vst [vmem:[%s8183_s14 + $0x10] sm:$0xff] %v543_v18  ;;  %v549_v21 = vld [vmem:[%s8178_s26 + $0x50] sm:$0xff]  ;;  %546 = vst [vmem:[%s8183_s14 + $0x18] sm:$0xff] %v545_v19  ;;  %v551_v22 = vld [vmem:[%s8178_s26 + $0x58] sm:$0xff] }
  0x57   : > { %548 = vst [vmem:[%s8183_s14 + $0x24] sm:$0xff] %v547_v20  ;;  %550 = vst [vmem:[%s8183_s14 + $0x2c] sm:$0xff] %v549_v21  ;;  %v553_v23 = vld [vmem:[%s8178_s26 + $0x60] sm:$0xff]  ;;  %v555_v24 = vld [vmem:[%s8178_s26 + $0x90] sm:$0xff] }
  0x58   : > { %552 = vst [vmem:[%s8183_s14 + $0x34] sm:$0xff] %v551_v22  ;;  %554 = vst [vmem:[%s8183_s14 + $0x3c] sm:$0xff] %v553_v23  ;;  %v557_v25 = vld [vmem:[%s8178_s26 + $0x98] sm:$0xff]  ;;  %v559_v26 = vld [vmem:[%s8178_s26 + $0xa0] sm:$0xff] }
  0x59   : > { %556 = vst [vmem:[%s8183_s14 + $0x48] sm:$0xff] %v555_v24  ;;  %v561_v27 = vld [vmem:[%s8178_s26 + $0xa8] sm:$0xff]  ;;  %558 = vst [vmem:[%s8183_s14 + $0x50] sm:$0xff] %v557_v25  ;;  %v563_v28 = vld [vmem:[%s8178_s26 + $0xd8] sm:$0xff] }
  0x5a   : > { %560 = vst [vmem:[%s8183_s14 + $0x58] sm:$0xff] %v559_v26  ;;  %562 = vst [vmem:[%s8183_s14 + $0x60] sm:$0xff] %v561_v27  ;;  %v565_v29 = vld [vmem:[%s8178_s26 + $0xe0] sm:$0xff]  ;;  %v567_v30 = vld [vmem:[%s8178_s26 + $0xe8] sm:$0xff] }
  0x5b   : > { %564 = vst [vmem:[%s8183_s14 + $0x6c] sm:$0xff] %v563_v28  ;;  %566 = vst [vmem:[%s8183_s14 + $0x74] sm:$0xff] %v565_v29  ;;  %v569_v31 = vld [vmem:[%s8178_s26 + $0xf0] sm:$0xff]  ;;  %v6571_v32 = vld [vmem:[%s8178_s26 + $0x20] sm:$0xf] }
  0x5c   : > { %568 = vst [vmem:[%s8183_s14 + $0x7c] sm:$0xff] %v567_v30  ;;  %v6573_v33 = vld [vmem:[%s8178_s26 + $0x68] sm:$0xf]  ;;  %570 = vst [vmem:[%s8183_s14 + $0x84] sm:$0xff] %v569_v31  ;;  %v6575_v34 = vld [vmem:[%s8178_s26 + $0xb0] sm:$0xf] }
  0x5d   : > { %6572 = vst [vmem:[%s8183_s14 + $0x20] sm:$0xf] %v6571_v32  ;;  %6574 = vst [vmem:[%s8183_s14 + $0x44] sm:$0xf] %v6573_v33  ;;  %v6577_v35 = vld [vmem:[%s8178_s26 + $0xf8] sm:$0xf] }
  0x5e   : > { %6576 = vst [vmem:[%s8183_s14 + $0x68] sm:$0xf] %v6575_v34  ;;  %6578 = vst [vmem:[%s8183_s14 + $0x8c] sm:$0xf] %v6577_v35 }
  0x5f PF: > { %p6579_p7 = scmp.ge.s32.totalorder %s7875_s11, 1  ;;  %p599_p8 = scmp.lt.s32.totalorder %s7875_s11, 5 }
  0x61   : > { %p600_p9 = pnand %p6579_p7, %p599_p8 }
  0x63   : > { %603 = sbr.rel (%p600_p9) target bundleno = 1423 (0x58f), region = 118 }
  0x68   : > { %s606_s15 = sand.u32 1, %s7851_s27   ;;  %v10962_v36 = vmov 0   ;;  %v8256_v54 = vld [vmem:[%s10956_s3] sm:$0xff]   ;;  %v8261_v55 = vld [vmem:[%s10960_s7 + $0x70] sm:$0xff]  ;;  %vm1065_vm0 = vcmask 523264   ;;  %v8274_v59 = vld [vmem:[%s10960_s7 + $0x78] sm:$0xff] }
  0x69   : > { %s8227_s16 = smul.u32 288, %s606_s15  ;;  %1122 = vmatprep.mubr.bf16.mxu0 %v10962_v36  ;;  %1235 = vmatprep.mubr.bf16.mxu1 %v10962_v36  ;;  %v8267_v57 = vld [vmem:[%s10960_s7 + $0x60] sm:$0xff]  ;;  %v8288_v62 = vld [vmem:[%s10960_s7 + $0x68] sm:$0xff]  ;;  %v8296_v1 = vld [vmem:[%s10960_s7 + $0x50] sm:$0xff]  ;;  %p673_p10 = scmp.lt.s32.totalorder %s7863_s30, 1  ;;  %vm5212_vm1 = vcmask 261120  }
  0x6a   : > { %7436 = vset.pattern.permute.xlu0 %v10962_v36  ;;  %7437 = vset.pattern.permute.xlu1 %v10962_v36  ;;  %v8301_v2 = vld [vmem:[%s10956_s3 + $0x8] sm:$0xff]   ;;  %v8310_v5 = vld [vmem:[%s10960_s7 + $0x58] sm:$0xff]  ;;  %v8315_v6 = vld [vmem:[%s10960_s7 + $0x40] sm:$0xff]  ;;  %vm7882_vm2 = vmmov 0   ;;  %s678_s21 = smul.u32 9, %s7859_s29 }
  0x6b   : > { %s8234_s17 = scalar_lea.vmem [#allocation3], %s8227_s16  ;;  %833 = vperm.xlu0 %7436, %v8261_v55   ;;  %823 = vperm.xlu1 %7437, %v8267_v57   ;;  %v8329_v10 = vld [vmem:[%s10956_s3 + $0x10] sm:$0xff]   ;;  %v8337_v12 = vld [vmem:[%s10960_s7 + $0x48] sm:$0xff]  ;;  %v8350_v17 = vld [vmem:[%s10960_s7 + $0x38] sm:$0xff]  ;;  %s8365_s20 = scalar_lea.vmem [#allocation4], %s8227_s16 }
  0x6c   : > { %v7443_v37 = vld [vmem:[%s8234_s17 + $0xdc] ss:$36 sps:$4 sm:$0xff]   ;;  %v7445_v38 = vld [vmem:[%s8234_s17 + $0xe4] ss:$36 sps:$4 sm:$0xff]   ;;  %v7449_v41 = vld [vmem:[%s8234_s17 + $0x94] ss:$36 sps:$4 sm:$0xff]  }
  0x6d   : > { %1098 = vmatprep.subr.bf16.mxu0 %v7443_v37  ;;  %v7447_v39 = vld [vmem:[%s8234_s17 + $0xd8] ss:$36 sps:$4 sm:$0xff]   ;;  %v7448_v40 = vld [vmem:[%s8234_s17 + $0xe0] ss:$36 sps:$4 sm:$0xff]   ;;  %1211 = vmatprep.subr.bf16.mxu1 %v7445_v38  ;;  %v7453_v43 = vld [vmem:[%s8234_s17 + $0x90] ss:$36 sps:$4 sm:$0xff]  }
  0x6e   : > { %1099 = vmatpush1.bf16.msra.mxu0 %v7447_v39  ;;  %1212 = vmatpush1.bf16.msra.mxu1 %v7448_v40  ;;  %v7451_v42 = vld [vmem:[%s8234_s17 + $0x9c] ss:$36 sps:$4 sm:$0xff]   ;;  %v7455_v45 = vld [vmem:[%s8234_s17 + $0x4c] ss:$36 sps:$4 sm:$0xff]   ;;  %v7457_v46 = vld [vmem:[%s8234_s17 + $0x54] ss:$36 sps:$4 sm:$0xff]  }
  0x6f   : > { %1100 = vmatprep.subr.bf16.mxu0 %v7449_v41  ;;  %v7454_v44 = vld [vmem:[%s8234_s17 + $0x98] ss:$36 sps:$4 sm:$0xff]   ;;  %1213 = vmatprep.subr.bf16.mxu1 %v7451_v42  ;;  %v7459_v47 = vld [vmem:[%s8234_s17 + $0x48] ss:$36 sps:$4 sm:$0xff]   ;;  %v7460_v48 = vld [vmem:[%s8234_s17 + $0x50] ss:$36 sps:$4 sm:$0xff]  }
  0x70   : > { %v7461_v49 = vld [vmem:[%s8234_s17 + $0x4] ss:$36 sps:$4 sm:$0xff]   ;;  %v7463_v50 = vld [vmem:[%s8234_s17 + $0xc] ss:$36 sps:$4 sm:$0xff]   ;;  %v7482_v60 = vld [vmem:[%s8234_s17 + $0xf4] ss:$36 sps:$4 sm:$0xff]   ;;  %838 = vperm.xlu0 %7436, %v8274_v59   ;;  %828 = vperm.xlu1 %7437, %v8288_v62  }
  0x71   : > { %v7465_v51 = vld [vmem:[%s8234_s17] ss:$36 sps:$4 sm:$0xff]   ;;  %v7466_v52 = vld [vmem:[%s8234_s17 + $0x8] ss:$36 sps:$4 sm:$0xff]   ;;  %v7480_v61 = vld [vmem:[%s8234_s17 + $0xf0] ss:$36 sps:$4 sm:$0xff]  }
  0x72   : > { %1101 = vmatpush1.bf16.msra.mxu0 %v7453_v43  ;;  %1214 = vmatpush1.bf16.msra.mxu1 %v7454_v44  ;;  %v7473_v53 = vld [vmem:[%s8234_s17 + $0xec] ss:$36 sps:$4 sm:$0xff]   ;;  %v7478_v58 = vld [vmem:[%s8234_s17 + $0xa4] ss:$36 sps:$4 sm:$0xff]   ;;  %v7489_v3 = vld [vmem:[%s8234_s17 + $0x5c] ss:$36 sps:$4 sm:$0xff]  }
  0x73   : > { %1102 = vmatprep.subr.bf16.mxu0 %v7455_v45  ;;  %1215 = vmatprep.subr.bf16.mxu1 %v7457_v46  ;;  %v7471_v56 = vld [vmem:[%s8234_s17 + $0xe8] ss:$36 sps:$4 sm:$0xff]   ;;  %v7476_v0 = vld [vmem:[%s8234_s17 + $0xa0] ss:$36 sps:$4 sm:$0xff]   ;;  %v7487_v7 = vld [vmem:[%s8234_s17 + $0x58] ss:$36 sps:$4 sm:$0xff]  }
  0x74   : > { %v7485_v63 = vld [vmem:[%s8234_s17 + $0xac] ss:$36 sps:$4 sm:$0xff]   ;;  %813 = vperm.xlu0 %7436, %v8296_v1   ;;  %v7492_v8 = vld [vmem:[%s8234_s17 + $0x64] ss:$36 sps:$4 sm:$0xff]   ;;  %v7495_v9 = vld [vmem:[%s8234_s17 + $0x14] ss:$36 sps:$4 sm:$0xff]   ;;  %818 = vperm.xlu1 %7437, %v8310_v5  }
  0x75   : > { %v7483_v4 = vld [vmem:[%s8234_s17 + $0xa8] ss:$36 sps:$4 sm:$0xff]   ;;  %v7490_v11 = vld [vmem:[%s8234_s17 + $0x60] ss:$36 sps:$4 sm:$0xff]   ;;  %v8342_v13 = vld [vmem:[%s10960_s7 + $0x30] sm:$0xff]  ;;  %s11599_s30 = smov (!%p673_p10, %s7863_s30), 1 }
  0x76   : > { %1103 = vmatpush1.bf16.msra.mxu0 %v7459_v47  ;;  %1216 = vmatpush1.bf16.msra.mxu1 %v7460_v48  ;;  %v7493_v14 = vld [vmem:[%s8234_s17 + $0x10] ss:$36 sps:$4 sm:$0xff]   ;;  %v7498_v15 = vld [vmem:[%s8234_s17 + $0x1c] ss:$36 sps:$4 sm:$0xff]   ;;  %v8372_v20 = vld [vmem:[%s10960_s7 + $0x28] sm:$0xff]  ;;  %s7372_s16 = smul.u32 144, %s606_s15 }
  0x77   : > { %1104 = vmatprep.subr.bf16.mxu0 %v7461_v49  ;;  %1217 = vmatprep.subr.bf16.mxu1 %v7463_v50  ;;  %v7496_v16 = vld [vmem:[%s8234_s17 + $0x18] ss:$36 sps:$4 sm:$0xff]   ;;  %v8357_v18 = vld [vmem:[%s10960_s7 + $0x20] sm:$0xff]  ;;  %v8383_v22 = vld [vmem:[%s10960_s7 + $0x10] sm:$0xff]  ;;  %p681_p11 = scmp.lt.s32.totalorder %s678_s21, 17  ;;  %s7373_s22 = smul.u32 18, %s11599_s30 }
  0x78   : > { %803 = vperm.xlu0 %7436, %v8315_v6   ;;  %808 = vperm.xlu1 %7437, %v8337_v12   ;;  %v7499_v19 = vld [vmem:[%s8234_s17 + $0xf8] ss:$36 sps:$4 sm:$0xff]   ;;  %v8395_v24 = vld [vmem:[%s10960_s7] sm:$0xff]  ;;  %v8409_v25 = vld [vmem:[%s10960_s7 + $0x8] sm:$0xff]  ;;  %s8585_s26 = scalar_lea.vmem [#allocation5], %s7372_s16 }
  0x79   : > { %v8377_v21 = vld [vmem:[%s10956_s3 + $0x18] sm:$0xff]   ;;  %v8414_v26 = vld [vmem:[%s10956_s3 + $0x20] sm:$0xff]   ;;  %v7475_v27 = vld [vmem:[%s10956_s3 + $0x28] sm:$0xff]   ;;  %s11601_s21 = smov (!%p681_p11, %s678_s21), 17 }
  0x7a   : > { %1105 = vmatpush1.bf16.msra.mxu0 %v7465_v51  ;;  %1218 = vmatpush1.bf16.msra.mxu1 %v7466_v52  ;;  %v8389_v23 = vld [vmem:[%s10960_s7 + $0x18] sm:$0xff]  ;;  %v7479_v28 = vld [vmem:[%s10956_s3 + $0x30] sm:$0xff]   ;;  %v7501_v31 = vld [vmem:[%s8234_s17 + $0x68] ss:$36 sps:$4 sm:$0xff]   ;;  %s684_s29 = sadd.s32 %s7373_s22, %s11601_s21 }
  0x7b   : > { %1324 = vmatprep.subr.bf16.mxu0 %v7473_v53  ;;  %1437 = vmatprep.subr.bf16.mxu1 %v7482_v60  ;;  %v7486_v29 = vld [vmem:[%s10956_s3 + $0x38] sm:$0xff]   ;;  %v7500_v30 = vld [vmem:[%s8234_s17 + $0xb0] ss:$36 sps:$4 sm:$0xff]   ;;  %v7502_v32 = vld [vmem:[%s8234_s17 + $0x20] ss:$36 sps:$4 sm:$0xff]   ;;  %s7139_s17 = sshll.u32 %s11599_s30, 7 }
  0x7c   : > { %793 = vperm.xlu0 %7436, %v8342_v13   ;;  %798 = vperm.xlu1 %7437, %v8350_v17   ;;  %v8513_v40 = vld [vmem:[%s8365_s20 + $0xd8] sm:$0xff]  ;;  %v8519_v42 = vld [vmem:[%s8365_s20 + $0xe0] sm:$0xff]  ;;  %v8535_v49 = vld [vmem:[%s8365_s20 + $0x90] sm:$0xff]  ;;  %s8570_s25 = scalar_lea.vmem %s10957_s4, %s7139_s17  ;;  %s6582_s17 = sshll.u32 %s684_s29, 3 }
  0x7d   : > { %6627 = vmatmul.mubr.msk.bf16.vlgmr.msra.gmra.mxu0 %vm1065_vm0, %v8256_v54  ;;  %6635 = vmatmul.mubr.msk.bf16.vlgmr.msra.gmra.mxu1 %vm1065_vm0, %v8256_v54  ;;  %11142 = vst [vmem:[#allocation12_spill] sm:$0xff] %v8513_v40  ;;  %v8516_v41 = vld [vmem:[%s8365_s20 + $0xfc] sm:$0xff]  ;;  %11144 = vst [vmem:[#allocation14_spill] sm:$0xff] %v8519_v42  ;;  %v8526_v45 = vld [vmem:[%s8365_s20 + $0x104] sm:$0xff] }
  0x7e   : > { %1132 = vmatprep.mubr.bf16.mxu0 %v10962_v36  ;;  %1245 = vmatprep.mubr.bf16.mxu1 %v10962_v36  ;;  %11143 = vst [vmem:[#allocation13_spill] sm:$0xff] %v8516_v41  ;;  %11146 = vst [vmem:[#allocation16_spill] sm:$0xff] %v8526_v45  ;;  %v8538_v50 = vld [vmem:[%s8365_s20 + $0xb4] sm:$0xff]  ;;  %v8546_v53 = vld [vmem:[%s8365_s20 + $0xbc] sm:$0xff] }
  0x7f   : > { %1325 = vmatpush1.bf16.msra.mxu0 %v7471_v56  ;;  %1438 = vmatpush1.bf16.msra.mxu1 %v7480_v61  ;;  %11147 = vst [vmem:[#allocation17_spill] sm:$0xff] %v8535_v49  ;;  %11148 = vst [vmem:[#allocation18_spill] sm:$0xff] %v8538_v50  ;;  %v8541_v51 = vld [vmem:[%s8365_s20 + $0x98] sm:$0xff] }
  0x80   : > { %1326 = vmatprep.subr.bf16.mxu0 %v7478_v58  ;;  %1439 = vmatprep.subr.bf16.mxu1 %v7485_v63  ;;  %11149 = vst [vmem:[#allocation19_spill] sm:$0xff] %v8541_v51  ;;  %11150 = vst [vmem:[#allocation20_spill] sm:$0xff] %v8546_v53 }
  0x81   : > { %783 = vperm.xlu0 %7436, %v8357_v18   ;;  %788 = vperm.xlu1 %7437, %v8372_v20  }
  0x83   : > { %1327 = vmatpush1.bf16.msra.mxu0 %v7476_v0  ;;  %1440 = vmatpush1.bf16.msra.mxu1 %v7483_v4 }
  0x84   : > { %1328 = vmatprep.subr.bf16.mxu0 %v7489_v3  ;;  %1441 = vmatprep.subr.bf16.mxu1 %v7492_v8 }
  0x85   : > { %6628 = vmatmul.mubr.msk.bf16.gmra.mxu0 %vm1065_vm0, %v8301_v2  ;;  %6636 = vmatmul.mubr.msk.bf16.gmra.mxu1 %vm1065_vm0, %v8301_v2 }
  0x86   : > { %1142 = vmatprep.mubr.bf16.mxu0 %v10962_v36  ;;  %1255 = vmatprep.mubr.bf16.mxu1 %v10962_v36 }
  0x87   : > { %1329 = vmatpush1.bf16.msra.mxu0 %v7487_v7  ;;  %1442 = vmatpush1.bf16.msra.mxu1 %v7490_v11  ;;  %v4471_v11 = vld [vmem:[%s8585_s26 + $0x50] sm:$0xff] }
  0x88   : > { %1330 = vmatprep.subr.bf16.mxu0 %v7495_v9  ;;  %1443 = vmatprep.subr.bf16.mxu1 %v7498_v15  ;;  %v4470_v9 = vld [vmem:[%s8585_s26 + $0x48] sm:$0xff]  ;;  %4491 = vst [vmem:[#allocation2 + $0x290] sm:$0xff] %v4471_v11 }
  0x89   : > { %773 = vperm.xlu0 %7436, %v8383_v22   ;;  %778 = vperm.xlu1 %7437, %v8389_v23   ;;  %4490 = vst [vmem:[#allocation2 + $0x288] sm:$0xff] %v4470_v9 }
  0x8b   : > { %1331 = vmatpush1.bf16.msra.mxu0 %v7493_v14  ;;  %1444 = vmatpush1.bf16.msra.mxu1 %v7496_v16  ;;  %v4476_v16 = vld [vmem:[%s8585_s26 + $0x74] sm:$0xff] }
  0x8c   : > { %7321 = vmatprep.subr.bf16.mxu0 %v7499_v19  ;;  %4496 = vst [vmem:[#allocation2 + $0x2b4] sm:$0xff] %v4476_v16 }
  0x8d   : > { %6629 = vmatmul.mubr.msk.bf16.gmra.mxu0 %vm1065_vm0, %v8329_v10  ;;  %6637 = vmatmul.mubr.msk.bf16.gmra.mxu1 %vm1065_vm0, %v8329_v10 }
  0x8e   : > { %1152 = vmatprep.mubr.bf16.mxu0 %v10962_v36  ;;  %1265 = vmatprep.mubr.bf16.mxu1 %v10962_v36 }
  0x8f   : > { %763 = vperm.xlu0 %7436, %v8395_v24   ;;  %768 = vperm.xlu1 %7437, %v8409_v25  }
  0x95   : > { %6630 = vmatmul.mubr.msk.bf16.gmra.mxu0 %vm1065_vm0, %v8377_v21  ;;  %6638 = vmatmul.mubr.msk.bf16.gmra.mxu1 %vm1065_vm0, %v8377_v21 }
  0x96   : > { %1162 = vmatprep.mubr.bf16.mxu0 %v10962_v36  ;;  %1275 = vmatprep.mubr.bf16.mxu1 %v10962_v36 }
  0x9d   : > { %6631 = vmatmul.mubr.msk.bf16.gmra.mxu0 %vm1065_vm0, %v8414_v26  ;;  %6639 = vmatmul.mubr.msk.bf16.gmra.mxu1 %vm1065_vm0, %v8414_v26 }
  0x9e   : > { %1172 = vmatprep.mubr.bf16.mxu0 %v10962_v36  ;;  %1285 = vmatprep.mubr.bf16.mxu1 %v10962_v36 }
  0xa5   : > { %6632 = vmatmul.mubr.msk.bf16.gmra.mxu0 %vm1065_vm0, %v7475_v27  ;;  %6640 = vmatmul.mubr.msk.bf16.gmra.mxu1 %vm1065_vm0, %v7475_v27 }
  0xa6   : > { %1182 = vmatprep.mubr.bf16.mxu0 %v10962_v36  ;;  %1295 = vmatprep.mubr.bf16.mxu1 %v10962_v36 }
  0xad   : > { %6633 = vmatmul.mubr.msk.bf16.gmra.mxu0 %vm1065_vm0, %v7479_v28  ;;  %6641 = vmatmul.mubr.msk.bf16.gmra.mxu1 %vm1065_vm0, %v7479_v28 }
  0xae   : > { %1192 = vmatprep.mubr.bf16.mxu0 %v10962_v36  ;;  %1305 = vmatprep.mubr.bf16.mxu1 %v10962_v36 }
  0xb5   : > { %6634 = vmatmul.mubr.msk.bf16.gmra.mxu0 %vm1065_vm0, %v7486_v29  ;;  %6642 = vmatmul.mubr.msk.bf16.gmra.mxu1 %vm1065_vm0, %v7486_v29 }
  0xb6   : > { %1348 = vmatprep.mubr.bf16.mxu0 %v10962_v36  ;;  %1461 = vmatprep.mubr.bf16.mxu1 %v10962_v36 }
  0xbd   : > { %6643 = vmatmul.mubr.msk.bf16.vlgmr.msra.gmra.mxu0 %vm1065_vm0, %v8256_v54  ;;  %6651 = vmatmul.mubr.msk.bf16.vlgmr.msra.gmra.mxu1 %vm1065_vm0, %v8256_v54 }
  0xbe   : > { %1358 = vmatprep.mubr.bf16.mxu0 %v10962_v36  ;;  %1471 = vmatprep.mubr.bf16.mxu1 %v10962_v36 }
  0xbf   : > { %7322 = vmatpush3.bf16.msra.mxu0 %v7499_v19  ;;  %v4460_v19 = vld [vmem:[%s8585_s26] sm:$0xff] }
  0xc0   : > { %7323 = vmatprep.subr.bf16.mxu0 %v7500_v30  ;;  %4480 = vst [vmem:[#allocation2 + $0x240] sm:$0xff] %v4460_v19 }
  0xc3   : > { %7324 = vmatpush3.bf16.msra.mxu0 %v7500_v30 }
  0xc4   : > { %7325 = vmatprep.subr.bf16.mxu0 %v7501_v31 }
  0xc5   : > { %6644 = vmatmul.mubr.msk.bf16.gmra.mxu0 %vm1065_vm0, %v8301_v2  ;;  %6652 = vmatmul.mubr.msk.bf16.gmra.mxu1 %vm1065_vm0, %v8301_v2 }
  0xc6   : > { %1368 = vmatprep.mubr.bf16.mxu0 %v10962_v36  ;;  %1481 = vmatprep.mubr.bf16.mxu1 %v10962_v36 }
  0xc7   : > { %7326 = vmatpush3.bf16.msra.mxu0 %v7501_v31 }
  0xc8   : > { %7327 = vmatprep.subr.bf16.mxu0 %v7502_v32 }
  0xcb   : > { %7328 = vmatpush3.bf16.msra.mxu0 %v7502_v32 }
  0xcd   : > { %6645 = vmatmul.mubr.msk.bf16.gmra.mxu0 %vm1065_vm0, %v8329_v10  ;;  %6653 = vmatmul.mubr.msk.bf16.gmra.mxu1 %vm1065_vm0, %v8329_v10 }
  0xce   : > { %1378 = vmatprep.mubr.bf16.mxu0 %v10962_v36  ;;  %1491 = vmatprep.mubr.bf16.mxu1 %v10962_v36 }
  0xd5   : > { %6646 = vmatmul.mubr.msk.bf16.gmra.mxu0 %vm1065_vm0, %v8377_v21  ;;  %6654 = vmatmul.mubr.msk.bf16.gmra.mxu1 %vm1065_vm0, %v8377_v21 }
  0xd6   : > { %1388 = vmatprep.mubr.bf16.mxu0 %v10962_v36  ;;  %1501 = vmatprep.mubr.bf16.mxu1 %v10962_v36 }
  0xdd   : > { %6647 = vmatmul.mubr.msk.bf16.gmra.mxu0 %vm1065_vm0, %v8414_v26  ;;  %6655 = vmatmul.mubr.msk.bf16.gmra.mxu1 %vm1065_vm0, %v8414_v26 }
  0xde   : > { %1398 = vmatprep.mubr.bf16.mxu0 %v10962_v36  ;;  %1511 = vmatprep.mubr.bf16.mxu1 %v10962_v36 }
  0xe5   : > { %6648 = vmatmul.mubr.msk.bf16.gmra.mxu0 %vm1065_vm0, %v7475_v27  ;;  %6656 = vmatmul.mubr.msk.bf16.gmra.mxu1 %vm1065_vm0, %v7475_v27 }
  0xe6   : > { %1408 = vmatprep.mubr.bf16.mxu0 %v10962_v36  ;;  %1521 = vmatprep.mubr.bf16.mxu1 %v10962_v36  ;;  %v8499_v33 = vpop.permute.xlu0 %833  ;;  %v8502_v34 = vpop.permute.xlu1 %823 }
  0xe7   : > { %11136 = vst [vmem:[#allocation6_spill] sm:$0xff] %v8499_v33  ;;  %11137 = vst [vmem:[#allocation7_spill] sm:$0xff] %v8502_v34 }
  0xeb   : > { %v8504_v35 = vpop.permute.xlu0 %838  ;;  %v8506_v37 = vpop.permute.xlu1 %828 }
  0xec   : > { %11138 = vst [vmem:[#allocation8_spill] sm:$0xff] %v8504_v35  ;;  %11139 = vst [vmem:[#allocation9_spill] sm:$0xff] %v8506_v37 }
  0xed   : > { %6649 = vmatmul.mubr.msk.bf16.gmra.mxu0 %vm1065_vm0, %v7479_v28  ;;  %6657 = vmatmul.mubr.msk.bf16.gmra.mxu1 %vm1065_vm0, %v7479_v28 }
  0xee   : > { %1418 = vmatprep.mubr.bf16.mxu0 %v10962_v36  ;;  %1531 = vmatprep.mubr.bf16.mxu1 %v10962_v36 }
  0xef   : > { %v8508_v38 = vpop.permute.xlu0 %813  ;;  %v8510_v39 = vpop.permute.xlu1 %818 }
  0xf0   : > { %11140 = vst [vmem:[#allocation10_spill] sm:$0xff] %v8508_v38  ;;  %11141 = vst [vmem:[#allocation11_spill] sm:$0xff] %v8510_v39 }
  0xf3   : > { %v8521_v43 = vpop.permute.xlu0 %803 }
  0xf4   : > { %11145 = vst [vmem:[#allocation15_spill] sm:$0xff] %v8521_v43 }
  0xf5   : > { %6650 = vmatmul.mubr.msk.bf16.gmra.mxu0 %vm1065_vm0, %v7486_v29  ;;  %6658 = vmatmul.mubr.msk.bf16.gmra.mxu1 %vm1065_vm0, %v7486_v29 }
  0xf6   : > { %7329 = vmatprep.mubr.msk.bf16.mxu0 %vm1065_vm0, %v8256_v54  ;;  %v8548_v54 = vpop.permute.xlu1 %808 }
  0xf7   : > { %11151 = vst [vmem:[#allocation21_spill] sm:$0xff] %v8548_v54  ;;  %v8556_v61 = vpop.permute.xlu0 %793 }
  0xf8   : > { %11152 = vst [vmem:[#allocation22_spill] sm:$0xff] %v8556_v61 }
  0xfa   : > { %v8559_v63 = vpop.permute.xlu1 %798 }
  0xfb   : > { %11153 = vst [vmem:[#allocation23_spill] sm:$0xff] %v8559_v63 }
  0xfc   : > { %v8564_v0 = vpop.permute.xlu0 %783 }
  0xfd   : > { %7330 = vmatmul.mubr.msk.bf16.vlgmr.msra.gmra.mxu0 %vm1065_vm0, %v8301_v2  ;;  %v7523_v2 = vld [vmem:[%s8570_s25 + $0x4] ss:$8 sps:$4 sm:$0xff]  }
  0xfe   : > { %7333 = vmatprep.mubr.msk.bf16.mxu0 %vm1065_vm0, %v8329_v10  ;;  %v8573_v3 = vpop.permute.xlu1 %788  ;;  %6871 = vmatprep.mubr.msk.bf16.mxu1 %vm1065_vm0, %v7523_v2  ;;  %v4475_v10 = vld [vmem:[%s8585_s26 + $0x6c] sm:$0xff] }
  0xff   : > { %11154 = vst [vmem:[#allocation24_spill] sm:$0xff] %v8573_v3  ;;  %4495 = vst [vmem:[#allocation2 + $0x2ac] sm:$0xff] %v4475_v10 }
 0x104   : > { %v8577_v4 = vpop.permute.xlu0 %773  ;;  %v8581_v7 = vpop.permute.xlu1 %778 }
 0x105   : > { %7334 = vmatmul.mubr.msk.bf16.gmra.mxu0 %vm1065_vm0, %v8377_v21  ;;  %v4465_v21 = vld [vmem:[%s8585_s26 + $0x24] sm:$0xff] }
 0x106   : > { %7337 = vmatprep.mubr.msk.bf16.mxu0 %vm1065_vm0, %v8414_v26  ;;  %4485 = vst [vmem:[#allocation2 + $0x264] sm:$0xff] %v4465_v21 }
 0x10a   : > { %v8583_v8 = vpop.permute.xlu0 %763  ;;  %v8599_v10 = vpop.permute.xlu1 %768 }
 0x10d   : > { %7338 = vmatmul.mubr.msk.bf16.gmra.mxu0 %vm1065_vm0, %v7475_v27 }
 0x10e   : > { %7341 = vmatprep.mubr.msk.bf16.mxu0 %vm1065_vm0, %v7479_v28  ;;  %v4461_v28 = vld [vmem:[%s8585_s26 + $0x8] sm:$0xff] }
 0x10f   : > { %4481 = vst [vmem:[#allocation2 + $0x248] sm:$0xff] %v4461_v28 }
 0x115   : > { %7342 = vmatmul.mubr.msk.bf16.gmra.mxu0 %vm1065_vm0, %v7486_v29  ;;  %v4466_v29 = vld [vmem:[%s8585_s26 + $0x2c] sm:$0xff] }
 0x116   : > { %6879 = vmatprep.mubr.msk.bf16.mxu0 %vm1065_vm0, %v7523_v2  ;;  %4486 = vst [vmem:[#allocation2 + $0x26c] sm:$0xff] %v4466_v29 }
 0x13d   : > { %v1124_v14 = vpop.f32.mrf.mxu0  ;;  %v1237_v15 = vpop.f32.mrf.mxu1 }
 0x13e   : > { %v1125_v26 = vadd.f32 %v1124_v14, %v8583_v8  ;;  %v1238_v27 = vadd.f32 %v1237_v15, %v8583_v8 }
 0x13f   : > { %v1126_v30 = vpop.f32.mrf.mxu0  ;;  %v1239_v31 = vpop.f32.mrf.mxu1 }
 0x140   : > { %v1641_v32 = vmax.f32 %v1238_v27, 0.0  ;;  %v1127_v2 = vadd.f32 %v1126_v30, %v8583_v8  ;;  %v1240_v9 = vadd.f32 %v1239_v31, %v8583_v8  ;;  %v1639_v36 = vmax.f32 %v1125_v26, 0.0 }
 0x141   : > { %v1128_v11 = vpop.f32.mrf.mxu0  ;;  %v1241_v14 = vpop.f32.mrf.mxu1 }
 0x142   : > { %v1640_v15 = vmax.f32 %v1127_v2, 0.0  ;;  %v1642_v16 = vmax.f32 %v1240_v9, 0.0  ;;  %v1242_v19 = vadd.f32 %v1241_v14, %v8599_v10  ;;  %v1129_v21 = vadd.f32 %v1128_v11, %v8599_v10 }
 0x143   : > { %v1130_v58 = vpop.f32.mrf.mxu0  ;;  %v1243_v56 = vpop.f32.mrf.mxu1 }
 0x144   : > { %v1650_v28 = vmax.f32 %v1242_v19, 0.0  ;;  %v1131_v27 = vadd.f32 %v1130_v58, %v8599_v10  ;;  %v1244_v29 = vadd.f32 %v1243_v56, %v8599_v10  ;;  %v1648_v26 = vmax.f32 %v1129_v21, 0.0 }
 0x145   : > { %v1134_v30 = vpop.f32.mrf.mxu0  ;;  %v1247_v31 = vpop.f32.mrf.mxu1 }
 0x146   : > { %v1135_v60 = vadd.f32 %v1134_v30, %v8577_v4  ;;  %v1248_v52 = vadd.f32 %v1247_v31, %v8577_v4  ;;  %v1649_v2 = vmax.f32 %v1131_v27, 0.0  ;;  %v1651_v9 = vmax.f32 %v1244_v29, 0.0 }
 0x147   : > { %v1136_v47 = vpop.f32.mrf.mxu0  ;;  %v1249_v14 = vpop.f32.mrf.mxu1 }
 0x148   : > { %v1659_v46 = vmax.f32 %v1248_v52, 0.0  ;;  %v1137_v11 = vadd.f32 %v1136_v47, %v8577_v4  ;;  %v1250_v19 = vadd.f32 %v1249_v14, %v8577_v4  ;;  %v1657_v48 = vmax.f32 %v1135_v60, 0.0 }
 0x149   : > { %v1138_v58 = vpop.f32.mrf.mxu0  ;;  %v1251_v44 = vpop.f32.mrf.mxu1  ;;  %v8611_v27 = vpack.c.bf16 %v1649_v2, %v1640_v15  ;;  %v8613_v29 = vpack.c.bf16 %v1651_v9, %v1642_v16  ;;  %v8615_v52 = vpack.c.bf16 %v1648_v26, %v1639_v36  ;;  %v8617_v47 = vpack.c.bf16 %v1650_v28, %v1641_v32 }
 0x14a   : > { %v1658_v56 = vmax.f32 %v1137_v11, 0.0  ;;  %v1660_v53 = vmax.f32 %v1250_v19, 0.0  ;;  %v1139_v51 = vadd.f32 %v1138_v58, %v8581_v7  ;;  %v1252_v30 = vadd.f32 %v1251_v44, %v8581_v7 }
 0x14b   : > { %v1140_v31 = vpop.f32.mrf.mxu0  ;;  %v1253_v21 = vpop.f32.mrf.mxu1  ;;  %11155 = vst [vmem:[#allocation25_spill] sm:$0xff] %v8611_v27  ;;  %11156 = vst [vmem:[#allocation26_spill] sm:$0xff] %v8613_v29 }
 0x14c   : > { %11157 = vst [vmem:[#allocation27_spill] sm:$0xff] %v8615_v52  ;;  %11158 = vst [vmem:[#allocation28_spill] sm:$0xff] %v8617_v47  ;;  %v1668_v14 = vmax.f32 %v1252_v30, 0.0  ;;  %v1141_v60 = vadd.f32 %v1140_v31, %v8581_v7  ;;  %v1254_v11 = vadd.f32 %v1253_v21, %v8581_v7  ;;  %v1666_v58 = vmax.f32 %v1139_v51, 0.0 }
 0x14d   : > { %v1144_v19 = vpop.f32.mrf.mxu0  ;;  %v1257_v50 = vpop.f32.mrf.mxu1 }
 0x14e   : > { %v1667_v49 = vmax.f32 %v1141_v60, 0.0  ;;  %v1669_v44 = vmax.f32 %v1254_v11, 0.0  ;;  %v8625_v28 = vpack.c.bf16 %v1666_v58, %v1657_v48  ;;  %v8627_v26 = vpack.c.bf16 %v1668_v14, %v1659_v46 }
 0x14f   : > { %v1146_v45 = vpop.f32.mrf.mxu0  ;;  %v1259_v42 = vpop.f32.mrf.mxu1  ;;  %v8636_v46 = vadd.f32 %v1257_v50, %v8564_v0  ;;  %v8644_v14 = vadd.f32 %v1144_v19, %v8564_v0 }
 0x150   : > { %v8621_v36 = vpack.c.bf16 %v1667_v49, %v1658_v56  ;;  %v8623_v32 = vpack.c.bf16 %v1669_v44, %v1660_v53  ;;  %11161 = vst [vmem:[#allocation31_spill] sm:$0xff] %v8625_v28  ;;  %11162 = vst [vmem:[#allocation32_spill] sm:$0xff] %v8627_v26  ;;  %v7878_v56 = vmov 1   ;;  %v8639_v48 = vadd.f32 %v1259_v42, %v8564_v0  ;;  %v8667_v26 = vld [vmem:[%s8365_s20 + $0x10c] sm:$0xff] }
 0x151   : > { %v1148_v15 = vpop.f32.mrf.mxu0  ;;  %v1261_v2 = vpop.f32.mrf.mxu1  ;;  %7439 = vset.pattern.permute.xlu1 %v7878_v56  ;;  %7438 = vset.pattern.permute.xlu0 %v7878_v56  ;;  %11163 = vst [vmem:[#allocation33_spill] sm:$0xff] %v8636_v46  ;;  %11165 = vst [vmem:[#allocation35_spill] sm:$0xff] %v8644_v14  ;;  %v8704_v14 = vld [vmem:[%s8365_s20 + $0xc4] sm:$0xff] }
 0x152   : > { %11159 = vst [vmem:[#allocation29_spill] sm:$0xff] %v8621_v36  ;;  %11160 = vst [vmem:[#allocation30_spill] sm:$0xff] %v8623_v32  ;;  %2588 = vperm.xlu1 %7439, %v8274_v59   ;;  %2584 = vperm.xlu0 %7438, %v8261_v55   ;;  %v8652_v50 = vadd.f32 %v1261_v2, %v8573_v3  ;;  %v8660_v27 = vadd.f32 %v1148_v15, %v8573_v3  ;;  %v8670_v2 = vld [vmem:[%s8365_s20 + $0xf0] sm:$0xff] }
 0x153   : > { %v1150_v16 = vpop.f32.mrf.mxu0  ;;  %v1263_v9 = vpop.f32.mrf.mxu1  ;;  %11164 = vst [vmem:[#allocation34_spill] sm:$0xff] %v8639_v48  ;;  %11171 = vst [vmem:[#allocation41_spill] sm:$0xff] %v8667_v26  ;;  %v8682_v32 = vld [vmem:[%s8365_s20 + $0x114] sm:$0xff]  ;;  %v8685_v36 = vadd.f32 %v1146_v45, %v8564_v0 }
 0x154   : > { %v8649_v56 = vadd.f32 %v1150_v16, %v8573_v3  ;;  %11167 = vst [vmem:[#allocation37_spill] sm:$0xff] %v8652_v50  ;;  %v8655_v42 = vadd.f32 %v1263_v9, %v8573_v3  ;;  %11169 = vst [vmem:[#allocation39_spill] sm:$0xff] %v8660_v27  ;;  %v8664_v16 = vld [vmem:[%s8365_s20 + $0xe8] sm:$0xff] }
 0x155   : > { %v1154_v30 = vpop.f32.mrf.mxu0  ;;  %v1267_v31 = vpop.f32.mrf.mxu1  ;;  %11170 = vst [vmem:[#allocation40_spill] sm:$0xff] %v8664_v16  ;;  %11172 = vst [vmem:[#allocation42_spill] sm:$0xff] %v8670_v2  ;;  %v4478_v50 = vld [vmem:[%s8585_s26 + $0x84] sm:$0xff] }
 0x156   : > { %11166 = vst [vmem:[#allocation36_spill] sm:$0xff] %v8649_v56  ;;  %11168 = vst [vmem:[#allocation38_spill] sm:$0xff] %v8655_v42  ;;  %2576 = vperm.xlu1 %7439, %v8267_v57   ;;  %2580 = vperm.xlu0 %7438, %v8288_v62   ;;  %v8675_v28 = vadd.f32 %v1267_v31, %v8556_v61  ;;  %v8701_v62 = vld [vmem:[%s8365_s20 + $0xa0] sm:$0xff]  ;;  %v8708_v9 = vadd.f32 %v1154_v30, %v8556_v61 }
 0x157   : > { %v1156_v21 = vpop.f32.mrf.mxu0  ;;  %v1269_v51 = vpop.f32.mrf.mxu1  ;;  %11174 = vst [vmem:[#allocation44_spill] sm:$0xff] %v8682_v32  ;;  %11176 = vst [vmem:[#allocation46_spill] sm:$0xff] %v8701_v62  ;;  %v4472_v62 = vld [vmem:[%s8585_s26 + $0x58] sm:$0xff] }
 0x158   : > { %11173 = vst [vmem:[#allocation43_spill] sm:$0xff] %v8675_v28  ;;  %v8695_v19 = vadd.f32 %v1269_v51, %v8556_v61  ;;  %11177 = vst [vmem:[#allocation47_spill] sm:$0xff] %v8704_v14  ;;  %v8715_v51 = vld [vmem:[%s8365_s20 + $0xa8] sm:$0xff]  ;;  %v8723_v32 = vadd.f32 %v1156_v21, %v8556_v61 }
 0x159   : > { %v8629_v60 = vpop.f32.mrf.mxu0  ;;  %v1271_v11 = vpop.f32.mrf.mxu1  ;;  %11178 = vst [vmem:[#allocation48_spill] sm:$0xff] %v8715_v51  ;;  %4492 = vst [vmem:[#allocation2 + $0x298] sm:$0xff] %v4472_v62  ;;  %v4468_v62 = vld [vmem:[%s8585_s26 + $0x3c] sm:$0xff] }
 0x15a   : > { %v8698_v45 = vadd.f32 %v1271_v11, %v8559_v63  ;;  %2568 = vperm.xlu1 %7439, %v8296_v1   ;;  %v8718_v11 = vld [vmem:[%s8365_s20 + $0xcc] sm:$0xff]  ;;  %2572 = vperm.xlu0 %7438, %v8310_v5   ;;  %v8745_v61 = vadd.f32 %v8629_v60, %v8559_v63  ;;  %4498 = vst [vmem:[#allocation2 + $0x2c4] sm:$0xff] %v4478_v50  ;;  %4488 = vst [vmem:[#allocation2 + $0x27c] sm:$0xff] %v4468_v62 }
 0x15b   : > { %v1160_v41 = vpop.f32.mrf.mxu0  ;;  %v1273_v40 = vpop.f32.mrf.mxu1  ;;  %11179 = vst [vmem:[#allocation49_spill] sm:$0xff] %v8718_v11  ;;  %v4462_v11 = vld [vmem:[%s8585_s26 + $0x10] sm:$0xff] }
 0x15c   : > { %11175 = vst [vmem:[#allocation45_spill] sm:$0xff] %v8698_v45  ;;  %v8711_v57 = vadd.f32 %v1160_v41, %v8559_v63  ;;  %v8734_v2 = vadd.f32 %v1273_v40, %v8559_v63  ;;  %11181 = vst [vmem:[#allocation51_spill] sm:$0xff] %v8745_v61 }
 0x15d   : > { %v8631_v47 = vpop.f32.mrf.mxu0  ;;  %v1277_v52 = vpop.f32.mrf.mxu1  ;;  %4482 = vst [vmem:[#allocation2 + $0x250] sm:$0xff] %v4462_v11 }
 0x15e   : > { %11180 = vst [vmem:[#allocation50_spill] sm:$0xff] %v8734_v2  ;;  %v8737_v5 = vadd.f32 %v1277_v52, %v8521_v43  ;;  %2560 = vperm.xlu1 %7439, %v8315_v6   ;;  %2564 = vperm.xlu0 %7438, %v8337_v12   ;;  %v4477_v6 = vld [vmem:[%s8585_s26 + $0x7c] sm:$0xff]  ;;  %v8800_v50 = vadd.f32 %v8631_v47, %v8521_v43 }
 0x15f   : > { %v8633_v49 = vpop.f32.mrf.mxu0  ;;  %v1279_v53 = vpop.f32.mrf.mxu1  ;;  %4497 = vst [vmem:[#allocation2 + $0x2bc] sm:$0xff] %v4477_v6 }
 0x160   : > { %v8740_v46 = vadd.f32 %v1279_v53, %v8521_v43 }
 0x161   : > { %v8646_v58 = vpop.f32.mrf.mxu0  ;;  %v1281_v44 = vpop.f32.mrf.mxu1 }
 0x162   : > { %v8752_v52 = vadd.f32 %v1281_v44, %v8548_v54  ;;  %2552 = vperm.xlu1 %7439, %v8342_v13   ;;  %2556 = vperm.xlu0 %7438, %v8350_v17   ;;  %v4463_v13 = vld [vmem:[%s8585_s26 + $0x18] sm:$0xff] }
 0x163   : > { %v1170_v29 = vpop.f32.mrf.mxu0  ;;  %v1283_v59 = vpop.f32.mrf.mxu1  ;;  %4483 = vst [vmem:[#allocation2 + $0x258] sm:$0xff] %v4463_v13 }
 0x164   : > { %v8755_v53 = vadd.f32 %v1170_v29, %v8548_v54  ;;  %v8758_v21 = vadd.f32 %v1283_v59, %v8548_v54  ;;  %v4473_v29 = vld [vmem:[%s8585_s26 + $0x60] sm:$0xff] }
 0x165   : > { %v1174_v55 = vpop.f32.mrf.mxu0  ;;  %v1287_v15 = vpop.f32.mrf.mxu1  ;;  %4493 = vst [vmem:[#allocation2 + $0x2a0] sm:$0xff] %v4473_v29  ;;  %v8804_v29 = vadd.f32 %v8633_v49, %v8521_v43 }
 0x166   : > { %v8763_v60 = vadd.f32 %v1287_v15, %v8508_v38  ;;  %v8786_v63 = vadd.f32 %v1174_v55, %v8508_v38  ;;  %v4467_v55 = vld [vmem:[%s8585_s26 + $0x34] sm:$0xff]  ;;  %2544 = vperm.xlu1 %7439, %v8357_v18   ;;  %2548 = vperm.xlu0 %7438, %v8372_v20  }
 0x167   : > { %v1176_v26 = vpop.f32.mrf.mxu0  ;;  %v1289_v16 = vpop.f32.mrf.mxu1  ;;  %4487 = vst [vmem:[#allocation2 + $0x274] sm:$0xff] %v4467_v55 }
 0x168   : > { %v8766_v41 = vadd.f32 %v1289_v16, %v8508_v38  ;;  %v8779_v16 = vadd.f32 %v8646_v58, %v8548_v54  ;;  %v8792_v15 = vadd.f32 %v1176_v26, %v8508_v38 }
 0x169   : > { %v8725_v31 = vpop.f32.mrf.mxu0  ;;  %v8727_v30 = vpop.f32.mrf.mxu1 }
 0x16a   : > { %v8814_v49 = vadd.f32 %v8725_v31, %v8510_v39  ;;  %v8825_v13 = vadd.f32 %v8727_v30, %v8510_v39  ;;  %2536 = vperm.xlu1 %7439, %v8383_v22   ;;  %2540 = vperm.xlu0 %7438, %v8389_v23  }
 0x16b   : > { %v1180_v1 = vpop.f32.mrf.mxu0  ;;  %v8748_v14 = vpop.f32.mrf.mxu1 }
 0x16c   : > { %v8817_v59 = vadd.f32 %v1180_v1, %v8510_v39  ;;  %v8840_v47 = vadd.f32 %v8748_v14, %v8510_v39 }
 0x16d   : > { %v1184_v44 = vpop.f32.mrf.mxu0  ;;  %v1297_v40 = vpop.f32.mrf.mxu1 }
 0x16e   : > { %v8830_v31 = vadd.f32 %v1184_v44, %v8502_v34  ;;  %v8833_v1 = vadd.f32 %v1297_v40, %v8502_v34  ;;  %2528 = vperm.xlu1 %7439, %v8395_v24   ;;  %2532 = vperm.xlu0 %7438, %v8409_v25  }
 0x16f   : > { %v1186_v12 = vpop.f32.mrf.mxu0  ;;  %v1299_v51 = vpop.f32.mrf.mxu1 }
 0x170   : > { %v8820_v58 = vadd.f32 %v1186_v12, %v8502_v34  ;;  %v8836_v12 = vadd.f32 %v1299_v51, %v8502_v34 }
 0x171   : > { %v1188_v26 = vpop.f32.mrf.mxu0  ;;  %v1301_v6 = vpop.f32.mrf.mxu1 }
 0x172   : > { %v8843_v30 = vadd.f32 %v1301_v6, %v8506_v37  ;;  %v1748_v44 = vmax.f32 %v8820_v58, 0.0  ;;  %v8855_v38 = vadd.f32 %v1188_v26, %v8506_v37  ;;  %v1750_v26 = vmax.f32 %v8836_v12, 0.0 }
 0x173   : > { %v1190_v11 = vpop.f32.mrf.mxu0  ;;  %v1303_v55 = vpop.f32.mrf.mxu1 }
 0x174   : > { %v8846_v18 = vadd.f32 %v1190_v11, %v8506_v37  ;;  %v8849_v20 = vadd.f32 %v1303_v55, %v8506_v37 }
 0x175   : > { %v1194_v62 = vpop.f32.mrf.mxu0  ;;  %v1307_v17 = vpop.f32.mrf.mxu1 }
 0x176   : > { %v1308_v39 = vadd.f32 %v1307_v17, %v8499_v33  ;;  %v1195_v51 = vadd.f32 %v1194_v62, %v8499_v33  ;;  %v1759_v22 = vmax.f32 %v8849_v20, 0.0 }
 0x177   : > { %v1196_v14 = vpop.f32.mrf.mxu0  ;;  %v1309_v34 = vpop.f32.mrf.mxu1 }
 0x178   : > { %v1197_v11 = vadd.f32 %v1196_v14, %v8499_v33  ;;  %v1310_v55 = vadd.f32 %v1309_v34, %v8499_v33  ;;  %v1757_v34 = vmax.f32 %v8846_v18, 0.0  ;;  %v1767_v43 = vmax.f32 %v1308_v39, 0.0 }
 0x179   : > { %v1198_v37 = vpop.f32.mrf.mxu0  ;;  %v1311_v6 = vpop.f32.mrf.mxu1  ;;  %v1765_v17 = vmax.f32 %v1195_v51, 0.0 }
 0x17a   : > { %v1199_v23 = vadd.f32 %v1198_v37, %v8504_v35  ;;  %v1312_v40 = vadd.f32 %v1311_v6, %v8504_v35  ;;  %v1766_v62 = vmax.f32 %v1197_v11, 0.0  ;;  %v1768_v33 = vmax.f32 %v1310_v55, 0.0 }
 0x17b   : > { %v1200_v54 = vpop.f32.mrf.mxu0  ;;  %v1313_v58 = vpop.f32.mrf.mxu1  ;;  %v7725_v2 = vpack.c.bf16 %v1757_v34, %v1748_v44 }
 0x17c   : > { %v1201_v18 = vadd.f32 %v1200_v54, %v8504_v35  ;;  %v1314_v20 = vadd.f32 %v1313_v58, %v8504_v35  ;;  %v1774_v42 = vmax.f32 %v1199_v23, 0.0  ;;  %v1776_v12 = vmax.f32 %v1312_v40, 0.0 }
 0x17d   : > { %v1350_v14 = vpop.f32.mrf.mxu0  ;;  %v1463_v37 = vpop.f32.mrf.mxu1 }
 0x17e   : > { %v1351_v6 = vadd.f32 %v1350_v14, %v8583_v8  ;;  %v1464_v27 = vadd.f32 %v1463_v37, %v8583_v8  ;;  %v1775_v39 = vmax.f32 %v1201_v18, 0.0  ;;  %v1777_v11 = vmax.f32 %v1314_v20, 0.0 }
 0x17f   : > { %v1352_v55 = vpop.f32.mrf.mxu0  ;;  %v1465_v48 = vpop.f32.mrf.mxu1  ;;  %v7723_v28 = vpack.c.bf16 %v1774_v42, %v1765_v17  ;;  %v7724_v61 = vpack.c.bf16 %v1776_v12, %v1767_v43 }
 0x180   : > { %v1353_v24 = vadd.f32 %v1352_v55, %v8583_v8  ;;  %v1466_v25 = vadd.f32 %v1465_v48, %v8583_v8  ;;  %v1643_v51 = vmax.f32 %v1351_v6, 0.0  ;;  %v1645_v54 = vmax.f32 %v1464_v27, 0.0 }
 0x181   : > { %v1354_v56 = vpop.f32.mrf.mxu0  ;;  %v1467_v58 = vpop.f32.mrf.mxu1  ;;  %v7721_v18 = vpack.c.bf16 %v1775_v39, %v1766_v62  ;;  %v7722_v20 = vpack.c.bf16 %v1777_v11, %v1768_v33  ;;  %v1711_v48 = vmax.f32 %v8800_v50, 0.0  ;;  %v11202_v50 = vmax.f32 %v8695_v19, 0.0 }
 0x182   : > { %v1644_v35 = vmax.f32 %v1353_v24, 0.0  ;;  %v1646_v45 = vmax.f32 %v1466_v25, 0.0  ;;  %v1355_v14 = vadd.f32 %v1354_v56, %v8599_v10  ;;  %v1468_v37 = vadd.f32 %v1467_v58, %v8599_v10 }
 0x183   : > { %v1356_v23 = vpop.f32.mrf.mxu0  ;;  %v1469_v40 = vpop.f32.mrf.mxu1  ;;  %3239 = vmatprep.subr.bf16.mxu1 %v7721_v18  ;;  %3352 = vmatprep.subr.bf16.mxu0 %v7722_v20  ;;  %v7726_v56 = vpack.c.bf16 %v1759_v22, %v1750_v26  ;;  %v1712_v58 = vmax.f32 %v8804_v29, 0.0  ;;  %v11183_v22 = vmax.f32 %v8855_v38, 0.0 }
 0x184   : > { %v7142_v3 = vpack.c.bf16 %v1644_v35, %v1643_v51  ;;  %v7143_v55 = vpack.c.bf16 %v1646_v45, %v1645_v54  ;;  %v1357_v27 = vadd.f32 %v1356_v23, %v8599_v10  ;;  %v1470_v6 = vadd.f32 %v1469_v40, %v8599_v10  ;;  %3240 = vmatpush1.bf16.msra.mxu1 %v7723_v28 }
 0x185   : > { %v1360_v24 = vpop.f32.mrf.mxu0  ;;  %v1473_v25 = vpop.f32.mrf.mxu1  ;;  %3353 = vmatpush1.bf16.msra.mxu0 %v7724_v61  ;;  %v1652_v43 = vmax.f32 %v1355_v14, 0.0  ;;  %v1654_v42 = vmax.f32 %v1468_v37, 0.0  ;;  %3241 = vmatprep.subr.bf16.mxu1 %v7725_v2  ;;  %v11184_v28 = vmax.f32 %v8833_v1, 0.0  ;;  %v11185_v61 = vmax.f32 %v8843_v30, 0.0 }
 0x186   : > { %2233 = vst [vmem:[#allocation2 + $0x10] sm:$0xff] %v7142_v3  ;;  %2234 = vst [vmem:[#allocation2 + $0x18] sm:$0xff] %v7143_v55  ;;  %v1361_v33 = vadd.f32 %v1360_v24, %v8577_v4  ;;  %v1474_v35 = vadd.f32 %v1473_v25, %v8577_v4  ;;  %v1653_v45 = vmax.f32 %v1357_v27, 0.0  ;;  %v1655_v44 = vmax.f32 %v1470_v6, 0.0  ;;  %3354 = vmatprep.subr.bf16.mxu0 %v7726_v56 }
 0x187   : > { %v1362_v17 = vpop.f32.mrf.mxu0  ;;  %v1475_v34 = vpop.f32.mrf.mxu1  ;;  %v11182_v3 = vmax.f32 %v8830_v31, 0.0  ;;  %v7728_v62 = vpack.c.bf16 %v11185_v61, %v11184_v28  ;;  %v11186_v2 = vmax.f32 %v8792_v15, 0.0  ;;  %v11187_v14 = vmax.f32 %v8817_v59, 0.0 }
 0x188   : > { %v1363_v26 = vadd.f32 %v1362_v17, %v8577_v4  ;;  %v1476_v29 = vadd.f32 %v1475_v34, %v8577_v4  ;;  %v7147_v39 = vpack.c.bf16 %v1653_v45, %v1652_v43  ;;  %v7148_v11 = vpack.c.bf16 %v1655_v44, %v1654_v42 }
 0x189   : > { %v7727_v12 = vpack.c.bf16 %v11183_v22, %v11182_v3  ;;  %v1364_v51 = vpop.f32.mrf.mxu0  ;;  %v1477_v54 = vpop.f32.mrf.mxu1  ;;  %v7729_v37 = vpack.c.bf16 %v11187_v14, %v11186_v2  ;;  %v11188_v23 = vmax.f32 %v8766_v41, 0.0  ;;  %v11189_v31 = vmax.f32 %v8840_v47, 0.0  ;;  %3355 = vmatpush1.bf16.msra.mxu0 %v7728_v62 }
 0x18a   : > { %v1661_v40 = vmax.f32 %v1361_v33, 0.0  ;;  %v1663_v18 = vmax.f32 %v1474_v35, 0.0  ;;  %v1662_v1 = vmax.f32 %v1363_v26, 0.0  ;;  %v1664_v20 = vmax.f32 %v1476_v29, 0.0  ;;  %2238 = vst [vmem:[#allocation2 + $0x34] sm:$0xff] %v7147_v39  ;;  %2239 = vst [vmem:[#allocation2 + $0x3c] sm:$0xff] %v7148_v11 }
 0x18b   : > { %v7730_v38 = vpack.c.bf16 %v11189_v31, %v11188_v23  ;;  %3242 = vmatpush1.bf16.msra.mxu1 %v7727_v12  ;;  %v1693_v30 = vmax.f32 %v8708_v9, 0.0  ;;  %v1365_v15 = vadd.f32 %v1364_v51, %v8581_v7  ;;  %v1478_v59 = vadd.f32 %v1477_v54, %v8581_v7  ;;  %v1366_v55 = vpop.f32.mrf.mxu0  ;;  %v1479_v27 = vpop.f32.mrf.mxu1  ;;  %v11203_v31 = vld [vmem:[#allocation50_spill] sm:$0xff] }
 0x18c   : > { %3243 = vmatprep.subr.bf16.mxu1 %v7729_v37  ;;  %v7152_v41 = vpack.c.bf16 %v1662_v1, %v1661_v40  ;;  %v7153_v47 = vpack.c.bf16 %v1664_v20, %v1663_v18  ;;  %v11190_v6 = vmax.f32 %v8786_v63, 0.0  ;;  %v11191_v24 = vmax.f32 %v8814_v49, 0.0  ;;  %v11205_v18 = vld [vmem:[#allocation24_spill] sm:$0xff] }
 0x18d   : > { %3356 = vmatprep.subr.bf16.mxu0 %v7730_v38  ;;  %v11192_v56 = vmax.f32 %v8763_v60, 0.0  ;;  %v11193_v9 = vmax.f32 %v8825_v13, 0.0  ;;  %v1367_v35 = vadd.f32 %v1366_v55, %v8581_v7  ;;  %v1480_v43 = vadd.f32 %v1479_v27, %v8581_v7  ;;  %v1370_v42 = vpop.f32.mrf.mxu0  ;;  %v1483_v45 = vpop.f32.mrf.mxu1  ;;  %v11208_v27 = vld [vmem:[#allocation43_spill] sm:$0xff] }
 0x18e   : > { %v7731_v25 = vpack.c.bf16 %v11191_v24, %v11190_v6  ;;  %v11194_v44 = vmax.f32 %v8755_v53, 0.0  ;;  %v11195_v34 = vmax.f32 %v8740_v46, 0.0  ;;  %v11196_v63 = vmax.f32 %v8758_v21, 0.0  ;;  %2243 = vst [vmem:[#allocation2 + $0x58] sm:$0xff] %v7152_v41  ;;  %2244 = vst [vmem:[#allocation2 + $0x60] sm:$0xff] %v7153_v47  ;;  %v11210_v47 = vld [vmem:[#allocation45_spill] sm:$0xff] }
 0x18f   : > { %v7732_v33 = vpack.c.bf16 %v11193_v9, %v11192_v56  ;;  %v1676_v26 = vmax.f32 %v8685_v36, 0.0  ;;  %v1371_v60 = vadd.f32 %v1370_v42, %v8564_v0  ;;  %v1484_v13 = vadd.f32 %v1483_v45, %v8564_v0  ;;  %v1485_v12 = vpop.f32.mrf.mxu1  ;;  %v11214_v42 = vld [vmem:[#allocation34_spill] sm:$0xff] }
 0x190   : > { %v7733_v17 = vpack.c.bf16 %v11194_v44, %v1712_v58  ;;  %v7734_v49 = vpack.c.bf16 %v11196_v63, %v11195_v34  ;;  %3244 = vmatpush1.bf16.msra.mxu1 %v7731_v25  ;;  %v1670_v29 = vmax.f32 %v1365_v15, 0.0  ;;  %v1672_v3 = vmax.f32 %v1478_v59, 0.0  ;;  %v1372_v58 = vpop.f32.mrf.mxu0  ;;  %v11206_v15 = vld [vmem:[#allocation51_spill] sm:$0xff]  ;;  %v11216_v44 = vld [vmem:[#allocation38_spill] sm:$0xff] }
 0x191   : > { %3357 = vmatpush1.bf16.msra.mxu0 %v7732_v33  ;;  %v1671_v22 = vmax.f32 %v1367_v35, 0.0  ;;  %v1673_v53 = vmax.f32 %v1480_v43, 0.0  ;;  %v1373_v46 = vadd.f32 %v1372_v58, %v8564_v0  ;;  %v1486_v36 = vadd.f32 %v1485_v12, %v8564_v0  ;;  %v8940_v2 = vpop.f32.mrf.mxu1  ;;  %v11212_v33 = vld [vmem:[#allocation36_spill] sm:$0xff]  ;;  %v11224_v12 = vld [vmem:[#allocation37_spill] sm:$0xff] }
 0x192   : > { %3245 = vmatprep.subr.bf16.mxu1 %v7733_v17  ;;  %3358 = vmatprep.subr.bf16.mxu0 %v7734_v49  ;;  %v11197_v21 = vmax.f32 %v8779_v16, 0.0  ;;  %v11198_v61 = vmax.f32 %v8737_v5, 0.0  ;;  %v11199_v62 = vmax.f32 %v8752_v52, 0.0  ;;  %v1374_v54 = vpop.f32.mrf.mxu0  ;;  %v11200_v14 = vmax.f32 %v8723_v32, 0.0 }
 0x193   : > { %v7157_v11 = vpack.c.bf16 %v1671_v22, %v1670_v29  ;;  %v7158_v51 = vpack.c.bf16 %v1673_v53, %v1672_v3  ;;  %v11201_v37 = vmax.f32 %v8711_v57, 0.0  ;;  %v11204_v16 = vmax.f32 %v11203_v31, 0.0  ;;  %v8951_v32 = vpop.f32.mrf.mxu1  ;;  %v11222_v53 = vld [vmem:[#allocation33_spill] sm:$0xff] }
 0x194   : > { %v7735_v28 = vpack.c.bf16 %v11197_v21, %v1711_v48  ;;  %v7736_v39 = vpack.c.bf16 %v11199_v62, %v11198_v61  ;;  %v1679_v38 = vmax.f32 %v1371_v60, 0.0  ;;  %v1681_v5 = vmax.f32 %v1484_v13, 0.0  ;;  %v1376_v20 = vpop.f32.mrf.mxu0  ;;  %v11218_v13 = vld [vmem:[#allocation35_spill] sm:$0xff]  ;;  %v2350_v31 = vld [vmem:[%s8365_s20 + $0x11c] sm:$0xf] }
 0x195   : > { %v7737_v23 = vpack.c.bf16 %v11201_v37, %v11200_v14  ;;  %v7738_v48 = vpack.c.bf16 %v11204_v16, %v11202_v50  ;;  %v1680_v40 = vmax.f32 %v1373_v46, 0.0  ;;  %v1682_v52 = vmax.f32 %v1486_v36, 0.0  ;;  %2248 = vst [vmem:[#allocation2 + $0x7c] sm:$0xff] %v7157_v11  ;;  %2249 = vst [vmem:[#allocation2 + $0x84] sm:$0xff] %v7158_v51  ;;  %v8962_v9 = vpop.f32.mrf.mxu1  ;;  %v11226_v11 = vld [vmem:[#allocation29_spill] sm:$0xff]  ;;  %v11227_v51 = vld [vmem:[#allocation30_spill] sm:$0xff] }
 0x196   : > { %3246 = vmatpush1.bf16.msra.mxu1 %v7735_v28  ;;  %3359 = vmatpush1.bf16.msra.mxu0 %v7736_v39  ;;  %v1375_v1 = vadd.f32 %v1374_v54, %v11205_v18  ;;  %v11207_v59 = vmax.f32 %v11206_v15, 0.0  ;;  %v11209_v41 = vmax.f32 %v11208_v27, 0.0  ;;  %v11211_v6 = vmax.f32 %v11210_v47, 0.0  ;;  %v8960_v56 = vpop.f32.mrf.mxu0  ;;  %v11228_v37 = vld [vmem:[#allocation31_spill] sm:$0xff]  ;;  %v2345_v50 = vld [vmem:[%s8365_s20 + $0xf8] sm:$0xf] }
 0x197   : > { %3247 = vmatprep.subr.bf16.mxu1 %v7737_v23  ;;  %3360 = vmatprep.subr.bf16.mxu0 %v7738_v48  ;;  %v7162_v57 = vpack.c.bf16 %v1680_v40, %v1679_v38  ;;  %v7163_v19 = vpack.c.bf16 %v1682_v52, %v1681_v5  ;;  %v1377_v25 = vadd.f32 %v1376_v20, %v11205_v18  ;;  %v11213_v35 = vmax.f32 %v11212_v33, 0.0  ;;  %v8972_v60 = vpop.f32.mrf.mxu1  ;;  %v11229_v23 = vld [vmem:[#allocation32_spill] sm:$0xff]  ;;  %v11230_v38 = vld [vmem:[#allocation25_spill] sm:$0xff]  ;;  %v11231_v5 = vld [vmem:[#allocation26_spill] sm:$0xff] }
 0x198   : > { %v7739_v55 = vpack.c.bf16 %v11207_v59, %v1693_v30  ;;  %v7740_v24 = vpack.c.bf16 %v11211_v6, %v11209_v41  ;;  %v11215_v45 = vmax.f32 %v11214_v42, 0.0  ;;  %v11217_v17 = vmax.f32 %v11216_v44, 0.0  ;;  %v8970_v49 = vpop.f32.mrf.mxu0  ;;  %2385 = vst [vmem:[#allocation2 + $0x338] sm:$0xf] %v2345_v50  ;;  %2390 = vst [vmem:[#allocation2 + $0x35c] sm:$0xf] %v2350_v31 }
 0x199   : > { %v7741_v43 = vpack.c.bf16 %v11213_v35, %v1676_v26  ;;  %2253 = vst [vmem:[#allocation2 + $0xa0] sm:$0xff] %v7162_v57  ;;  %2254 = vst [vmem:[#allocation2 + $0xa8] sm:$0xff] %v7163_v19  ;;  %v1688_v30 = vmax.f32 %v1375_v1, 0.0  ;;  %v1689_v63 = vmax.f32 %v1377_v25, 0.0  ;;  %v11219_v29 = vmax.f32 %v11218_v13, 0.0  ;;  %v11220_v26 = vld [vmem:[#allocation39_spill] sm:$0xff]  ;;  %v8984_v61 = vpop.f32.mrf.mxu1 }
 0x19a   : > { %v7742_v34 = vpack.c.bf16 %v11217_v17, %v11215_v45  ;;  %3248 = vmatpush1.bf16.msra.mxu1 %v7739_v55  ;;  %3361 = vmatpush1.bf16.msra.mxu0 %v7740_v24  ;;  %v11221_v3 = vmax.f32 %v11220_v26, 0.0  ;;  %v11223_v58 = vmax.f32 %v11222_v53, 0.0  ;;  %v11225_v46 = vmax.f32 %v11224_v12, 0.0  ;;  %v8982_v28 = vpop.f32.mrf.mxu0  ;;  %v11232_v1 = vld [vmem:[#allocation27_spill] sm:$0xff]  ;;  %v11233_v20 = vld [vmem:[#allocation28_spill] sm:$0xff]  ;;  %v11235_v59 = vld [vmem:[#allocation13_spill] sm:$0xff] }
 0x19b   : > { %3249 = vmatprep.subr.bf16.mxu1 %v7741_v43  ;;  %v7167_v21 = vpack.c.bf16 %v1689_v63, %v1688_v30  ;;  %v8988_v39 = vpop.f32.mrf.mxu1  ;;  %v11234_v15 = vld [vmem:[#allocation12_spill] sm:$0xff]  ;;  %v11237_v27 = vld [vmem:[#allocation14_spill] sm:$0xff]  ;;  %v11242_v17 = vld [vmem:[#allocation17_spill] sm:$0xff] }
 0x19c   : > { %3362 = vmatprep.subr.bf16.mxu0 %v7742_v34  ;;  %v7743_v22 = vpack.c.bf16 %v11221_v3, %v11219_v29  ;;  %v7744_v36 = vpack.c.bf16 %v11225_v46, %v11223_v58  ;;  %v8986_v62 = vpop.f32.mrf.mxu0  ;;  %v11236_v55 = vcombine.high %v11234_v15, %v11235_v59  ;;  %v11238_v41 = vld [vmem:[#allocation16_spill] sm:$0xff]  ;;  %v11240_v35 = vcombine.low %v11234_v15, %v11235_v59  ;;  %v11243_v34 = vld [vmem:[#allocation18_spill] sm:$0xff]  ;;  %v11245_v63 = vld [vmem:[#allocation19_spill] sm:$0xff] }
 0x19d   : > { %2258 = vst [vmem:[#allocation2 + $0xc4] sm:$0xff] %v7167_v21  ;;  %v8994_v14 = vpop.f32.mrf.mxu1  ;;  %v11239_v47 = vcombine.high %v11237_v27, %v11238_v41  ;;  %v2335_v6 = vld [vmem:[%s8365_s20 + $0xb0] sm:$0xf]  ;;  %v2340_v24 = vld [vmem:[%s8365_s20 + $0xd4] sm:$0xf]  ;;  %v11241_v43 = vcombine.low %v11237_v27, %v11238_v41  ;;  %v11244_v30 = vcombine.high %v11242_v17, %v11243_v34  ;;  %v9086_v15 = vadd.f32 %v8940_v2, %v11205_v18 }
 0x19e   : > { %3250 = vmatpush1.bf16.msra.mxu1 %v7743_v22  ;;  %3363 = vmatpush1.bf16.msra.mxu0 %v7744_v36  ;;  %v8992_v54 = vpop.f32.mrf.mxu0  ;;  %2375 = vst [vmem:[#allocation2 + $0x2f0] sm:$0xf] %v2335_v6  ;;  %2380 = vst [vmem:[#allocation2 + $0x314] sm:$0xf] %v2340_v24  ;;  %v7511_v42 = vld [vmem:[%s8365_s20 + $0x4c] ss:$36 sps:$4 sm:$0xff]   ;;  %v11248_v36 = vcombine.low %v11242_v17, %v11243_v34 }
 0x19f   : > { %3251 = vmatprep.subr.bf16.mxu1 %v11226_v11  ;;  %3364 = vmatprep.subr.bf16.mxu0 %v11227_v51  ;;  %v9002_v48 = vpop.f32.mrf.mxu1  ;;  %v11246_v13 = vld [vmem:[#allocation20_spill] sm:$0xff]  ;;  %v2325_v3 = vld [vmem:[%s8365_s20 + $0x68] sm:$0xf]  ;;  %v2330_v22 = vld [vmem:[%s8365_s20 + $0x8c] sm:$0xf] }
 0x1a0   : > { %v9000_v16 = vpop.f32.mrf.mxu0  ;;  %v11247_v29 = vcombine.high %v11245_v63, %v11246_v13  ;;  %v7513_v26 = vld [vmem:[%s8365_s20 + $0x54] ss:$36 sps:$4 sm:$0xff]   ;;  %2365 = vst [vmem:[#allocation2 + $0x2a8] sm:$0xf] %v2325_v3  ;;  %2370 = vst [vmem:[#allocation2 + $0x2cc] sm:$0xf] %v2330_v22  ;;  %v11249_v21 = vcombine.low %v11245_v63, %v11246_v13 }
 0x1a1   : > { %v9008_v52 = vpop.f32.mrf.mxu1  ;;  %v7515_v12 = vld [vmem:[%s8365_s20 + $0x48] ss:$36 sps:$4 sm:$0xff]   ;;  %v7516_v46 = vld [vmem:[%s8365_s20 + $0x50] ss:$36 sps:$4 sm:$0xff]   ;;  %v2315_v51 = vld [vmem:[%s8365_s20 + $0x20] sm:$0xf] }
 0x1a2   : > { %3252 = vmatpush1.bf16.msra.mxu1 %v11228_v37  ;;  %3365 = vmatpush1.bf16.msra.mxu0 %v11229_v23  ;;  %v9006_v40 = vpop.f32.mrf.mxu0  ;;  %v7517_v11 = vld [vmem:[%s8365_s20 + $0x4] ss:$36 sps:$4 sm:$0xff]   ;;  %2355 = vst [vmem:[#allocation2 + $0x260] sm:$0xf] %v2315_v51  ;;  %v4479_v24 = vld [vmem:[%s8585_s26 + $0x8c] sm:$0xf] }
 0x1a3   : > { %3253 = vmatprep.subr.bf16.mxu1 %v11230_v38  ;;  %3366 = vmatprep.subr.bf16.mxu0 %v11231_v5  ;;  %v9014_v19 = vpop.f32.mrf.mxu1  ;;  %v2320_v37 = vld [vmem:[%s8365_s20 + $0x44] sm:$0xf]  ;;  %v4474_v6 = vld [vmem:[%s8585_s26 + $0x68] sm:$0xf]  ;;  %v9140_v13 = vld [vmem:[%s8570_s25 + $0x14] ss:$8 sps:$4 sm:$0xff]  }
 0x1a4   : > { %v9012_v57 = vpop.f32.mrf.mxu0  ;;  %v11250_v23 = vld [vmem:[#allocation22_spill] sm:$0xff]  ;;  %2360 = vst [vmem:[#allocation2 + $0x284] sm:$0xf] %v2320_v37  ;;  %v11258_v63 = vld [vmem:[#allocation21_spill] sm:$0xff]  ;;  %11259 = vst [vmem:[#allocation36_spill] sm:$0xff] %v9140_v13 }
 0x1a5   : > { %v9026_v33 = vpop.f32.mrf.mxu1  ;;  %v9065_v50 = vadd.f32 %v8960_v56, %v11250_v23  ;;  %v9069_v31 = vadd.f32 %v8970_v49, %v11250_v23  ;;  %v7521_v41 = vld [vmem:[%s8365_s20] ss:$36 sps:$4 sm:$0xff]   ;;  %v9107_v2 = vadd.f32 %v8962_v9, %v11250_v23  ;;  %v11264_v34 = vld [vmem:[#allocation7_spill] sm:$0xff]  ;;  %v11265_v37 = vld [vmem:[#allocation9_spill] sm:$0xff] }
 0x1a6   : > { %3254 = vmatpush1.bf16.msra.mxu1 %v11232_v1  ;;  %3367 = vmatpush1.bf16.msra.mxu0 %v11233_v20  ;;  %v9024_v25 = vpop.f32.mrf.mxu0  ;;  %v7519_v1 = vld [vmem:[%s8365_s20 + $0xc] ss:$36 sps:$4 sm:$0xff]   ;;  %v9127_v17 = vld [vmem:[%s8570_s25] ss:$8 sps:$4 sm:$0xff]  }
 0x1a7   : > { %3263 = vmatprep.subr.bf16.mxu1 %v11236_v55  ;;  %3376 = vmatprep.subr.bf16.mxu0 %v11239_v47  ;;  %v9037_v44 = vpop.f32.mrf.mxu1  ;;  %11251 = vst [vmem:[#allocation50_spill] sm:$0xff] %v9065_v50  ;;  %v11252_v20 = vld [vmem:[#allocation23_spill] sm:$0xff]  ;;  %11257 = vst [vmem:[#allocation45_spill] sm:$0xff] %v9127_v17  ;;  %v11261_v51 = vld [vmem:[#allocation10_spill] sm:$0xff] }
 0x1a8   : > { %v9035_v45 = vpop.f32.mrf.mxu0  ;;  %v9078_v56 = vadd.f32 %v8982_v28, %v11252_v20  ;;  %v9082_v49 = vadd.f32 %v8984_v61, %v11252_v20  ;;  %v9090_v59 = vadd.f32 %v8986_v62, %v11252_v20  ;;  %v9094_v55 = vadd.f32 %v8988_v39, %v11252_v20  ;;  %v11256_v62 = vld [vmem:[#allocation15_spill] sm:$0xff] }
 0x1a9   : > { %v9050_v58 = vpop.f32.mrf.mxu1  ;;  %v9103_v61 = vadd.f32 %v8951_v32, %v11205_v18  ;;  %v9111_v47 = vadd.f32 %v8992_v54, %v11256_v62  ;;  %v7522_v39 = vld [vmem:[%s8365_s20 + $0x8] ss:$36 sps:$4 sm:$0xff]   ;;  %v9124_v9 = vadd.f32 %v9000_v16, %v11256_v62  ;;  %v9137_v16 = vadd.f32 %v9008_v52, %v11258_v63  ;;  %v4464_v52 = vld [vmem:[%s8585_s26 + $0x20] sm:$0xf] }
 0x1aa   : > { %3264 = vmatpush2.bf16.msra.mxu1 %v11240_v35  ;;  %3377 = vmatpush2.bf16.msra.mxu0 %v11241_v43  ;;  %v9048_v53 = vpop.f32.mrf.mxu0  ;;  %11253 = vst [vmem:[#allocation24_spill] sm:$0xff] %v9078_v56  ;;  %11254 = vst [vmem:[#allocation51_spill] sm:$0xff] %v9082_v49  ;;  %v9120_v43 = vadd.f32 %v8972_v60, %v11250_v23  ;;  %v9133_v60 = vadd.f32 %v9006_v40, %v11258_v63 }
 0x1ab   : > { %3265 = vmatprep.subr.bf16.mxu1 %v11244_v30  ;;  %3378 = vmatprep.subr.bf16.mxu0 %v11247_v29  ;;  %v9073_v5 = vpop.f32.mrf.mxu1  ;;  %11255 = vst [vmem:[#allocation43_spill] sm:$0xff] %v9094_v55  ;;  %v9142_v29 = vld [vmem:[#allocation2 + $0x2a8] ss:$36 sps:$4 sm:$0xff]   ;;  %v9148_v22 = vadd.f32 %v8994_v14, %v11256_v62  ;;  %v9152_v40 = vadd.f32 %v9012_v57, %v11258_v63 }
 0x1ac   : > { %v9071_v38 = vpop.f32.mrf.mxu0  ;;  %11260 = vst [vmem:[#allocation34_spill] sm:$0xff] %v9142_v29  ;;  %4494 = vst [vmem:[#allocation2 + $0x2a8] sm:$0xf] %v4474_v6  ;;  %v9165_v14 = vadd.f32 %v9024_v25, %v11261_v51  ;;  %v9169_v57 = vadd.f32 %v9035_v45, %v11261_v51  ;;  %v11262_v6 = vld [vmem:[#allocation11_spill] sm:$0xff]  ;;  %v9184_v45 = vld [vmem:[#allocation2 + $0x260] ss:$36 sps:$4 sm:$0xff]  }
 0x1ad   : > { %v9098_v28 = vpop.f32.mrf.mxu1  ;;  %4499 = vst [vmem:[#allocation2 + $0x2cc] sm:$0xf] %v4479_v24  ;;  %v9182_v25 = vadd.f32 %v9048_v53, %v11262_v6  ;;  %11263 = vst [vmem:[#allocation38_spill] sm:$0xff] %v9184_v45  ;;  %v9198_v53 = vadd.f32 %v9026_v33, %v11261_v51  ;;  %v9202_v3 = vadd.f32 %v9071_v38, %v11262_v6  ;;  %v11266_v33 = vld [vmem:[#allocation6_spill] sm:$0xff] }
 0x1ae   : > { %3266 = vmatpush2.bf16.msra.mxu1 %v11248_v36  ;;  %3379 = vmatpush2.bf16.msra.mxu0 %v11249_v21  ;;  %v9096_v27 = vpop.f32.mrf.mxu0  ;;  %v4469_v36 = vld [vmem:[%s8585_s26 + $0x44] sm:$0xf]  ;;  %4484 = vst [vmem:[#allocation2 + $0x260] sm:$0xf] %v4464_v52 }
 0x1af   : > { %3267 = vmatprep.subr.bf16.mxu1 %v7511_v42  ;;  %3380 = vmatprep.subr.bf16.mxu0 %v7513_v26  ;;  %v1525_v42 = vpop.f32.mrf.mxu1  ;;  %4489 = vst [vmem:[#allocation2 + $0x284] sm:$0xf] %v4469_v36  ;;  %v9206_v26 = vadd.f32 %v9073_v5, %v11262_v6  ;;  %v9215_v38 = vadd.f32 %v9096_v27, %v11264_v34  ;;  %v11269_v36 = vld [vmem:[#allocation8_spill] sm:$0xff] }
 0x1b0   : > { %v1412_v54 = vpop.f32.mrf.mxu0 }
 0x1b1   : > { %v9193_v35 = vadd.f32 %v1412_v54, %v11264_v34 }
 0x1b2   : > { %3268 = vmatpush2.bf16.msra.mxu1 %v7515_v12  ;;  %3381 = vmatpush2.bf16.msra.mxu0 %v7516_v46  ;;  %v1414_v12 = vpop.f32.mrf.mxu0  ;;  %v9154_v46 = vpop.f32.mrf.mxu1 }
 0x1b3   : > { %3269 = vmatprep.subr.bf16.mxu1 %v7517_v11  ;;  %3382 = vmatprep.subr.bf16.mxu0 %v7519_v1  ;;  %v9161_v11 = vadd.f32 %v9014_v19, %v11258_v63  ;;  %v9174_v1 = vadd.f32 %v9002_v48, %v11256_v62  ;;  %v9178_v19 = vadd.f32 %v9037_v44, %v11261_v51 }
 0x1b4   : > { %v1416_v24 = vpop.f32.mrf.mxu0  ;;  %v1529_v30 = vpop.f32.mrf.mxu1  ;;  %v9190_v48 = vadd.f32 %v9050_v58, %v11262_v6  ;;  %v9233_v52 = vadd.f32 %v1414_v12, %v11265_v37 }
 0x1b5   : > { %v1417_v5 = vadd.f32 %v1416_v24, %v11265_v37  ;;  %v1530_v44 = vadd.f32 %v1529_v30, %v11265_v37  ;;  %v9257_v30 = vadd.f32 %v9154_v46, %v11265_v37 }
 0x1b6   : > { %3270 = vmatpush2.bf16.msra.mxu1 %v7521_v41  ;;  %3383 = vmatpush2.bf16.msra.mxu0 %v7522_v39  ;;  %v1420_v58 = vpop.f32.mrf.mxu0  ;;  %v1533_v32 = vpop.f32.mrf.mxu1  ;;  %v9225_v39 = vadd.f32 %v9098_v28, %v11264_v34  ;;  %v9228_v41 = vadd.f32 %v1525_v42, %v11264_v34  ;;  %v9248_v34 = vld [vmem:[%s8570_s25 + $0x24] ss:$8 sps:$4 sm:$0xff]  }
 0x1b7   : > { %v1421_v12 = vadd.f32 %v1420_v58, %v11266_v33  ;;  %v1534_v24 = vadd.f32 %v1533_v32, %v11266_v33  ;;  %11268 = vst [vmem:[#allocation39_spill] sm:$0xff] %v9248_v34  ;;  %v1761_v58 = vmax.f32 %v1417_v5, 0.0 }
 0x1b8   : > { %v1422_v27 = vpop.f32.mrf.mxu0  ;;  %v1535_v21 = vpop.f32.mrf.mxu1 }
 0x1b9   : > { %3272 = vmatmul.mubr.bf16.vlgmr.msra.gmra.mxu1 %v9127_v17  ;;  %3385 = vmatmul.mubr.bf16.vlgmr.msra.gmra.mxu0 %v9127_v17  ;;  %v1423_v45 = vadd.f32 %v1422_v27, %v11266_v33  ;;  %v1536_v42 = vadd.f32 %v1535_v21, %v11266_v33  ;;  %v9241_v17 = vld [vmem:[%s8570_s25 + $0x10] ss:$8 sps:$4 sm:$0xff]   ;;  %v1754_v27 = vmax.f32 %v9228_v41, 0.0  ;;  %v1771_v54 = vmax.f32 %v1534_v24, 0.0  ;;  %v9271_v24 = vld [vmem:[%s8570_s25 + $0x20] ss:$8 sps:$4 sm:$0xff]  }
 0x1ba   : > { %6872 = vmatprep.mubr.msk.bf16.mxu1 %vm1065_vm0, %v9140_v13  ;;  %6880 = vmatprep.mubr.msk.bf16.mxu0 %vm1065_vm0, %v9140_v13  ;;  %v1424_v29 = vpop.f32.mrf.mxu0  ;;  %v1537_v13 = vpop.f32.mrf.mxu1  ;;  %11267 = vst [vmem:[#allocation35_spill] sm:$0xff] %v9241_v17 }
 0x1bb   : > { %v1425_v21 = vadd.f32 %v1424_v29, %v11269_v36  ;;  %v1538_v49 = vadd.f32 %v1537_v13, %v11269_v36  ;;  %v1770_v32 = vmax.f32 %v1423_v45, 0.0  ;;  %v1772_v33 = vmax.f32 %v1536_v42, 0.0 }
 0x1bc   : > { %v1426_v56 = vpop.f32.mrf.mxu0  ;;  %v1539_v50 = vpop.f32.mrf.mxu1  ;;  %v1763_v13 = vmax.f32 %v1530_v44, 0.0  ;;  %v1769_v29 = vmax.f32 %v1421_v12, 0.0  ;;  %v1762_v42 = vmax.f32 %v9257_v30, 0.0 }
 0x1bd   : > { %v1427_v63 = vadd.f32 %v1426_v56, %v11269_v36  ;;  %v1540_v28 = vadd.f32 %v1539_v50, %v11269_v36  ;;  %v1778_v56 = vmax.f32 %v1425_v21, 0.0  ;;  %v1780_v46 = vmax.f32 %v1538_v49, 0.0 }
 0x1be   : > { %v7331_v41 = vpop.f32.mrf.mxu0 }
 0x1bf   : > { %v1585_v55 = vadd.f32 %v7331_v41, %v8577_v4  ;;  %v1779_v50 = vmax.f32 %v1427_v63, 0.0  ;;  %v1781_v45 = vmax.f32 %v1540_v28, 0.0  ;;  %v7747_v49 = vpack.c.bf16 %v1778_v56, %v1769_v29 }
 0x1c0   : > { %v1576_v5 = vpop.f32.mrf.mxu0  ;;  %v7748_v63 = vpack.c.bf16 %v1780_v46, %v1771_v54  ;;  %v11274_v56 = vmax.f32 %v9169_v57, 0.0  ;;  %v11275_v46 = vmax.f32 %v9202_v3, 0.0  ;;  %v11277_v57 = vmax.f32 %v9206_v26, 0.0  ;;  %v9310_v3 = vld [vmem:[%s8570_s25 + $0x44] ss:$8 sps:$4 sm:$0xff]  }
 0x1c1   : > { %3282 = vmatmul.mubr.bf16.gmra.mxu1 %v9241_v17  ;;  %3395 = vmatmul.mubr.bf16.gmra.mxu0 %v9241_v17  ;;  %v1665_v17 = vmax.f32 %v1585_v55, 0.0  ;;  %v1577_v44 = vadd.f32 %v1576_v5, %v8583_v8  ;;  %v7746_v21 = vpack.c.bf16 %v1781_v45, %v1772_v33  ;;  %v1735_v8 = vmax.f32 %v9198_v53, 0.0  ;;  %v9281_v5 = vld [vmem:[%s8570_s25 + $0x34] ss:$8 sps:$4 sm:$0xff]  }
 0x1c2   : > { %6873 = vmatprep.mubr.msk.bf16.mxu1 %vm1065_vm0, %v9248_v34  ;;  %6881 = vmatprep.mubr.msk.bf16.mxu0 %vm1065_vm0, %v9248_v34  ;;  %v7332_v12 = vpop.f32.mrf.mxu0  ;;  %v7745_v34 = vpack.c.bf16 %v1779_v50, %v1770_v32  ;;  %v7753_v50 = vpack.c.bf16 %v11275_v46, %v11274_v56  ;;  %v11278_v26 = vmax.f32 %v9165_v14, 0.0  ;;  %v11293_v46 = vld [vmem:[#allocation50_spill] sm:$0xff] }
 0x1c3   : > { %v7154_v4 = vpack.c.bf16 %v1665_v17, %v1665_v17  ;;  %v1647_v41 = vmax.f32 %v1577_v44, 0.0  ;;  %v1588_v37 = vadd.f32 %v7332_v12, %v8581_v7  ;;  %v11270_v17 = vmax.f32 %v9193_v35, 0.0  ;;  %3578 = vmatprep.subr.bf16.mxu0 %v7746_v21 }
 0x1c4   : > { %v1579_v36 = vpop.f32.mrf.mxu0  ;;  %3465 = vmatprep.subr.bf16.mxu1 %v7745_v34  ;;  %3579 = vmatpush1.bf16.msra.mxu0 %v7748_v63  ;;  %v11271_v34 = vmax.f32 %v9215_v38, 0.0 }
 0x1c5   : > { %2245 = vst [vmem:[#allocation2 + $0x68] sm:$0xf] %v7154_v4  ;;  %v7144_v28 = vpack.c.bf16 %v1647_v41, %v1647_v41  ;;  %v1674_v6 = vmax.f32 %v1588_v37, 0.0  ;;  %v1580_v55 = vadd.f32 %v1579_v36, %v8599_v10  ;;  %v7749_v7 = vpack.c.bf16 %v1761_v58, %v11270_v17  ;;  %3466 = vmatpush1.bf16.msra.mxu1 %v7747_v49 }
 0x1c6   : > { %v7335_v30 = vpop.f32.mrf.mxu0  ;;  %v7750_v10 = vpack.c.bf16 %v1763_v13, %v1754_v27  ;;  %v1718_v37 = vmax.f32 %v9174_v1, 0.0  ;;  %v11272_v27 = vmax.f32 %v9233_v52, 0.0  ;;  %v11273_v13 = vmax.f32 %v9225_v39, 0.0 }
 0x1c7   : > { %2235 = vst [vmem:[#allocation2 + $0x20] sm:$0xf] %v7144_v28  ;;  %v7159_v33 = vpack.c.bf16 %v1674_v6, %v1674_v6  ;;  %v1656_v54 = vmax.f32 %v1580_v55, 0.0  ;;  %v1601_v32 = vadd.f32 %v7335_v30, %v11250_v23  ;;  %3467 = vmatprep.subr.bf16.mxu1 %v7749_v7  ;;  %v1717_v6 = vmax.f32 %v9148_v22, 0.0 }
 0x1c8   : > { %v1592_v53 = vpop.f32.mrf.mxu0  ;;  %3580 = vmatprep.subr.bf16.mxu0 %v7750_v10  ;;  %v7751_v1 = vpack.c.bf16 %v11272_v27, %v11271_v34  ;;  %v7752_v29 = vpack.c.bf16 %v1762_v42, %v11273_v13  ;;  %v11276_v39 = vmax.f32 %v9178_v19, 0.0  ;;  %v1700_v42 = vmax.f32 %v9120_v43, 0.0  ;;  %v11290_v34 = vld [vmem:[#allocation43_spill] sm:$0xff]  ;;  %v11292_v13 = vld [vmem:[#allocation21_spill] sm:$0xff] }
 0x1c9   : > { %3292 = vmatmul.mubr.bf16.gmra.mxu1 %v9271_v24  ;;  %3405 = vmatmul.mubr.bf16.gmra.mxu0 %v9271_v24  ;;  %2250 = vst [vmem:[#allocation2 + $0x8c] sm:$0xf] %v7159_v33  ;;  %v7149_v36 = vpack.c.bf16 %v1656_v54, %v1656_v54  ;;  %v1701_v35 = vmax.f32 %v1601_v32, 0.0  ;;  %v1593_v58 = vadd.f32 %v1592_v53, %v8564_v0  ;;  %v9302_v0 = vld [vmem:[%s8570_s25 + $0x30] ss:$8 sps:$4 sm:$0xff]   ;;  %v11279_v43 = vmax.f32 %v9182_v25, 0.0 }
 0x1ca   : > { %v7336_v23 = vpop.f32.mrf.mxu0  ;;  %6874 = vmatprep.mubr.msk.bf16.mxu1 %vm1065_vm0, %v9281_v5  ;;  %6882 = vmatprep.mubr.msk.bf16.mxu0 %vm1065_vm0, %v9281_v5  ;;  %v7754_v45 = vpack.c.bf16 %v11277_v57, %v11276_v39  ;;  %v11280_v49 = vmax.f32 %v9190_v48, 0.0  ;;  %v11281_v28 = vmax.f32 %v9124_v9, 0.0  ;;  %v11283_v7 = vmax.f32 %v9161_v11, 0.0  ;;  %v11297_v39 = vld [vmem:[#allocation51_spill] sm:$0xff] }
 0x1cb   : > { %2240 = vst [vmem:[#allocation2 + $0x44] sm:$0xf] %v7149_v36  ;;  %v7174_v22 = vpack.c.bf16 %v1701_v35, %v1701_v35  ;;  %v1683_v52 = vmax.f32 %v1593_v58, 0.0  ;;  %v1604_v38 = vadd.f32 %v7336_v23, %v11252_v20  ;;  %3468 = vmatpush1.bf16.msra.mxu1 %v7751_v1  ;;  %3581 = vmatpush1.bf16.msra.mxu0 %v7752_v29  ;;  %v1699_v20 = vmax.f32 %v9107_v2, 0.0  ;;  %v9348_v35 = vld [vmem:[%s8570_s25 + $0x40] ss:$8 sps:$4 sm:$0xff]  }
 0x1cc   : > { %v1595_v44 = vpop.f32.mrf.mxu0  ;;  %3469 = vmatprep.subr.bf16.mxu1 %v7753_v50  ;;  %3582 = vmatprep.subr.bf16.mxu0 %v7754_v45  ;;  %v7755_v21 = vpack.c.bf16 %v11279_v43, %v11278_v26  ;;  %v7756_v63 = vpack.c.bf16 %v11280_v49, %v1735_v8  ;;  %v7758_v33 = vpack.c.bf16 %v11283_v7, %v1718_v37  ;;  %v1691_v9 = vmax.f32 %v9103_v61, 0.0  ;;  %v11301_v7 = vld [vmem:[#allocation8_spill] sm:$0xff] }
 0x1cd   : > { %2265 = vst [vmem:[#allocation2 + $0xf8] sm:$0xf] %v7174_v22  ;;  %v7164_v12 = vpack.c.bf16 %v1683_v52, %v1683_v52  ;;  %v1710_v4 = vmax.f32 %v1604_v38, 0.0  ;;  %v1596_v41 = vadd.f32 %v1595_v44, %v11205_v18  ;;  %v11282_v18 = vmax.f32 %v9152_v40, 0.0  ;;  %v11295_v22 = vld [vmem:[#allocation24_spill] sm:$0xff] }
 0x1ce   : > { %v7339_v19 = vpop.f32.mrf.mxu0  ;;  %v1690_v11 = vmax.f32 %v9086_v15, 0.0  ;;  %v11284_v8 = vmax.f32 %v9111_v47, 0.0  ;;  %v11285_v54 = vmax.f32 %v9133_v60, 0.0  ;;  %v11286_v61 = vmax.f32 %v9137_v16, 0.0  ;;  %v11289_v15 = vld [vmem:[#allocation11_spill] sm:$0xff] }
 0x1cf   : > { %v7757_v55 = vpack.c.bf16 %v11282_v18, %v11281_v28  ;;  %2255 = vst [vmem:[#allocation2 + $0xb0] sm:$0xf] %v7164_v12  ;;  %v7179_v2 = vpack.c.bf16 %v1710_v4, %v1710_v4  ;;  %v1692_v30 = vmax.f32 %v1596_v41, 0.0  ;;  %v1617_v17 = vadd.f32 %v7339_v19, %v11261_v51  ;;  %3470 = vmatpush1.bf16.msra.mxu1 %v7755_v21  ;;  %v9354_v60 = vld [vmem:[%s8570_s25 + $0x54] ss:$8 sps:$4 sm:$0xff]   ;;  %v2430_v16 = vld [vmem:[#allocation2 + $0xa8] sm:$0xff] }
 0x1d0   : > { %v1608_v14 = vpop.f32.mrf.mxu0  ;;  %3583 = vmatpush1.bf16.msra.mxu0 %v7756_v63  ;;  %v7759_v32 = vpack.c.bf16 %v11285_v54, %v11284_v8  ;;  %v7760_v10 = vpack.c.bf16 %v11286_v61, %v1717_v6  ;;  %v11287_v37 = vmax.f32 %v9069_v31, 0.0  ;;  %v11288_v53 = vmax.f32 %v9090_v59, 0.0  ;;  %v11299_v12 = vld [vmem:[#allocation6_spill] sm:$0xff]  ;;  %v11300_v21 = vld [vmem:[#allocation7_spill] sm:$0xff]  ;;  %v9372_v63 = vld [vmem:[%s8570_s25 + $0x50] ss:$8 sps:$4 sm:$0xff]  }
 0x1d1   : > { %3302 = vmatmul.mubr.bf16.gmra.mxu1 %v9302_v0  ;;  %3415 = vmatmul.mubr.bf16.gmra.mxu0 %v9302_v0  ;;  %2270 = vst [vmem:[#allocation2 + $0x11c] sm:$0xf] %v7179_v2  ;;  %v7169_v40 = vpack.c.bf16 %v1692_v30, %v1692_v30  ;;  %v1737_v25 = vmax.f32 %v1617_v17, 0.0  ;;  %v1609_v51 = vadd.f32 %v1608_v14, %v11256_v62  ;;  %v11291_v47 = vmax.f32 %v11290_v34, 0.0  ;;  %v7538_v41 = vld [vmem:[#allocation2 + $0xa4] ss:$36 sps:$4 sm:$0xff]  }
 0x1d2   : > { %6875 = vmatprep.mubr.msk.bf16.mxu1 %vm1065_vm0, %v9310_v3  ;;  %6883 = vmatprep.mubr.msk.bf16.mxu0 %vm1065_vm0, %v9310_v3  ;;  %v7340_v48 = vpop.f32.mrf.mxu0  ;;  %v7761_v36 = vpack.c.bf16 %v11288_v53, %v11287_v37  ;;  %v7168_v31 = vpack.c.bf16 %v1691_v9, %v1690_v11  ;;  %v11294_v50 = vmax.f32 %v11293_v46, 0.0  ;;  %v11296_v52 = vmax.f32 %v11295_v22, 0.0  ;;  %v7540_v18 = vld [vmem:[#allocation2 + $0xa0] ss:$36 sps:$4 sm:$0xff]   ;;  %v11302_v11 = vld [vmem:[#allocation9_spill] sm:$0xff] }
 0x1d3   : > { %3471 = vmatprep.subr.bf16.mxu1 %v7757_v55  ;;  %3584 = vmatprep.subr.bf16.mxu0 %v7758_v33  ;;  %2260 = vst [vmem:[#allocation2 + $0xd4] sm:$0xf] %v7169_v40  ;;  %v7194_v62 = vpack.c.bf16 %v1737_v25, %v1737_v25  ;;  %v1719_v58 = vmax.f32 %v1609_v51, 0.0  ;;  %v1620_v23 = vadd.f32 %v7340_v48, %v11289_v15  ;;  %v11298_v57 = vmax.f32 %v11297_v39, 0.0  ;;  %v9375_v2 = vld [vmem:[%s8570_s25 + $0x64] ss:$8 sps:$4 sm:$0xff]  }
 0x1d4   : > { %v7762_v27 = vpack.c.bf16 %v11291_v47, %v1700_v42  ;;  %v1611_v1 = vpop.f32.mrf.mxu0  ;;  %3472 = vmatpush1.bf16.msra.mxu1 %v7759_v32  ;;  %3585 = vmatpush1.bf16.msra.mxu0 %v7760_v10  ;;  %v7763_v38 = vpack.c.bf16 %v11296_v52, %v11294_v50  ;;  %v6788_v19 = vcombine.high %v2430_v16, %v7168_v31  ;;  %v7541_v9 = vld [vmem:[#allocation2 + $0x5c] ss:$36 sps:$4 sm:$0xff]   ;;  %v7543_v14 = vld [vmem:[#allocation2 + $0x64] ss:$36 sps:$4 sm:$0xff]   ;;  %v7550_v10 = vld [vmem:[#allocation2 + $0x14] ss:$36 sps:$4 sm:$0xff]  }
 0x1d5   : > { %2285 = vst [vmem:[#allocation2 + $0x188] sm:$0xf] %v7194_v62  ;;  %v7184_v59 = vpack.c.bf16 %v1719_v58, %v1719_v58  ;;  %v1746_v6 = vmax.f32 %v1620_v23, 0.0  ;;  %v1612_v29 = vadd.f32 %v1611_v1, %v11292_v13  ;;  %3473 = vmatprep.subr.bf16.mxu1 %v7761_v36  ;;  %v7764_v45 = vpack.c.bf16 %v11298_v57, %v1699_v20  ;;  %v7548_v8 = vld [vmem:[#allocation2 + $0x58] ss:$36 sps:$4 sm:$0xff]   ;;  %v11303_v23 = vld [vmem:[#allocation40_spill] sm:$0xff] }
 0x1d6   : > { %3586 = vmatprep.subr.bf16.mxu0 %v7762_v27  ;;  %v7343_v56 = vpop.f32.mrf.mxu0  ;;  %v6787_v55 = vcombine.low %v2430_v16, %v7168_v31  ;;  %v7549_v54 = vld [vmem:[#allocation2 + $0x60] ss:$36 sps:$4 sm:$0xff]   ;;  %v7554_v62 = vld [vmem:[#allocation2 + $0x10] ss:$36 sps:$4 sm:$0xff]   ;;  %v7555_v58 = vld [vmem:[#allocation2 + $0x18] ss:$36 sps:$4 sm:$0xff]  }
 0x1d7   : > { %2275 = vst [vmem:[#allocation2 + $0x140] sm:$0xf] %v7184_v59  ;;  %v7199_v42 = vpack.c.bf16 %v1746_v6, %v1746_v6  ;;  %v1728_v44 = vmax.f32 %v1612_v29, 0.0  ;;  %v1633_v4 = vadd.f32 %v7343_v56, %v11299_v12  ;;  %v7552_v37 = vld [vmem:[#allocation2 + $0x1c] ss:$36 sps:$4 sm:$0xff]   ;;  %v11307_v1 = vld [vmem:[#allocation44_spill] sm:$0xff] }
 0x1d8   : > { %v1624_v26 = vpop.f32.mrf.mxu0  ;;  %3474 = vmatpush1.bf16.msra.mxu1 %v7763_v38  ;;  %3587 = vmatpush1.bf16.msra.mxu0 %v7764_v45  ;;  %v9386_v36 = vld [vmem:[%s8570_s25 + $0x60] ss:$8 sps:$4 sm:$0xff]   ;;  %v9389_v15 = vld [vmem:[%s8570_s25 + $0x74] ss:$8 sps:$4 sm:$0xff]   ;;  %v9418_v38 = vld [vmem:[%s8570_s25 + $0x70] ss:$8 sps:$4 sm:$0xff]  }
 0x1d9   : > { %3312 = vmatmul.mubr.bf16.gmra.mxu1 %v9348_v35  ;;  %3425 = vmatmul.mubr.bf16.gmra.mxu0 %v9348_v35  ;;  %2290 = vst [vmem:[#allocation2 + $0x1ac] sm:$0xf] %v7199_v42  ;;  %v7189_v20 = vpack.c.bf16 %v1728_v44, %v1728_v44  ;;  %v1773_v43 = vmax.f32 %v1633_v4, 0.0  ;;  %v1625_v49 = vadd.f32 %v1624_v26, %v11300_v21  ;;  %v11304_v34 = vld [vmem:[#allocation41_spill] sm:$0xff]  ;;  %v11306_v27 = vld [vmem:[#allocation42_spill] sm:$0xff]  ;;  %v11312_v13 = vld [vmem:[#allocation47_spill] sm:$0xff] }
 0x1da   : > { %6876 = vmatprep.mubr.msk.bf16.mxu1 %vm1065_vm0, %v9354_v60  ;;  %6884 = vmatprep.mubr.msk.bf16.mxu0 %vm1065_vm0, %v9354_v60  ;;  %v7344_v28 = vpop.f32.mrf.mxu0  ;;  %v11305_v47 = vcombine.high %v11303_v23, %v11304_v34  ;;  %v11308_v16 = vcombine.high %v11306_v27, %v11307_v1  ;;  %v11309_v31 = vcombine.low %v11303_v23, %v11304_v34  ;;  %v11311_v6 = vld [vmem:[#allocation46_spill] sm:$0xff]  ;;  %v11314_v56 = vld [vmem:[#allocation48_spill] sm:$0xff]  ;;  %v11315_v46 = vld [vmem:[#allocation49_spill] sm:$0xff]  ;;  %v11319_v26 = vmov 0  }
 0x1db   : > { %3475 = vmatprep.subr.bf16.mxu1 %v7538_v41  ;;  %3588 = vmatprep.subr.bf16.mxu0 %v6788_v19  ;;  %2280 = vst [vmem:[#allocation2 + $0x164] sm:$0xf] %v7189_v20  ;;  %v7214_v30 = vpack.c.bf16 %v1773_v43, %v1773_v43  ;;  %v1755_v17 = vmax.f32 %v1625_v49, 0.0  ;;  %v1636_v33 = vadd.f32 %v7344_v28, %v11301_v7  ;;  %v7570_v22 = vld [vmem:[%s8365_s20 + $0x5c] ss:$36 sps:$4 sm:$0xff]   ;;  %v11321_v21 = vld [vmem:[#allocation36_spill] sm:$0xff] }
 0x1dc   : > { %v1627_v40 = vpop.f32.mrf.mxu0  ;;  %3476 = vmatpush1.bf16.msra.mxu1 %v7540_v18  ;;  %3589 = vmatpush1.bf16.msra.mxu0 %v6787_v55  ;;  %v11310_v59 = vcombine.low %v11306_v27, %v11307_v1  ;;  %v11313_v29 = vcombine.high %v11311_v6, %v11312_v13  ;;  %v11316_v50 = vcombine.high %v11314_v56, %v11315_v46  ;;  %v7572_v52 = vld [vmem:[%s8365_s20 + $0x64] ss:$36 sps:$4 sm:$0xff]   ;;  %v7574_v45 = vld [vmem:[%s8365_s20 + $0x58] ss:$36 sps:$4 sm:$0xff]   ;;  %v7580_v41 = vld [vmem:[%s8365_s20 + $0x10] ss:$36 sps:$4 sm:$0xff]  }
 0x1dd   : > { %2305 = vst [vmem:[#allocation2 + $0x218] sm:$0xf] %v7214_v30  ;;  %v7204_v25 = vpack.c.bf16 %v1755_v17, %v1755_v17  ;;  %v1782_v51 = vmax.f32 %v1636_v33, 0.0  ;;  %v1628_v48 = vadd.f32 %v1627_v40, %v11302_v11  ;;  %3477 = vmatprep.subr.bf16.mxu1 %v7541_v9  ;;  %3590 = vmatprep.subr.bf16.mxu0 %v7543_v14  ;;  %v7575_v42 = vld [vmem:[%s8365_s20 + $0x60] ss:$36 sps:$4 sm:$0xff]   ;;  %v11320_v43 = vld [vmem:[#allocation45_spill] sm:$0xff]  ;;  %v9510_v11 = vpop.permute.xlu1 %2588 }
 0x1de   : > { %v11317_v39 = vcombine.low %v11311_v6, %v11312_v13  ;;  %v11318_v57 = vcombine.low %v11314_v56, %v11315_v46  ;;  %v7576_v44 = vld [vmem:[%s8365_s20 + $0x14] ss:$36 sps:$4 sm:$0xff]   ;;  %v7578_v12 = vld [vmem:[%s8365_s20 + $0x1c] ss:$36 sps:$4 sm:$0xff]   ;;  %v9433_v4 = vld [vmem:[%s8570_s25 + $0x4] ss:$8 sps:$4 sm:$0xff]   ;;  %s10906_s25 = scalar_lea.vmem %s10961_s8, %s6582_s17 }
 0x1df   : > { %2295 = vst [vmem:[#allocation2 + $0x1d0] sm:$0xf] %v7204_v25  ;;  %v7219_v32 = vpack.c.bf16 %v1782_v51, %v1782_v51  ;;  %v1764_v61 = vmax.f32 %v1628_v48, 0.0  ;;  %v7581_v19 = vld [vmem:[%s8365_s20 + $0x18] ss:$36 sps:$4 sm:$0xff]   ;;  %v11322_v18 = vld [vmem:[#allocation35_spill] sm:$0xff]  ;;  %v9513_v48 = vpop.permute.xlu0 %2584 }
 0x1e0   : > { %3478 = vmatpush1.bf16.msra.mxu1 %v7548_v8  ;;  %3591 = vmatpush1.bf16.msra.mxu0 %v7549_v54  ;;  %v7584_v28 = vld [vmem:[#allocation2 + $0x188] ss:$36 sps:$4 sm:$0xff]   ;;  %v7586_v17 = vld [vmem:[#allocation2 + $0xf8] ss:$36 sps:$4 sm:$0xff]   ;;  %v7587_v7 = vld [vmem:[#allocation2 + $0xb0] ss:$36 sps:$4 sm:$0xff]  }
 0x1e1   : > { %3322 = vmatmul.mubr.bf16.gmra.mxu1 %v9372_v63  ;;  %3435 = vmatmul.mubr.bf16.gmra.mxu0 %v9372_v63  ;;  %2310 = vst [vmem:[#allocation2 + $0x23c] sm:$0xf] %v7219_v32  ;;  %v7209_v53 = vpack.c.bf16 %v1764_v61, %v1764_v61  ;;  %v11323_v55 = vld [vmem:[#allocation39_spill] sm:$0xff]  ;;  %v7589_v9 = vld [vmem:[#allocation2 + $0x20] ss:$36 sps:$4 sm:$0xff]   ;;  %11326 = vst [vmem:[#allocation33_spill] sm:$0xff] %v9510_v11  ;;  %v9517_v8 = vpop.permute.xlu1 %2576 }
 0x1e2   : > { %6877 = vmatprep.mubr.msk.bf16.mxu1 %vm1065_vm0, %v9375_v2  ;;  %6885 = vmatprep.mubr.msk.bf16.mxu0 %vm1065_vm0, %v9375_v2  ;;  %v7585_v30 = vld [vmem:[#allocation2 + $0x140] ss:$36 sps:$4 sm:$0xff]   ;;  %v7588_v33 = vld [vmem:[#allocation2 + $0x68] ss:$36 sps:$4 sm:$0xff]   ;;  %v7590_v14 = vld [vmem:[#allocation2 + $0x338] ss:$36 sps:$4 sm:$0xff]  }
 0x1e3   : > { %3479 = vmatprep.subr.bf16.mxu1 %v7550_v10  ;;  %3592 = vmatprep.subr.bf16.mxu0 %v7552_v37  ;;  %2300 = vst [vmem:[#allocation2 + $0x1f4] sm:$0xf] %v7209_v53  ;;  %v7591_v40 = vld [vmem:[#allocation2 + $0x2f0] ss:$36 sps:$4 sm:$0xff]   ;;  %v11324_v25 = vld [vmem:[#allocation34_spill] sm:$0xff]  ;;  %11327 = vst [vmem:[#allocation37_spill] sm:$0xff] %v9513_v48  ;;  %v9519_v54 = vpop.permute.xlu0 %2580 }
 0x1e4   : > { %3480 = vmatpush1.bf16.msra.mxu1 %v7554_v62  ;;  %3593 = vmatpush1.bf16.msra.mxu0 %v7555_v58  ;;  %v11325_v51 = vld [vmem:[#allocation38_spill] sm:$0xff]  ;;  %11328 = vst [vmem:[#allocation29_spill] sm:$0xff] %v9517_v8  ;;  %11329 = vst [vmem:[#allocation30_spill] sm:$0xff] %v9519_v54 }
 0x1e5   : > { %3489 = vmatprep.subr.bf16.mxu1 %v11305_v47  ;;  %3602 = vmatprep.subr.bf16.mxu0 %v11308_v16  ;;  %v9521_v32 = vpop.permute.xlu1 %2568 }
 0x1e6   : > { %11330 = vst [vmem:[#allocation31_spill] sm:$0xff] %v9521_v32 }
 0x1e8   : > { %3490 = vmatpush2.bf16.msra.mxu1 %v11309_v31  ;;  %3603 = vmatpush2.bf16.msra.mxu0 %v11310_v59  ;;  %v7582_v20 = vld [vmem:[#allocation2 + $0x218] ss:$36 sps:$4 sm:$0xff]  }
 0x1e9   : > { %3332 = vmatmul.mubr.bf16.gmra.mxu1 %v9386_v36  ;;  %3445 = vmatmul.mubr.bf16.gmra.mxu0 %v9386_v36 }
 0x1ea   : > { %6878 = vmatprep.mubr.msk.bf16.mxu1 %vm1065_vm0, %v9389_v15  ;;  %6886 = vmatprep.mubr.msk.bf16.mxu0 %vm1065_vm0, %v9389_v15  ;;  %v7583_v49 = vld [vmem:[#allocation2 + $0x1d0] ss:$36 sps:$4 sm:$0xff]  }
 0x1eb   : > { %3491 = vmatprep.subr.bf16.mxu1 %v11313_v29  ;;  %3604 = vmatprep.subr.bf16.mxu0 %v11316_v50 }
 0x1ec   : > { %3492 = vmatpush2.bf16.msra.mxu1 %v11317_v39  ;;  %3605 = vmatpush2.bf16.msra.mxu0 %v11318_v57 }
 0x1ed   : > { %3493 = vmatprep.subr.bf16.mxu1 %v7570_v22  ;;  %3606 = vmatprep.subr.bf16.mxu0 %v7572_v52 }
 0x1f0   : > { %3494 = vmatpush2.bf16.msra.mxu1 %v7574_v45  ;;  %3607 = vmatpush2.bf16.msra.mxu0 %v7575_v42 }
 0x1f1   : > { %3342 = vmatmul.mubr.bf16.gmra.mxu1 %v9418_v38  ;;  %3455 = vmatmul.mubr.bf16.gmra.mxu0 %v9418_v38 }
 0x1f2   : > { %6887 = vmatprep.mubr.msk.bf16.mxu1 %vm1065_vm0, %v9433_v4  ;;  %6895 = vmatprep.mubr.msk.bf16.mxu0 %vm1065_vm0, %v9433_v4 }
 0x1f3   : > { %3495 = vmatprep.subr.bf16.mxu1 %v7576_v44  ;;  %3608 = vmatprep.subr.bf16.mxu0 %v7578_v12 }
 0x1f4   : > { %3496 = vmatpush2.bf16.msra.mxu1 %v7580_v41  ;;  %3609 = vmatpush2.bf16.msra.mxu0 %v7581_v19 }
 0x1f5   : > { %3691 = vmatprep.subr.bf16.mxu1 %v11319_v26 }
 0x1f9   : > { %3498 = vmatmul.mubr.bf16.vlgmr.msra.gmra.mxu1 %v11320_v43  ;;  %3611 = vmatmul.mubr.bf16.vlgmr.msra.gmra.mxu0 %v11320_v43 }
 0x1fa   : > { %3692 = vmatpush1.bf16.msra.mxu1 %v7582_v20  ;;  %6888 = vmatprep.mubr.msk.bf16.mxu1 %vm1065_vm0, %v11321_v21 }
 0x1fb   : > { %3693 = vmatprep.subr.bf16.mxu1 %v11319_v26  ;;  %6896 = vmatprep.mubr.msk.bf16.mxu0 %vm1065_vm0, %v11321_v21 }
 0x1fe   : > { %3694 = vmatpush1.bf16.msra.mxu1 %v7583_v49 }
 0x1ff   : > { %3695 = vmatprep.subr.bf16.mxu1 %v11319_v26 }
 0x201   : > { %3508 = vmatmul.mubr.bf16.gmra.mxu1 %v11322_v18  ;;  %3621 = vmatmul.mubr.bf16.gmra.mxu0 %v11322_v18 }
 0x202   : > { %3696 = vmatpush1.bf16.msra.mxu1 %v7584_v28  ;;  %6889 = vmatprep.mubr.msk.bf16.mxu1 %vm1065_vm0, %v11323_v55 }
 0x203   : > { %3697 = vmatprep.subr.bf16.mxu1 %v11319_v26  ;;  %6897 = vmatprep.mubr.msk.bf16.mxu0 %vm1065_vm0, %v11323_v55 }
 0x206   : > { %3698 = vmatpush1.bf16.msra.mxu1 %v7585_v30 }
 0x207   : > { %3699 = vmatprep.subr.bf16.mxu1 %v11319_v26 }
 0x209   : > { %3518 = vmatmul.mubr.bf16.gmra.mxu1 %v9271_v24  ;;  %3631 = vmatmul.mubr.bf16.gmra.mxu0 %v9271_v24 }
 0x20a   : > { %3700 = vmatpush1.bf16.msra.mxu1 %v7586_v17  ;;  %6890 = vmatprep.mubr.msk.bf16.mxu1 %vm1065_vm0, %v9281_v5 }
 0x20b   : > { %3701 = vmatprep.subr.bf16.mxu1 %v11319_v26  ;;  %6898 = vmatprep.mubr.msk.bf16.mxu0 %vm1065_vm0, %v9281_v5 }
 0x20e   : > { %3702 = vmatpush1.bf16.msra.mxu1 %v7587_v7 }
 0x20f   : > { %3703 = vmatprep.subr.bf16.mxu1 %v11319_v26 }
 0x211   : > { %3528 = vmatmul.mubr.bf16.gmra.mxu1 %v9302_v0  ;;  %3641 = vmatmul.mubr.bf16.gmra.mxu0 %v9302_v0 }
 0x212   : > { %3704 = vmatpush1.bf16.msra.mxu1 %v7588_v33  ;;  %6891 = vmatprep.mubr.msk.bf16.mxu1 %vm1065_vm0, %v9310_v3 }
 0x213   : > { %3705 = vmatprep.subr.bf16.mxu1 %v11319_v26  ;;  %6899 = vmatprep.mubr.msk.bf16.mxu0 %vm1065_vm0, %v9310_v3 }
 0x216   : > { %3706 = vmatpush1.bf16.msra.mxu1 %v7589_v9 }
 0x217   : > { %3715 = vmatprep.subr.bf16.mxu1 %v11319_v26 }
 0x219   : > { %3538 = vmatmul.mubr.bf16.gmra.mxu1 %v9348_v35  ;;  %3651 = vmatmul.mubr.bf16.gmra.mxu0 %v9348_v35 }
 0x21a   : > { %6892 = vmatprep.mubr.msk.bf16.mxu1 %vm1065_vm0, %v9354_v60  ;;  %6900 = vmatprep.mubr.msk.bf16.mxu0 %vm1065_vm0, %v9354_v60 }
 0x21b   : > { %3716 = vmatpush2.bf16.msra.mxu1 %v7590_v14 }
 0x21c   : > { %3717 = vmatprep.subr.bf16.mxu1 %v11319_v26 }
 0x21f   : > { %3718 = vmatpush2.bf16.msra.mxu1 %v7591_v40 }
 0x220   : > { %3719 = vmatprep.subr.bf16.mxu1 %v11319_v26 }
 0x221   : > { %3548 = vmatmul.mubr.bf16.gmra.mxu1 %v9372_v63  ;;  %3661 = vmatmul.mubr.bf16.gmra.mxu0 %v9372_v63 }
 0x222   : > { %6893 = vmatprep.mubr.msk.bf16.mxu1 %vm1065_vm0, %v9375_v2  ;;  %6901 = vmatprep.mubr.msk.bf16.mxu0 %vm1065_vm0, %v9375_v2 }
 0x223   : > { %3720 = vmatpush2.bf16.msra.mxu1 %v11324_v25 }
 0x224   : > { %3721 = vmatprep.subr.bf16.mxu1 %v11319_v26 }
 0x227   : > { %3722 = vmatpush2.bf16.msra.mxu1 %v11325_v51 }
 0x229   : > { %3558 = vmatmul.mubr.bf16.gmra.mxu1 %v9386_v36  ;;  %3671 = vmatmul.mubr.bf16.gmra.mxu0 %v9386_v36 }
 0x22a   : > { %6894 = vmatprep.mubr.msk.bf16.mxu1 %vm1065_vm0, %v9389_v15  ;;  %6902 = vmatprep.mubr.msk.bf16.mxu0 %vm1065_vm0, %v9389_v15 }
 0x231   : > { %3568 = vmatmul.mubr.bf16.gmra.mxu1 %v9418_v38  ;;  %3681 = vmatmul.mubr.bf16.gmra.mxu0 %v9418_v38 }
 0x232   : > { %6903 = vmatprep.mubr.msk.bf16.mxu1 %vm1065_vm0, %v9433_v4 }
 0x239   : > { %3724 = vmatmul.mubr.bf16.vlgmr.msra.gmra.mxu1 %v11320_v43 }
 0x23a   : > { %6904 = vmatprep.mubr.msk.bf16.mxu1 %vm1065_vm0, %v11321_v21 }
 0x241   : > { %3732 = vmatmul.mubr.bf16.gmra.mxu1 %v11322_v18 }
 0x242   : > { %6905 = vmatprep.mubr.msk.bf16.mxu1 %vm1065_vm0, %v11323_v55 }
 0x249   : > { %3740 = vmatmul.mubr.bf16.gmra.mxu1 %v9271_v24  ;;  %v9526_v24 = vpop.permute.xlu0 %2572 }
 0x24a   : > { %6906 = vmatprep.mubr.msk.bf16.mxu1 %vm1065_vm0, %v9281_v5  ;;  %11331 = vst [vmem:[#allocation32_spill] sm:$0xff] %v9526_v24  ;;  %v9528_v5 = vpop.permute.xlu1 %2560 }
 0x24b   : > { %11332 = vst [vmem:[#allocation25_spill] sm:$0xff] %v9528_v5 }
 0x251   : > { %3748 = vmatmul.mubr.bf16.gmra.mxu1 %v9302_v0  ;;  %v9533_v0 = vpop.permute.xlu0 %2564 }
 0x252   : > { %6907 = vmatprep.mubr.msk.bf16.mxu1 %vm1065_vm0, %v9310_v3  ;;  %11333 = vst [vmem:[#allocation26_spill] sm:$0xff] %v9533_v0  ;;  %v9535_v3 = vpop.permute.xlu1 %2552 }
 0x253   : > { %11334 = vst [vmem:[#allocation27_spill] sm:$0xff] %v9535_v3 }
 0x259   : > { %3756 = vmatmul.mubr.bf16.gmra.mxu1 %v9348_v35  ;;  %v7608_v35 = vld [vmem:[%s10958_s5 + $0x4] ss:$8 sps:$4 sm:$0xff]  }
 0x25a   : > { %6908 = vmatprep.mubr.msk.bf16.mxu1 %vm1065_vm0, %v9354_v60  ;;  %7097 = vmatprep.mubr.msk.bf16.mxu0 %vm5212_vm1, %v7608_v35  ;;  %v9542_v60 = vpop.permute.xlu0 %2556 }
 0x25b   : > { %11335 = vst [vmem:[#allocation28_spill] sm:$0xff] %v9542_v60 }
 0x261   : > { %3764 = vmatmul.mubr.bf16.gmra.mxu1 %v9372_v63  ;;  %v9546_v63 = vpop.permute.xlu1 %2544 }
 0x262   : > { %6909 = vmatprep.mubr.msk.bf16.mxu1 %vm1065_vm0, %v9375_v2  ;;  %v9548_v2 = vpop.permute.xlu0 %2548 }
 0x265   : > { %v9550_v61 = vpop.permute.xlu1 %2536 }
 0x266   : > { %v9554_v10 = vpop.permute.xlu0 %2540 }
 0x269   : > { %3772 = vmatmul.mubr.bf16.gmra.mxu1 %v9386_v36  ;;  %v9556_v37 = vpop.permute.xlu1 %2528 }
 0x26a   : > { %6910 = vmatprep.mubr.msk.bf16.mxu1 %vm1065_vm0, %v9389_v15  ;;  %11336 = vst [vmem:[#allocation12_spill] sm:$0xff] %v9556_v37  ;;  %v9562_v1 = vpop.permute.xlu0 %2532 }
 0x271   : > { %3780 = vmatmul.mubr.bf16.gmra.mxu1 %v9418_v38 }
 0x272   : > { %7105 = vmatprep.mubr.msk.bf16.mxu1 %vm5212_vm1, %v7608_v35 }
 0x279   : > { %v3273_v53 = vpop.f32.mrf.mxu1  ;;  %v3386_v36 = vpop.f32.mrf.mxu0 }
 0x27a   : > { %v3274_v62 = vadd.f32 %v3273_v53, %v9556_v37  ;;  %v3387_v58 = vadd.f32 %v3386_v36, %v9556_v37 }
 0x27b   : > { %v3275_v15 = vpop.f32.mrf.mxu1  ;;  %v3388_v23 = vpop.f32.mrf.mxu0 }
 0x27c   : > { %v3790_v34 = vmax.f32 %v3387_v58, 0.0  ;;  %v3276_v47 = vadd.f32 %v3275_v15, %v9556_v37  ;;  %v3389_v27 = vadd.f32 %v3388_v23, %v9556_v37  ;;  %v3788_v59 = vmax.f32 %v3274_v62, 0.0 }
 0x27d   : > { %v3277_v16 = vpop.f32.mrf.mxu1  ;;  %v3390_v31 = vpop.f32.mrf.mxu0 }
 0x27e   : > { %v3789_v6 = vmax.f32 %v3276_v47, 0.0  ;;  %v3791_v13 = vmax.f32 %v3389_v27, 0.0  ;;  %v3391_v29 = vadd.f32 %v3390_v31, %v9562_v1  ;;  %v3278_v56 = vadd.f32 %v3277_v16, %v9562_v1 }
 0x27f   : > { %v3279_v46 = vpop.f32.mrf.mxu1  ;;  %v3392_v50 = vpop.f32.mrf.mxu0 }
 0x280   : > { %v3799_v22 = vmax.f32 %v3391_v29, 0.0  ;;  %v3280_v52 = vadd.f32 %v3279_v46, %v9562_v1  ;;  %v3393_v38 = vadd.f32 %v3392_v50, %v9562_v1  ;;  %v3797_v44 = vmax.f32 %v3278_v56, 0.0  ;;  %v7700_v29 = vld [vmem:[%s10960_s7 + $0x40] sm:$0xff] }
 0x281   : > { %v3283_v39 = vpop.f32.mrf.mxu1  ;;  %v3396_v57 = vpop.f32.mrf.mxu0 }
 0x282   : > { %v3284_v45 = vadd.f32 %v3283_v39, %v9550_v61  ;;  %v3397_v42 = vadd.f32 %v3396_v57, %v9550_v61  ;;  %v3798_v12 = vmax.f32 %v3280_v52, 0.0  ;;  %v3800_v4 = vmax.f32 %v3393_v38, 0.0 }
 0x283   : > { %v3285_v41 = vpop.f32.mrf.mxu1  ;;  %v3398_v19 = vpop.f32.mrf.mxu0  ;;  %v9574_v14 = vpack.c.bf16 %v3797_v44, %v3788_v59  ;;  %v9578_v25 = vpack.c.bf16 %v3799_v22, %v3790_v34 }
 0x284   : > { %v3808_v20 = vmax.f32 %v3397_v42, 0.0  ;;  %v3286_v43 = vadd.f32 %v3285_v41, %v9550_v61  ;;  %v3399_v21 = vadd.f32 %v3398_v19, %v9550_v61  ;;  %v3806_v49 = vmax.f32 %v3284_v45, 0.0 }
 0x285   : > { %v3287_v28 = vpop.f32.mrf.mxu1  ;;  %v3400_v18 = vpop.f32.mrf.mxu0  ;;  %11337 = vst [vmem:[#allocation13_spill] sm:$0xff] %v9574_v14  ;;  %v9576_v40 = vpack.c.bf16 %v3798_v12, %v3789_v6  ;;  %11339 = vst [vmem:[#allocation16_spill] sm:$0xff] %v9578_v25  ;;  %v9580_v51 = vpack.c.bf16 %v3800_v4, %v3791_v13 }
 0x286   : > { %v3807_v55 = vmax.f32 %v3286_v43, 0.0  ;;  %v3809_v30 = vmax.f32 %v3399_v21, 0.0  ;;  %v3288_v17 = vadd.f32 %v3287_v28, %v9554_v10  ;;  %v3401_v7 = vadd.f32 %v3400_v18, %v9554_v10 }
 0x287   : > { %v3289_v33 = vpop.f32.mrf.mxu1  ;;  %v3402_v9 = vpop.f32.mrf.mxu0  ;;  %11338 = vst [vmem:[#allocation14_spill] sm:$0xff] %v9576_v40  ;;  %11340 = vst [vmem:[#allocation17_spill] sm:$0xff] %v9580_v51 }
 0x288   : > { %v3817_v35 = vmax.f32 %v3401_v7, 0.0  ;;  %v3290_v53 = vadd.f32 %v3289_v33, %v9554_v10  ;;  %v3403_v36 = vadd.f32 %v3402_v9, %v9554_v10  ;;  %v3815_v47 = vmax.f32 %v3288_v17, 0.0 }
 0x289   : > { %v3293_v62 = vpop.f32.mrf.mxu1  ;;  %v3406_v58 = vpop.f32.mrf.mxu0 }
 0x28a   : > { %v9585_v15 = vadd.f32 %v3293_v62, %v9546_v63  ;;  %v9588_v23 = vadd.f32 %v3406_v58, %v9546_v63  ;;  %v3816_v27 = vmax.f32 %v3290_v53, 0.0  ;;  %v3818_v16 = vmax.f32 %v3403_v36, 0.0  ;;  %v7695_v62 = vld [vmem:[%s10960_s7 + $0x70] sm:$0xff]  ;;  %v7696_v58 = vld [vmem:[%s10960_s7 + $0x78] sm:$0xff] }
 0x28b   : > { %v3295_v34 = vpop.f32.mrf.mxu1  ;;  %v3408_v31 = vpop.f32.mrf.mxu0  ;;  %v9606_v45 = vpack.c.bf16 %v3815_v47, %v3806_v49  ;;  %v9610_v44 = vpack.c.bf16 %v3817_v35, %v3808_v20  ;;  %v7879_v35 = vmov 2  }
 0x28c   : > { %11341 = vst [vmem:[#allocation18_spill] sm:$0xff] %v9585_v15  ;;  %11342 = vst [vmem:[#allocation19_spill] sm:$0xff] %v9588_v23  ;;  %v9592_v6 = vadd.f32 %v3295_v34, %v9546_v63  ;;  %v9595_v13 = vadd.f32 %v3408_v31, %v9546_v63  ;;  %v9608_v42 = vpack.c.bf16 %v3816_v27, %v3807_v55  ;;  %7440 = vset.pattern.permute.xlu1 %v7879_v35 }
 0x28d   : > { %v3297_v56 = vpop.f32.mrf.mxu1  ;;  %v3410_v46 = vpop.f32.mrf.mxu0  ;;  %11347 = vst [vmem:[#allocation10_spill] sm:$0xff] %v9606_v45  ;;  %11349 = vst [vmem:[#allocation43_spill] sm:$0xff] %v9610_v44  ;;  %v9612_v12 = vpack.c.bf16 %v3818_v16, %v3809_v30  ;;  %7441 = vset.pattern.permute.xlu0 %v7879_v35  ;;  %4673 = vperm.xlu1 %7440, %v7695_v62   ;;  %v7698_v35 = vld [vmem:[%s10960_s7 + $0x50] sm:$0xff] }
 0x28e   : > { %11343 = vst [vmem:[#allocation20_spill] sm:$0xff] %v9592_v6  ;;  %11344 = vst [vmem:[#allocation22_spill] sm:$0xff] %v9595_v13  ;;  %v9601_v52 = vadd.f32 %v3297_v56, %v9548_v2  ;;  %v9604_v38 = vadd.f32 %v3410_v46, %v9548_v2  ;;  %4677 = vperm.xlu0 %7441, %v7696_v58  }
 0x28f   : > { %v3299_v39 = vpop.f32.mrf.mxu1  ;;  %v3412_v57 = vpop.f32.mrf.mxu0  ;;  %11348 = vst [vmem:[#allocation11_spill] sm:$0xff] %v9608_v42  ;;  %11350 = vst [vmem:[#allocation21_spill] sm:$0xff] %v9612_v12 }
 0x290   : > { %11345 = vst [vmem:[#allocation23_spill] sm:$0xff] %v9601_v52  ;;  %11346 = vst [vmem:[#allocation15_spill] sm:$0xff] %v9604_v38  ;;  %v9616_v41 = vadd.f32 %v3299_v39, %v9548_v2  ;;  %v9619_v19 = vadd.f32 %v3412_v57, %v9548_v2 }
 0x291   : > { %v3303_v43 = vpop.f32.mrf.mxu1  ;;  %v3416_v21 = vpop.f32.mrf.mxu0 }
 0x292   : > { %11351 = vst [vmem:[#allocation50_spill] sm:$0xff] %v9616_v41  ;;  %11352 = vst [vmem:[#allocation24_spill] sm:$0xff] %v9619_v19  ;;  %v9622_v28 = vadd.f32 %v3303_v43, %v9535_v3  ;;  %v9625_v49 = vadd.f32 %v3416_v21, %v9535_v3  ;;  %4657 = vperm.xlu0 %7441, %v7698_v35  }
 0x293   : > { %v3305_v30 = vpop.f32.mrf.mxu1  ;;  %v3418_v17 = vpop.f32.mrf.mxu0 }
 0x294   : > { %11353 = vst [vmem:[#allocation51_spill] sm:$0xff] %v9625_v49  ;;  %v9632_v33 = vadd.f32 %v3305_v30, %v9535_v3  ;;  %v9635_v9 = vadd.f32 %v3418_v17, %v9535_v3  ;;  %v7697_v17 = vld [vmem:[%s10960_s7 + $0x60] sm:$0xff] }
 0x295   : > { %v3307_v53 = vpop.f32.mrf.mxu1  ;;  %v3420_v36 = vpop.f32.mrf.mxu0  ;;  %4665 = vperm.xlu1 %7440, %v7697_v17  }
 0x296   : > { %v9647_v34 = vadd.f32 %v3420_v36, %v9542_v60  ;;  %v9650_v31 = vadd.f32 %v3307_v53, %v9542_v60  ;;  %4649 = vperm.xlu0 %7441, %v7700_v29  }
 0x297   : > { %v3309_v56 = vpop.f32.mrf.mxu1  ;;  %v3422_v46 = vpop.f32.mrf.mxu0 }
 0x298   : > { %11354 = vst [vmem:[#allocation6_spill] sm:$0xff] %v9647_v34  ;;  %v9654_v57 = vadd.f32 %v3309_v56, %v9542_v60  ;;  %v9657_v43 = vadd.f32 %v3422_v46, %v9542_v60 }
 0x299   : > { %v3313_v21 = vpop.f32.mrf.mxu1  ;;  %v3426_v30 = vpop.f32.mrf.mxu0 }
 0x29a   : > { %v9666_v53 = vadd.f32 %v3313_v21, %v9528_v5  ;;  %v9669_v36 = vadd.f32 %v3426_v30, %v9528_v5  ;;  %v7699_v30 = vld [vmem:[%s10960_s7 + $0x68] sm:$0xff] }
 0x29b   : > { %v3315_v46 = vpop.f32.mrf.mxu1  ;;  %v3428_v4 = vpop.f32.mrf.mxu0  ;;  %4669 = vperm.xlu1 %7440, %v7699_v30  }
 0x29c   : > { %v9676_v59 = vadd.f32 %v3315_v46, %v9528_v5  ;;  %v9679_v35 = vadd.f32 %v3428_v4, %v9528_v5 }
 0x29d   : > { %v3317_v21 = vpop.f32.mrf.mxu1  ;;  %v3430_v20 = vpop.f32.mrf.mxu0 }
 0x29e   : > { %v9691_v4 = vadd.f32 %v3430_v20, %v9533_v0  ;;  %v9694_v18 = vadd.f32 %v3317_v21, %v9533_v0  ;;  %v7701_v20 = vld [vmem:[%s10960_s7 + $0x58] sm:$0xff]  ;;  %v7702_v21 = vld [vmem:[%s10960_s7 + $0x30] sm:$0xff] }
 0x29f   : > { %v3319_v50 = vpop.f32.mrf.mxu1  ;;  %v3432_v39 = vpop.f32.mrf.mxu0  ;;  %4661 = vperm.xlu1 %7440, %v7701_v20   ;;  %4641 = vperm.xlu0 %7441, %v7702_v21  }
 0x2a0   : > { %v9698_v7 = vadd.f32 %v3319_v50, %v9533_v0  ;;  %v9701_v29 = vadd.f32 %v3432_v39, %v9533_v0  ;;  %v7704_v39 = vld [vmem:[%s10960_s7 + $0x20] sm:$0xff] }
 0x2a1   : > { %v3323_v62 = vpop.f32.mrf.mxu1  ;;  %v3436_v47 = vpop.f32.mrf.mxu0 }
 0x2a2   : > { %v9710_v56 = vadd.f32 %v3323_v62, %v9521_v32  ;;  %v9713_v50 = vadd.f32 %v3436_v47, %v9521_v32  ;;  %v7703_v47 = vld [vmem:[%s10960_s7 + $0x48] sm:$0xff] }
 0x2a3   : > { %v3325_v27 = vpop.f32.mrf.mxu1  ;;  %v3438_v30 = vpop.f32.mrf.mxu0  ;;  %4653 = vperm.xlu1 %7440, %v7703_v47   ;;  %4633 = vperm.xlu0 %7441, %v7704_v39  }
 0x2a4   : > { %v9720_v17 = vadd.f32 %v3325_v27, %v9521_v32  ;;  %v9723_v21 = vadd.f32 %v3438_v30, %v9521_v32 }
 0x2a5   : > { %v3327_v62 = vpop.f32.mrf.mxu1  ;;  %v3440_v55 = vpop.f32.mrf.mxu0 }
 0x2a6   : > { %v9735_v30 = vadd.f32 %v3440_v55, %v9526_v24  ;;  %v9738_v16 = vadd.f32 %v3327_v62, %v9526_v24  ;;  %v7705_v55 = vld [vmem:[%s10960_s7 + $0x38] sm:$0xff]  ;;  %v7706_v62 = vld [vmem:[%s10960_s7 + $0x10] sm:$0xff] }
 0x2a7   : > { %v3329_v46 = vpop.f32.mrf.mxu1  ;;  %v3442_v20 = vpop.f32.mrf.mxu0  ;;  %4645 = vperm.xlu1 %7440, %v7705_v55   ;;  %4625 = vperm.xlu0 %7441, %v7706_v62  }
 0x2a8   : > { %v9742_v26 = vadd.f32 %v3329_v46, %v9526_v24  ;;  %v9745_v39 = vadd.f32 %v3442_v20, %v9526_v24  ;;  %v7708_v20 = vld [vmem:[%s10960_s7] sm:$0xff] }
 0x2a9   : > { %v3333_v58 = vpop.f32.mrf.mxu1  ;;  %v3446_v27 = vpop.f32.mrf.mxu0 }
 0x2aa   : > { %v9754_v47 = vadd.f32 %v3333_v58, %v9517_v8  ;;  %v9757_v46 = vadd.f32 %v3446_v27, %v9517_v8  ;;  %v7707_v27 = vld [vmem:[%s10960_s7 + $0x28] sm:$0xff] }
 0x2ab   : > { %v3335_v32 = vpop.f32.mrf.mxu1  ;;  %v3448_v25 = vpop.f32.mrf.mxu0  ;;  %4637 = vperm.xlu1 %7440, %v7707_v27   ;;  %4617 = vperm.xlu0 %7441, %v7708_v20  }
 0x2ac   : > { %v9764_v0 = vadd.f32 %v3335_v32, %v9517_v8  ;;  %v3449_v62 = vadd.f32 %v3448_v25, %v9517_v8 }
 0x2ad   : > { %v3337_v58 = vpop.f32.mrf.mxu1  ;;  %v3450_v14 = vpop.f32.mrf.mxu0 }
 0x2ae   : > { %v3899_v32 = vmax.f32 %v3449_v62, 0.0  ;;  %v9776_v55 = vadd.f32 %v3450_v14, %v9519_v54  ;;  %v9779_v25 = vadd.f32 %v3337_v58, %v9519_v54  ;;  %v7709_v62 = vld [vmem:[%s10960_s7 + $0x18] sm:$0xff] }
 0x2af   : > { %v3339_v8 = vpop.f32.mrf.mxu1  ;;  %v3452_v51 = vpop.f32.mrf.mxu0  ;;  %4629 = vperm.xlu1 %7440, %v7709_v62  }
 0x2b0   : > { %v3340_v5 = vadd.f32 %v3339_v8, %v9519_v54  ;;  %v3453_v40 = vadd.f32 %v3452_v51, %v9519_v54 }
 0x2b1   : > { %v3343_v20 = vpop.f32.mrf.mxu1  ;;  %v3456_v44 = vpop.f32.mrf.mxu0 }
 0x2b2   : > { %v3344_v14 = vadd.f32 %v3343_v20, %v9513_v48  ;;  %v3457_v58 = vadd.f32 %v3456_v44, %v9513_v48  ;;  %v3906_v22 = vmax.f32 %v3340_v5, 0.0  ;;  %v3908_v45 = vmax.f32 %v3453_v40, 0.0  ;;  %v7710_v20 = vld [vmem:[%s10960_s7 + $0x8] sm:$0xff] }
 0x2b3   : > { %v3345_v27 = vpop.f32.mrf.mxu1  ;;  %v3458_v12 = vpop.f32.mrf.mxu0  ;;  %4621 = vperm.xlu1 %7440, %v7710_v20  }
 0x2b4   : > { %v3916_v8 = vmax.f32 %v3457_v58, 0.0  ;;  %v3346_v51 = vadd.f32 %v3345_v27, %v9513_v48  ;;  %v3459_v54 = vadd.f32 %v3458_v12, %v9513_v48  ;;  %v3914_v42 = vmax.f32 %v3344_v14, 0.0 }
 0x2b5   : > { %v3347_v60 = vpop.f32.mrf.mxu1  ;;  %v3460_v38 = vpop.f32.mrf.mxu0  ;;  %v7773_v19 = vpack.c.bf16 %v3908_v45, %v3899_v32 }
 0x2b6   : > { %v3915_v44 = vmax.f32 %v3346_v51, 0.0  ;;  %v3917_v62 = vmax.f32 %v3459_v54, 0.0  ;;  %v3348_v5 = vadd.f32 %v3347_v60, %v9510_v11  ;;  %v3461_v40 = vadd.f32 %v3460_v38, %v9510_v11 }
 0x2b7   : > { %v3349_v24 = vpop.f32.mrf.mxu1  ;;  %v3462_v58 = vpop.f32.mrf.mxu0 }
 0x2b8   : > { %v3925_v23 = vmax.f32 %v3461_v40, 0.0  ;;  %v3350_v27 = vadd.f32 %v3349_v24, %v9510_v11  ;;  %v3463_v12 = vadd.f32 %v3462_v58, %v9510_v11  ;;  %v3923_v14 = vmax.f32 %v3348_v5, 0.0 }
 0x2b9   : > { %v3499_v48 = vpop.f32.mrf.mxu1  ;;  %v3612_v52 = vpop.f32.mrf.mxu0 }
 0x2ba   : > { %v3924_v15 = vmax.f32 %v3350_v27, 0.0  ;;  %v3926_v3 = vmax.f32 %v3463_v12, 0.0  ;;  %v3500_v20 = vadd.f32 %v3499_v48, %v9556_v37  ;;  %v3613_v54 = vadd.f32 %v3612_v52, %v9556_v37 }
 0x2bb   : > { %v3501_v51 = vpop.f32.mrf.mxu1  ;;  %v3614_v60 = vpop.f32.mrf.mxu0  ;;  %v7774_v12 = vpack.c.bf16 %v3923_v14, %v3914_v42  ;;  %v7776_v49 = vpack.c.bf16 %v3925_v23, %v3916_v8  ;;  %v11357_v42 = vmax.f32 %v9776_v55, 0.0 }
 0x2bc   : > { %v3792_v38 = vmax.f32 %v3500_v20, 0.0  ;;  %v3794_v13 = vmax.f32 %v3613_v54, 0.0  ;;  %v3502_v40 = vadd.f32 %v3501_v51, %v9556_v37  ;;  %v3615_v24 = vadd.f32 %v3614_v60, %v9556_v37 }
 0x2bd   : > { %v3503_v41 = vpop.f32.mrf.mxu1  ;;  %v3616_v58 = vpop.f32.mrf.mxu0  ;;  %v7775_v11 = vpack.c.bf16 %v3924_v15, %v3915_v44  ;;  %v7777_v45 = vpack.c.bf16 %v3926_v3, %v3917_v62  ;;  %v11355_v54 = vmax.f32 %v9764_v0, 0.0  ;;  %v11356_v15 = vmax.f32 %v9757_v46, 0.0 }
 0x2be   : > { %v3504_v5 = vadd.f32 %v3503_v41, %v9562_v1  ;;  %v3617_v27 = vadd.f32 %v3616_v58, %v9562_v1  ;;  %v3793_v48 = vmax.f32 %v3502_v40, 0.0  ;;  %v3795_v6 = vmax.f32 %v3615_v24, 0.0 }
 0x2bf   : > { %v3505_v52 = vpop.f32.mrf.mxu1  ;;  %v3618_v34 = vpop.f32.mrf.mxu0  ;;  %5237 = vmatprep.subr.bf16.mxu0 %v7775_v11  ;;  %v7778_v51 = vpack.c.bf16 %v3906_v22, %v11355_v54  ;;  %5350 = vmatprep.subr.bf16.mxu1 %v7777_v45  ;;  %v7779_v23 = vpack.c.bf16 %v11357_v42, %v11356_v15  ;;  %v11358_v22 = vmax.f32 %v9754_v47, 0.0  ;;  %v11362_v47 = vmax.f32 %v9723_v21, 0.0 }
 0x2c0   : > { %v3506_v32 = vadd.f32 %v3505_v52, %v9562_v1  ;;  %v3619_v20 = vadd.f32 %v3618_v34, %v9562_v1  ;;  %v7222_v60 = vpack.c.bf16 %v3793_v48, %v3792_v38  ;;  %v7223_v41 = vpack.c.bf16 %v3795_v6, %v3794_v13  ;;  %5238 = vmatpush1.bf16.msra.mxu0 %v7774_v12 }
 0x2c1   : > { %v3509_v37 = vpop.f32.mrf.mxu1  ;;  %v3622_v58 = vpop.f32.mrf.mxu0  ;;  %v3801_v3 = vmax.f32 %v3504_v5, 0.0  ;;  %v3803_v8 = vmax.f32 %v3617_v27, 0.0  ;;  %5351 = vmatpush1.bf16.msra.mxu1 %v7776_v49  ;;  %5239 = vmatprep.subr.bf16.mxu0 %v7778_v51  ;;  %v11359_v34 = vmax.f32 %v9779_v25, 0.0  ;;  %v11360_v38 = vmax.f32 %v9720_v17, 0.0 }
 0x2c2   : > { %v3802_v44 = vmax.f32 %v3506_v32, 0.0  ;;  %v3804_v62 = vmax.f32 %v3619_v20, 0.0  ;;  %4382 = vst [vmem:[#allocation2 + $0x10] sm:$0xff] %v7222_v60  ;;  %4383 = vst [vmem:[#allocation2 + $0x18] sm:$0xff] %v7223_v41  ;;  %v3510_v11 = vadd.f32 %v3509_v37, %v9550_v61  ;;  %v3623_v0 = vadd.f32 %v3622_v58, %v9550_v61  ;;  %5352 = vmatprep.subr.bf16.mxu1 %v7773_v19 }
 0x2c3   : > { %v3511_v6 = vpop.f32.mrf.mxu1  ;;  %v3624_v13 = vpop.f32.mrf.mxu0  ;;  %v7780_v46 = vpack.c.bf16 %v11359_v34, %v11358_v22  ;;  %v11361_v49 = vmax.f32 %v9742_v26, 0.0  ;;  %v11363_v25 = vmax.f32 %v9745_v39, 0.0  ;;  %v11364_v26 = vmax.f32 %v9710_v56, 0.0 }
 0x2c4   : > { %v7227_v55 = vpack.c.bf16 %v3802_v44, %v3801_v3  ;;  %v7228_v14 = vpack.c.bf16 %v3804_v62, %v3803_v8  ;;  %v3512_v24 = vadd.f32 %v3511_v6, %v9550_v61  ;;  %v3625_v37 = vadd.f32 %v3624_v13, %v9550_v61 }
 0x2c5   : > { %v7781_v40 = vpack.c.bf16 %v11361_v49, %v11360_v38  ;;  %v3513_v5 = vpop.f32.mrf.mxu1  ;;  %v3626_v27 = vpop.f32.mrf.mxu0  ;;  %5240 = vmatpush1.bf16.msra.mxu0 %v7780_v46  ;;  %v7782_v12 = vpack.c.bf16 %v11363_v25, %v11362_v47  ;;  %5353 = vmatpush1.bf16.msra.mxu1 %v7779_v23  ;;  %v11365_v48 = vmax.f32 %v9738_v16, 0.0  ;;  %v3810_v45 = vmax.f32 %v3510_v11, 0.0 }
 0x2c6   : > { %4387 = vst [vmem:[#allocation2 + $0x34] sm:$0xff] %v7227_v55  ;;  %4388 = vst [vmem:[#allocation2 + $0x3c] sm:$0xff] %v7228_v14  ;;  %v3514_v19 = vadd.f32 %v3513_v5, %v9554_v10  ;;  %v3627_v17 = vadd.f32 %v3626_v27, %v9554_v10  ;;  %v3812_v32 = vmax.f32 %v3623_v0, 0.0  ;;  %v3811_v20 = vmax.f32 %v3512_v24, 0.0 }
 0x2c7   : > { %v7783_v52 = vpack.c.bf16 %v11365_v48, %v11364_v26  ;;  %5241 = vmatprep.subr.bf16.mxu0 %v7781_v40  ;;  %v3813_v21 = vmax.f32 %v3625_v37, 0.0  ;;  %v3515_v54 = vpop.f32.mrf.mxu1  ;;  %v3628_v39 = vpop.f32.mrf.mxu0  ;;  %5354 = vmatprep.subr.bf16.mxu1 %v7782_v12  ;;  %v11366_v41 = vmax.f32 %v9713_v50, 0.0  ;;  %v11367_v58 = vmax.f32 %v9735_v30, 0.0 }
 0x2c8   : > { %v3516_v51 = vadd.f32 %v3515_v54, %v9554_v10  ;;  %v3629_v60 = vadd.f32 %v3628_v39, %v9554_v10  ;;  %v11368_v16 = vmax.f32 %v9676_v59, 0.0  ;;  %v11369_v15 = vmax.f32 %v9698_v7, 0.0 }
 0x2c9   : > { %v7784_v56 = vpack.c.bf16 %v11367_v58, %v11366_v41  ;;  %v7232_v23 = vpack.c.bf16 %v3811_v20, %v3810_v45  ;;  %v7233_v3 = vpack.c.bf16 %v3813_v21, %v3812_v32  ;;  %v3519_v8 = vpop.f32.mrf.mxu1  ;;  %v3632_v44 = vpop.f32.mrf.mxu0  ;;  %5242 = vmatpush1.bf16.msra.mxu0 %v7783_v52  ;;  %v11370_v62 = vmax.f32 %v9679_v35, 0.0  ;;  %v11390_v21 = vld [vmem:[#allocation6_spill] sm:$0xff] }
 0x2ca   : > { %v7785_v42 = vpack.c.bf16 %v11369_v15, %v11368_v16  ;;  %v11371_v11 = vmax.f32 %v9701_v29, 0.0  ;;  %v3819_v6 = vmax.f32 %v3514_v19, 0.0  ;;  %v3821_v50 = vmax.f32 %v3627_v17, 0.0  ;;  %v11394_v41 = vld [vmem:[#allocation50_spill] sm:$0xff] }
 0x2cb   : > { %v3820_v13 = vmax.f32 %v3516_v51, 0.0  ;;  %v3822_v30 = vmax.f32 %v3629_v60, 0.0  ;;  %5355 = vmatpush1.bf16.msra.mxu1 %v7784_v56  ;;  %4392 = vst [vmem:[#allocation2 + $0x58] sm:$0xff] %v7232_v23  ;;  %4393 = vst [vmem:[#allocation2 + $0x60] sm:$0xff] %v7233_v3  ;;  %v9850_v59 = vadd.f32 %v3519_v8, %v9546_v63  ;;  %v9853_v7 = vadd.f32 %v3632_v44, %v9546_v63  ;;  %v3521_v22 = vpop.f32.mrf.mxu1  ;;  %v3634_v34 = vpop.f32.mrf.mxu0  ;;  %v11392_v51 = vld [vmem:[#allocation20_spill] sm:$0xff]  ;;  %v11396_v3 = vld [vmem:[#allocation22_spill] sm:$0xff] }
 0x2cc   : > { %v7786_v0 = vpack.c.bf16 %v11371_v11, %v11370_v62  ;;  %5243 = vmatprep.subr.bf16.mxu0 %v7785_v42  ;;  %v11374_v35 = vmax.f32 %v9666_v53, 0.0  ;;  %v11375_v29 = vmax.f32 %v9694_v18, 0.0  ;;  %v11378_v38 = vmax.f32 %v9669_v36, 0.0  ;;  %v11398_v44 = vld [vmem:[#allocation24_spill] sm:$0xff] }
 0x2cd   : > { %11372 = vst [vmem:[#allocation7_spill] sm:$0xff] %v9850_v59  ;;  %11373 = vst [vmem:[#allocation8_spill] sm:$0xff] %v9853_v7  ;;  %v9859_v55 = vpack.c.bf16 %v3820_v13, %v3819_v6  ;;  %v9861_v14 = vpack.c.bf16 %v3822_v30, %v3821_v50  ;;  %v11379_v49 = vmax.f32 %v9691_v4, 0.0  ;;  %v11380_v24 = vmax.f32 %v9632_v33, 0.0  ;;  %v3523_v27 = vpop.f32.mrf.mxu1  ;;  %v3636_v47 = vpop.f32.mrf.mxu0  ;;  %v11400_v30 = vld [vmem:[#allocation27_spill] sm:$0xff] }
 0x2ce   : > { %v7787_v46 = vpack.c.bf16 %v11375_v29, %v11374_v35  ;;  %5356 = vmatprep.subr.bf16.mxu1 %v7786_v0  ;;  %v11381_v37 = vmax.f32 %v9654_v57, 0.0  ;;  %v9872_v53 = vadd.f32 %v3521_v22, %v9546_v63  ;;  %v9875_v18 = vadd.f32 %v3634_v34, %v9546_v63  ;;  %v7600_v6 = vld [vmem:[#allocation2 + $0x240] ss:$36 sps:$4 sm:$0xff]  }
 0x2cf   : > { %11376 = vst [vmem:[#allocation9_spill] sm:$0xff] %v9859_v55  ;;  %11377 = vst [vmem:[#allocation40_spill] sm:$0xff] %v9861_v14  ;;  %v7788_v40 = vpack.c.bf16 %v11379_v49, %v11378_v38  ;;  %v11382_v25 = vmax.f32 %v9635_v9, 0.0  ;;  %v11383_v36 = vmax.f32 %v9657_v43, 0.0  ;;  %v9884_v33 = vadd.f32 %v3523_v27, %v9548_v2  ;;  %v3525_v52 = vpop.f32.mrf.mxu1  ;;  %v3638_v45 = vpop.f32.mrf.mxu0  ;;  %v11403_v49 = vld [vmem:[#allocation23_spill] sm:$0xff] }
 0x2d0   : > { %v7789_v5 = vpack.c.bf16 %v11381_v37, %v11380_v24  ;;  %5244 = vmatpush1.bf16.msra.mxu0 %v7787_v46  ;;  %4397 = vst [vmem:[#allocation2 + $0x7c] sm:$0xff] %v9859_v55  ;;  %4398 = vst [vmem:[#allocation2 + $0x84] sm:$0xff] %v9861_v14  ;;  %v9887_v57 = vadd.f32 %v3636_v47, %v9548_v2  ;;  %v11386_v12 = vmax.f32 %v9622_v28, 0.0  ;;  %v11387_v19 = vmax.f32 %v9650_v31, 0.0  ;;  %v11388_v31 = vld [vmem:[#allocation51_spill] sm:$0xff]  ;;  %v11401_v46 = vld [vmem:[#allocation18_spill] sm:$0xff] }
 0x2d1   : > { %v7790_v4 = vpack.c.bf16 %v11383_v36, %v11382_v25  ;;  %11384 = vst [vmem:[#allocation41_spill] sm:$0xff] %v9884_v33  ;;  %5357 = vmatpush1.bf16.msra.mxu1 %v7788_v40  ;;  %v11081_v9 = vmax.f32 %v9850_v59, 0.0  ;;  %v11079_v43 = vmax.f32 %v9853_v7, 0.0  ;;  %v11084_v26 = vmax.f32 %v9872_v53, 0.0  ;;  %v3529_v42 = vpop.f32.mrf.mxu1  ;;  %v3642_v23 = vpop.f32.mrf.mxu0  ;;  %v11407_v47 = vld [vmem:[#allocation15_spill] sm:$0xff] }
 0x2d2   : > { %11385 = vst [vmem:[#allocation42_spill] sm:$0xff] %v9887_v57  ;;  %v7791_v17 = vpack.c.bf16 %v11387_v19, %v11386_v12  ;;  %5245 = vmatprep.subr.bf16.mxu0 %v7789_v5  ;;  %v11082_v48 = vmax.f32 %v9875_v18, 0.0  ;;  %v9898_v32 = vadd.f32 %v3525_v52, %v9548_v2  ;;  %v9901_v28 = vadd.f32 %v3638_v45, %v9548_v2  ;;  %v11405_v5 = vld [vmem:[#allocation19_spill] sm:$0xff]  ;;  %v11409_v52 = vld [vmem:[#allocation28_spill] sm:$0xff] }
 0x2d3   : > { %5358 = vmatprep.subr.bf16.mxu1 %v7790_v4  ;;  %v11389_v20 = vmax.f32 %v11388_v31, 0.0  ;;  %v11391_v54 = vmax.f32 %v11390_v21, 0.0  ;;  %v11393_v60 = vmax.f32 %v11392_v51, 0.0  ;;  %v11395_v58 = vmax.f32 %v11394_v41, 0.0  ;;  %v3531_v35 = vpop.f32.mrf.mxu1  ;;  %v3644_v29 = vpop.f32.mrf.mxu0 }
 0x2d4   : > { %v7242_v16 = vpack.c.bf16 %v11084_v26, %v11081_v9  ;;  %v7243_v15 = vpack.c.bf16 %v11082_v48, %v11079_v43  ;;  %5246 = vmatpush1.bf16.msra.mxu0 %v7791_v17  ;;  %v11397_v8 = vmax.f32 %v11396_v3, 0.0  ;;  %v11399_v62 = vmax.f32 %v11398_v44, 0.0  ;;  %v10020_v26 = vld [vmem:[%s10958_s5] ss:$8 sps:$4 sm:$0xff]   ;;  %v10068_v9 = vld [vmem:[%s10958_s5 + $0x10] ss:$8 sps:$4 sm:$0xff]  }
 0x2d5   : > { %v7792_v39 = vpack.c.bf16 %v11391_v54, %v11389_v20  ;;  %v7793_v56 = vpack.c.bf16 %v11395_v58, %v11393_v60  ;;  %v11080_v0 = vmax.f32 %v9884_v33, 0.0  ;;  %v11083_v50 = vmax.f32 %v9898_v32, 0.0  ;;  %v3533_v19 = vpop.f32.mrf.mxu1  ;;  %v3646_v17 = vpop.f32.mrf.mxu0  ;;  %v11410_v20 = vld [vmem:[#allocation11_spill] sm:$0xff]  ;;  %v11411_v58 = vld [vmem:[#allocation21_spill] sm:$0xff]  ;;  %11421 = vst [vmem:[#allocation44_spill] sm:$0xff] %v10020_v26  ;;  %11425 = vst [vmem:[#allocation47_spill] sm:$0xff] %v10068_v9 }
 0x2d6   : > { %v7794_v11 = vpack.c.bf16 %v11399_v62, %v11397_v8  ;;  %4402 = vst [vmem:[#allocation2 + $0xa0] sm:$0xff] %v7242_v16  ;;  %4403 = vst [vmem:[#allocation2 + $0xa8] sm:$0xff] %v7243_v15  ;;  %v9928_v22 = vadd.f32 %v3529_v42, %v11400_v30  ;;  %v9931_v34 = vadd.f32 %v3642_v23, %v11400_v30  ;;  %v11402_v38 = vmax.f32 %v11401_v46, 0.0  ;;  %v11412_v23 = vld [vmem:[#allocation10_spill] sm:$0xff]  ;;  %v11415_v46 = vld [vmem:[#allocation25_spill] sm:$0xff] }
 0x2d7   : > { %5359 = vmatpush1.bf16.msra.mxu1 %v7792_v39  ;;  %5247 = vmatprep.subr.bf16.mxu0 %v7793_v56  ;;  %v11404_v40 = vmax.f32 %v11403_v49, 0.0  ;;  %v7247_v37 = vpack.c.bf16 %v11083_v50, %v11080_v0  ;;  %v11406_v27 = vmax.f32 %v11405_v5, 0.0  ;;  %v11408_v25 = vmax.f32 %v11407_v47, 0.0  ;;  %v3535_v60 = vpop.f32.mrf.mxu1  ;;  %v3648_v41 = vpop.f32.mrf.mxu0  ;;  %v7599_v5 = vld [vmem:[#allocation2 + $0x294] ss:$36 sps:$4 sm:$0xff]  }
 0x2d8   : > { %5360 = vmatprep.subr.bf16.mxu1 %v7794_v11  ;;  %v9946_v4 = vadd.f32 %v3531_v35, %v11400_v30  ;;  %v9949_v12 = vadd.f32 %v3644_v29, %v11400_v30  ;;  %v9952_v45 = vadd.f32 %v3533_v19, %v11409_v52  ;;  %v9955_v31 = vadd.f32 %v3646_v17, %v11409_v52  ;;  %v11413_v11 = vld [vmem:[#allocation43_spill] sm:$0xff]  ;;  %v11414_v35 = vld [vmem:[#allocation14_spill] sm:$0xff]  ;;  %v11417_v19 = vld [vmem:[#allocation13_spill] sm:$0xff] }
 0x2d9   : > { %v7795_v24 = vpack.c.bf16 %v11404_v40, %v11402_v38  ;;  %v7796_v36 = vpack.c.bf16 %v11408_v25, %v11406_v27  ;;  %4407 = vst [vmem:[#allocation2 + $0xc4] sm:$0xff] %v7247_v37  ;;  %v9964_v56 = vadd.f32 %v3535_v60, %v11409_v52  ;;  %v9967_v16 = vadd.f32 %v3648_v41, %v11409_v52  ;;  %v3539_v15 = vpop.f32.mrf.mxu1  ;;  %v3652_v42 = vpop.f32.mrf.mxu0  ;;  %v7596_v29 = vld [vmem:[#allocation2 + $0x28c] ss:$36 sps:$4 sm:$0xff]   ;;  %v11416_v37 = vld [vmem:[#allocation17_spill] sm:$0xff] }
 0x2da   : > { %v9977_v38 = vadd.f32 %v3539_v15, %v11415_v46  ;;  %v9980_v49 = vadd.f32 %v3652_v42, %v11415_v46  ;;  %v7594_v17 = vld [vmem:[#allocation2 + $0x288] ss:$36 sps:$4 sm:$0xff]   ;;  %v7597_v15 = vld [vmem:[#allocation2 + $0x290] ss:$36 sps:$4 sm:$0xff]  }
 0x2db   : > { %5248 = vmatpush1.bf16.msra.mxu0 %v7795_v24  ;;  %5361 = vmatpush1.bf16.msra.mxu1 %v7796_v36  ;;  %v3541_v40 = vpop.f32.mrf.mxu1  ;;  %v3654_v24 = vpop.f32.mrf.mxu0  ;;  %v7602_v42 = vld [vmem:[#allocation2 + $0x244] ss:$36 sps:$4 sm:$0xff]  }
 0x2dc   : > { %5249 = vmatprep.subr.bf16.mxu0 %v11410_v20  ;;  %5362 = vmatprep.subr.bf16.mxu1 %v11411_v58  ;;  %v9984_v27 = vadd.f32 %v3541_v40, %v11415_v46  ;;  %v9987_v47 = vadd.f32 %v3654_v24, %v11415_v46  ;;  %v11418_v20 = vld [vmem:[#allocation26_spill] sm:$0xff]  ;;  %v11419_v58 = vld [vmem:[#allocation16_spill] sm:$0xff] }
 0x2dd   : > { %v3543_v25 = vpop.f32.mrf.mxu1  ;;  %v3656_v36 = vpop.f32.mrf.mxu0 }
 0x2de   : > { %v9991_v60 = vadd.f32 %v3543_v25, %v11418_v20  ;;  %v9994_v41 = vadd.f32 %v3656_v36, %v11418_v20  ;;  %v7605_v25 = vld [vmem:[#allocation2 + $0x24c] ss:$36 sps:$4 sm:$0xff]  }
 0x2df   : > { %5250 = vmatpush1.bf16.msra.mxu0 %v11412_v23  ;;  %5363 = vmatpush1.bf16.msra.mxu1 %v11413_v11  ;;  %v3545_v24 = vpop.f32.mrf.mxu1 }
 0x2e0   : > { %5251 = vmatprep.subr.bf16.mxu0 %v11414_v35  ;;  %5364 = vmatprep.subr.bf16.mxu1 %v11416_v37  ;;  %v3658_v37 = vpop.f32.mrf.mxu0  ;;  %v10002_v36 = vadd.f32 %v3545_v24, %v11418_v20  ;;  %v11420_v24 = vld [vmem:[#allocation31_spill] sm:$0xff] }
 0x2e3   : > { %5252 = vmatpush1.bf16.msra.mxu0 %v11417_v19  ;;  %5365 = vmatpush1.bf16.msra.mxu1 %v11419_v58  ;;  %v10005_v19 = vadd.f32 %v3658_v37, %v11418_v20  ;;  %v3662_v58 = vpop.f32.mrf.mxu0 }
 0x2e4   : > { %5265 = vmatprep.subr.bf16.mxu0 %v7596_v29  ;;  %5378 = vmatprep.subr.bf16.mxu1 %v7599_v5  ;;  %v3549_v29 = vpop.f32.mrf.mxu1  ;;  %v7603_v5 = vld [vmem:[#allocation2 + $0x248] ss:$36 sps:$4 sm:$0xff]   ;;  %v10015_v37 = vadd.f32 %v3662_v58, %v11420_v24  ;;  %v10031_v58 = vld [vmem:[%s10958_s5 + $0x14] ss:$8 sps:$4 sm:$0xff]  }
 0x2e5   : > { %v10012_v48 = vadd.f32 %v3549_v29, %v11420_v24  ;;  %11422 = vst [vmem:[#allocation46_spill] sm:$0xff] %v10031_v58 }
 0x2e6   : > { %v3551_v50 = vpop.f32.mrf.mxu1 }
 0x2e7   : > { %5266 = vmatpush2.bf16.msra.mxu0 %v7594_v17  ;;  %5379 = vmatpush2.bf16.msra.mxu1 %v7597_v15  ;;  %v3664_v17 = vpop.f32.mrf.mxu0  ;;  %v10023_v8 = vadd.f32 %v3551_v50, %v11420_v24 }
 0x2e8   : > { %5267 = vmatprep.subr.bf16.mxu0 %v7602_v42  ;;  %5380 = vmatprep.subr.bf16.mxu1 %v7605_v25  ;;  %v10026_v15 = vadd.f32 %v3664_v17, %v11420_v24  ;;  %v3553_v42 = vpop.f32.mrf.mxu1  ;;  %v11423_v25 = vld [vmem:[#allocation32_spill] sm:$0xff] }
 0x2e9   : > { %v3666_v29 = vpop.f32.mrf.mxu0  ;;  %v10034_v54 = vadd.f32 %v3553_v42, %v11423_v25 }
 0x2ea   : > { %v10037_v3 = vadd.f32 %v3666_v29, %v11423_v25  ;;  %v3555_v62 = vpop.f32.mrf.mxu1 }
 0x2eb   : > { %5268 = vmatpush2.bf16.msra.mxu0 %v7600_v6  ;;  %5381 = vmatpush2.bf16.msra.mxu1 %v7603_v5  ;;  %v3668_v51 = vpop.f32.mrf.mxu0  ;;  %v10044_v44 = vadd.f32 %v3555_v62, %v11423_v25 }
 0x2ec   : > { %v10047_v42 = vadd.f32 %v3668_v51, %v11423_v25  ;;  %v3559_v29 = vpop.f32.mrf.mxu1  ;;  %v11424_v51 = vld [vmem:[#allocation29_spill] sm:$0xff] }
 0x2ed   : > { %v3672_v5 = vpop.f32.mrf.mxu0  ;;  %v10060_v43 = vadd.f32 %v3559_v29, %v11424_v51  ;;  %v10079_v29 = vld [vmem:[%s10958_s5 + $0x24] ss:$8 sps:$4 sm:$0xff]  }
 0x2ee   : > { %5270 = vmatmul.mubr.bf16.vlgmr.msra.gmra.mxu0 %v10020_v26  ;;  %5383 = vmatmul.mubr.bf16.vlgmr.msra.gmra.mxu1 %v10020_v26  ;;  %v10063_v23 = vadd.f32 %v3672_v5, %v11424_v51  ;;  %v3561_v13 = vpop.f32.mrf.mxu1  ;;  %11426 = vst [vmem:[#allocation48_spill] sm:$0xff] %v10079_v29  ;;  %v11427_v5 = vld [vmem:[#allocation30_spill] sm:$0xff] }
 0x2ef   : > { %7098 = vmatprep.mubr.msk.bf16.mxu0 %vm5212_vm1, %v10031_v58  ;;  %7106 = vmatprep.mubr.msk.bf16.mxu1 %vm5212_vm1, %v10031_v58  ;;  %v3674_v40 = vpop.f32.mrf.mxu0  ;;  %v10071_v35 = vadd.f32 %v3561_v13, %v11424_v51 }
 0x2f0   : > { %v10074_v0 = vadd.f32 %v3674_v40, %v11424_v51  ;;  %v3563_v17 = vpop.f32.mrf.mxu1 }
 0x2f1   : > { %v3676_v39 = vpop.f32.mrf.mxu0  ;;  %v10082_v50 = vadd.f32 %v3563_v17, %v11427_v5 }
 0x2f2   : > { %v10085_v62 = vadd.f32 %v3676_v39, %v11427_v5  ;;  %v3565_v21 = vpop.f32.mrf.mxu1 }
 0x2f3   : > { %v3678_v58 = vpop.f32.mrf.mxu0  ;;  %v3566_v51 = vadd.f32 %v3565_v21, %v11427_v5  ;;  %v11428_v21 = vld [vmem:[#allocation37_spill] sm:$0xff] }
 0x2f4   : > { %v3679_v26 = vadd.f32 %v3678_v58, %v11427_v5  ;;  %v3569_v17 = vpop.f32.mrf.mxu1 }
 0x2f5   : > { %v3682_v25 = vpop.f32.mrf.mxu0  ;;  %v3910_v6 = vmax.f32 %v3566_v51, 0.0  ;;  %v3570_v58 = vadd.f32 %v3569_v17, %v11428_v21  ;;  %v11430_v17 = vld [vmem:[#allocation33_spill] sm:$0xff] }
 0x2f6   : > { %5280 = vmatmul.mubr.bf16.gmra.mxu0 %v10068_v9  ;;  %5393 = vmatmul.mubr.bf16.gmra.mxu1 %v10068_v9  ;;  %v3912_v11 = vmax.f32 %v3679_v26, 0.0  ;;  %v3683_v40 = vadd.f32 %v3682_v25, %v11428_v21  ;;  %v3571_v5 = vpop.f32.mrf.mxu1  ;;  %v10106_v9 = vld [vmem:[%s10958_s5 + $0x20] ss:$8 sps:$4 sm:$0xff]  }
 0x2f7   : > { %7099 = vmatprep.mubr.msk.bf16.mxu0 %vm5212_vm1, %v10079_v29  ;;  %7107 = vmatprep.mubr.msk.bf16.mxu1 %vm5212_vm1, %v10079_v29  ;;  %v3684_v24 = vpop.f32.mrf.mxu0  ;;  %11429 = vst [vmem:[#allocation49_spill] sm:$0xff] %v10106_v9  ;;  %v3572_v39 = vadd.f32 %v3571_v5, %v11428_v21  ;;  %v10113_v29 = vld [vmem:[%s10958_s5 + $0x34] ss:$8 sps:$4 sm:$0xff]   ;;  %v3918_v46 = vmax.f32 %v3570_v58, 0.0 }
 0x2f8   : > { %v3685_v13 = vadd.f32 %v3684_v24, %v11428_v21  ;;  %v3573_v51 = vpop.f32.mrf.mxu1  ;;  %v3920_v52 = vmax.f32 %v3683_v40, 0.0 }
 0x2f9   : > { %v3686_v26 = vpop.f32.mrf.mxu0  ;;  %v3574_v25 = vadd.f32 %v3573_v51, %v11430_v17  ;;  %v3919_v14 = vmax.f32 %v3572_v39, 0.0  ;;  %v11431_v39 = vld [vmem:[#allocation12_spill] sm:$0xff] }
 0x2fa   : > { %v3687_v20 = vadd.f32 %v3686_v26, %v11430_v17  ;;  %v3921_v55 = vmax.f32 %v3685_v13, 0.0  ;;  %v3575_v57 = vpop.f32.mrf.mxu1 }
 0x2fb   : > { %v3688_v7 = vpop.f32.mrf.mxu0  ;;  %v3576_v5 = vadd.f32 %v3575_v57, %v11430_v17  ;;  %v3927_v21 = vmax.f32 %v3574_v25, 0.0 }
 0x2fc   : > { %v3689_v24 = vadd.f32 %v3688_v7, %v11430_v17  ;;  %v3725_v33 = vpop.f32.mrf.mxu1  ;;  %v3929_v51 = vmax.f32 %v3687_v20, 0.0  ;;  %v10129_v7 = vld [vmem:[%s10958_s5 + $0x30] ss:$8 sps:$4 sm:$0xff]  }
 0x2fd   : > { %v3928_v58 = vmax.f32 %v3576_v5, 0.0  ;;  %v3726_v13 = vadd.f32 %v3725_v33, %v11431_v39  ;;  %v7797_v59 = vpack.c.bf16 %v3927_v21, %v3918_v46  ;;  %v10136_v39 = vld [vmem:[%s10958_s5 + $0x44] ss:$8 sps:$4 sm:$0xff]  }
 0x2fe   : > { %5290 = vmatmul.mubr.bf16.gmra.mxu0 %v10106_v9  ;;  %5403 = vmatmul.mubr.bf16.gmra.mxu1 %v10106_v9  ;;  %v3930_v40 = vmax.f32 %v3689_v24, 0.0  ;;  %v3727_v57 = vpop.f32.mrf.mxu1  ;;  %v7799_v24 = vpack.c.bf16 %v3929_v51, %v3920_v52  ;;  %v11433_v52 = vmax.f32 %v10074_v0, 0.0  ;;  %v11434_v51 = vmax.f32 %v10060_v43, 0.0 }
 0x2ff   : > { %7100 = vmatprep.mubr.msk.bf16.mxu0 %vm5212_vm1, %v10113_v29  ;;  %7108 = vmatprep.mubr.msk.bf16.mxu1 %vm5212_vm1, %v10113_v29  ;;  %v3796_v26 = vmax.f32 %v3726_v13, 0.0  ;;  %v7798_v20 = vpack.c.bf16 %v3928_v58, %v3919_v14  ;;  %v11437_v0 = vmax.f32 %v10085_v62, 0.0  ;;  %v11438_v43 = vmax.f32 %v10023_v8, 0.0  ;;  %v10172_v57 = vld [vmem:[%s10958_s5 + $0x54] ss:$8 sps:$4 sm:$0xff]  }
 0x300   : > { %v3728_v25 = vpop.f32.mrf.mxu1  ;;  %v7800_v30 = vpack.c.bf16 %v3930_v40, %v3921_v55  ;;  %v7802_v55 = vpack.c.bf16 %v3912_v11, %v11433_v52  ;;  %v11441_v62 = vmax.f32 %v10047_v42, 0.0 }
 0x301   : > { %v7224_v9 = vpack.c.bf16 %v3796_v26, %v3796_v26  ;;  %v3729_v17 = vadd.f32 %v3728_v25, %v9562_v1  ;;  %5463 = vmatprep.subr.bf16.mxu0 %v7798_v20  ;;  %v11432_v1 = vmax.f32 %v10071_v35, 0.0  ;;  %v11436_v35 = vmax.f32 %v10063_v23, 0.0 }
 0x302   : > { %v3730_v5 = vpop.f32.mrf.mxu1  ;;  %5576 = vmatprep.subr.bf16.mxu1 %v7800_v30  ;;  %5464 = vmatpush1.bf16.msra.mxu0 %v7797_v59  ;;  %v11435_v30 = vmax.f32 %v10082_v50, 0.0  ;;  %v11439_v50 = vmax.f32 %v10044_v44, 0.0  ;;  %v11442_v44 = vmax.f32 %v10012_v48, 0.0  ;;  %v11448_v48 = vmax.f32 %v9987_v47, 0.0 }
 0x303   : > { %4384 = vst [vmem:[#allocation2 + $0x20] sm:$0xf] %v7224_v9  ;;  %v3805_v33 = vmax.f32 %v3729_v17, 0.0  ;;  %v7801_v14 = vpack.c.bf16 %v3910_v6, %v11432_v1  ;;  %5577 = vmatpush1.bf16.msra.mxu1 %v7799_v24  ;;  %v7804_v11 = vpack.c.bf16 %v11437_v0, %v11436_v35  ;;  %v11440_v6 = vmax.f32 %v10026_v15, 0.0 }
 0x304   : > { %v3733_v13 = vpop.f32.mrf.mxu1  ;;  %5578 = vmatprep.subr.bf16.mxu1 %v7802_v55  ;;  %v7803_v58 = vpack.c.bf16 %v11435_v30, %v11434_v51  ;;  %v7805_v23 = vpack.c.bf16 %v11439_v50, %v11438_v43  ;;  %v11443_v15 = vmax.f32 %v10034_v54, 0.0  ;;  %v11444_v5 = vmax.f32 %v10015_v37, 0.0 }
 0x305   : > { %v7229_v9 = vpack.c.bf16 %v3805_v33, %v3805_v33  ;;  %v3734_v46 = vadd.f32 %v3733_v13, %v9550_v61  ;;  %5465 = vmatprep.subr.bf16.mxu0 %v7801_v14  ;;  %v10159_v61 = vld [vmem:[%s10958_s5 + $0x40] ss:$8 sps:$4 sm:$0xff]   ;;  %v7806_v40 = vpack.c.bf16 %v11441_v62, %v11440_v6  ;;  %v11445_v24 = vmax.f32 %v10037_v3, 0.0 }
 0x306   : > { %5300 = vmatmul.mubr.bf16.gmra.mxu0 %v10129_v7  ;;  %5413 = vmatmul.mubr.bf16.gmra.mxu1 %v10129_v7  ;;  %v3735_v21 = vpop.f32.mrf.mxu1  ;;  %v7807_v42 = vpack.c.bf16 %v11443_v15, %v11442_v44  ;;  %v11446_v13 = vmax.f32 %v9984_v27, 0.0  ;;  %v11447_v1 = vmax.f32 %v10002_v36, 0.0  ;;  %v11449_v54 = vmax.f32 %v10005_v19, 0.0  ;;  %v11469_v44 = vld [vmem:[#allocation41_spill] sm:$0xff] }
 0x307   : > { %4389 = vst [vmem:[#allocation2 + $0x44] sm:$0xf] %v7229_v9  ;;  %v3814_v17 = vmax.f32 %v3734_v46, 0.0  ;;  %7101 = vmatprep.mubr.msk.bf16.mxu0 %vm5212_vm1, %v10136_v39  ;;  %7109 = vmatprep.mubr.msk.bf16.mxu1 %vm5212_vm1, %v10136_v39  ;;  %v7808_v33 = vpack.c.bf16 %v11445_v24, %v11444_v5  ;;  %v11450_v36 = vmax.f32 %v9977_v38, 0.0  ;;  %v11451_v47 = vmax.f32 %v9991_v60, 0.0  ;;  %v11473_v24 = vld [vmem:[#allocation42_spill] sm:$0xff] }
 0x308   : > { %v3736_v59 = vpop.f32.mrf.mxu1  ;;  %5466 = vmatpush1.bf16.msra.mxu0 %v7803_v58  ;;  %5579 = vmatpush1.bf16.msra.mxu1 %v7804_v11  ;;  %v7809_v14 = vpack.c.bf16 %v11447_v1, %v11446_v13  ;;  %v7810_v52 = vpack.c.bf16 %v11449_v54, %v11448_v48  ;;  %v11452_v19 = vmax.f32 %v9980_v49, 0.0  ;;  %v11453_v46 = vmax.f32 %v9994_v41, 0.0  ;;  %v10222_v58 = vld [vmem:[%s10958_s5 + $0x64] ss:$8 sps:$4 sm:$0xff]   ;;  %v10259_v13 = vld [vmem:[%s10958_s5 + $0x60] ss:$8 sps:$4 sm:$0xff]  }
 0x309   : > { %v7234_v26 = vpack.c.bf16 %v3814_v17, %v3814_v17  ;;  %v3737_v25 = vadd.f32 %v3736_v59, %v9554_v10  ;;  %5467 = vmatprep.subr.bf16.mxu0 %v7805_v23  ;;  %5580 = vmatprep.subr.bf16.mxu1 %v7806_v40  ;;  %v7811_v9 = vpack.c.bf16 %v11451_v47, %v11450_v36  ;;  %v11454_v51 = vmax.f32 %v9946_v4, 0.0  ;;  %v11476_v54 = vld [vmem:[#allocation40_spill] sm:$0xff] }
 0x30a   : > { %v3738_v20 = vpop.f32.mrf.mxu1  ;;  %v7812_v21 = vpack.c.bf16 %v11453_v46, %v11452_v19  ;;  %v11455_v38 = vmax.f32 %v9964_v56, 0.0  ;;  %v11456_v30 = vmax.f32 %v9949_v12, 0.0  ;;  %v11457_v49 = vmax.f32 %v9967_v16, 0.0 }
 0x30b   : > { %4394 = vst [vmem:[#allocation2 + $0x68] sm:$0xf] %v7234_v26  ;;  %v3823_v8 = vmax.f32 %v3737_v25, 0.0  ;;  %v11458_v12 = vmax.f32 %v9928_v22, 0.0  ;;  %v11459_v56 = vmax.f32 %v9952_v45, 0.0  ;;  %v11460_v59 = vmax.f32 %v9931_v34, 0.0 }
 0x30c   : > { %v3741_v10 = vpop.f32.mrf.mxu1  ;;  %5468 = vmatpush1.bf16.msra.mxu0 %v7807_v42  ;;  %5581 = vmatpush1.bf16.msra.mxu1 %v7808_v33  ;;  %v7813_v60 = vpack.c.bf16 %v11455_v38, %v11454_v51  ;;  %v7814_v41 = vpack.c.bf16 %v11457_v49, %v11456_v30  ;;  %v11461_v43 = vmax.f32 %v9955_v31, 0.0  ;;  %v11462_v23 = vmax.f32 %v9872_v53, 0.0  ;;  %v11466_v31 = vld [vmem:[#allocation27_spill] sm:$0xff]  ;;  %v4528_v25 = vld [vmem:[#allocation2 + $0x58] sm:$0xff]  ;;  %v4529_v20 = vld [vmem:[#allocation2 + $0x60] sm:$0xff] }
 0x30d   : > { %v7239_v3 = vpack.c.bf16 %v3823_v8, %v3823_v8  ;;  %v3742_v37 = vadd.f32 %v3741_v10, %v9546_v63  ;;  %5469 = vmatprep.subr.bf16.mxu0 %v7809_v14  ;;  %5582 = vmatprep.subr.bf16.mxu1 %v7810_v52  ;;  %v10209_v63 = vld [vmem:[%s10958_s5 + $0x50] ss:$8 sps:$4 sm:$0xff]   ;;  %v7815_v16 = vpack.c.bf16 %v11459_v56, %v11458_v12  ;;  %v11463_v6 = vmax.f32 %v9898_v32, 0.0  ;;  %v11467_v32 = vld [vmem:[#allocation7_spill] sm:$0xff] }
 0x30e   : > { %5310 = vmatmul.mubr.bf16.gmra.mxu0 %v10159_v61  ;;  %5423 = vmatmul.mubr.bf16.gmra.mxu1 %v10159_v61  ;;  %v3743_v55 = vpop.f32.mrf.mxu1  ;;  %v7816_v50 = vpack.c.bf16 %v11461_v43, %v11460_v59  ;;  %v11464_v22 = vmax.f32 %v9875_v18, 0.0  ;;  %v11465_v45 = vmax.f32 %v9901_v28, 0.0  ;;  %v11468_v18 = vmax.f32 %v11467_v32, 0.0  ;;  %v11471_v42 = vld [vmem:[#allocation8_spill] sm:$0xff]  ;;  %v11475_v14 = vld [vmem:[#allocation9_spill] sm:$0xff] }
 0x30f   : > { %7102 = vmatprep.mubr.msk.bf16.mxu0 %vm5212_vm1, %v10172_v57  ;;  %4399 = vst [vmem:[#allocation2 + $0x8c] sm:$0xf] %v7239_v3  ;;  %v3832_v27 = vmax.f32 %v3742_v37, 0.0  ;;  %7110 = vmatprep.mubr.msk.bf16.mxu1 %vm5212_vm1, %v10172_v57  ;;  %v7817_v62 = vpack.c.bf16 %v11463_v6, %v11462_v23  ;;  %v11470_v28 = vmax.f32 %v11469_v44, 0.0  ;;  %v11472_v5 = vmax.f32 %v11471_v42, 0.0  ;;  %v11477_v55 = vld [vmem:[#allocation28_spill] sm:$0xff] }
 0x310   : > { %v3744_v17 = vpop.f32.mrf.mxu1  ;;  %5470 = vmatpush1.bf16.msra.mxu0 %v7811_v9  ;;  %5583 = vmatpush1.bf16.msra.mxu1 %v7812_v21  ;;  %v7818_v40 = vpack.c.bf16 %v11465_v45, %v11464_v22  ;;  %v11474_v33 = vmax.f32 %v11473_v24, 0.0  ;;  %v7021_v48 = vcombine.high %v4528_v25, %v11475_v14  ;;  %v7023_v52 = vcombine.high %v4529_v20, %v11476_v54  ;;  %v10266_v3 = vld [vmem:[%s10958_s5 + $0x74] ss:$8 sps:$4 sm:$0xff]   ;;  %v10279_v30 = vld [vmem:[%s10958_s5 + $0x70] ss:$8 sps:$4 sm:$0xff]  }
 0x311   : > { %v7244_v35 = vpack.c.bf16 %v3832_v27, %v3832_v27  ;;  %v3745_v0 = vadd.f32 %v3744_v17, %v9548_v2  ;;  %5471 = vmatprep.subr.bf16.mxu0 %v7813_v60  ;;  %5584 = vmatprep.subr.bf16.mxu1 %v7814_v41  ;;  %v7819_v15 = vpack.c.bf16 %v11470_v28, %v11468_v18  ;;  %v7629_v21 = vld [vmem:[#allocation2 + $0x14] ss:$36 sps:$4 sm:$0xff]   ;;  %v7632_v17 = vld [vmem:[#allocation2 + $0x1c] ss:$36 sps:$4 sm:$0xff]   ;;  %v10289_v45 = vld [vmem:[%s10958_s5 + $0x4] ss:$8 sps:$4 sm:$0xff]  }
 0x312   : > { %v3746_v11 = vpop.f32.mrf.mxu1  ;;  %v7820_v10 = vpack.c.bf16 %v11474_v33, %v11472_v5  ;;  %v7020_v9 = vcombine.low %v4528_v25, %v11475_v14  ;;  %v7022_v19 = vcombine.low %v4529_v20, %v11476_v54  ;;  %v11478_v38 = vld [vmem:[#allocation25_spill] sm:$0xff]  ;;  %v11481_v18 = vld [vmem:[#allocation32_spill] sm:$0xff]  ;;  %v11485_v14 = vld [vmem:[#allocation46_spill] sm:$0xff] }
 0x313   : > { %4404 = vst [vmem:[#allocation2 + $0xb0] sm:$0xf] %v7244_v35  ;;  %v3841_v4 = vmax.f32 %v3745_v0, 0.0  ;;  %v7638_v41 = vld [vmem:[#allocation2 + $0x29c] ss:$36 sps:$4 sm:$0xff]   ;;  %v11483_v24 = vld [vmem:[#allocation44_spill] sm:$0xff] }
 0x314   : > { %v3749_v2 = vpop.f32.mrf.mxu1  ;;  %5472 = vmatpush1.bf16.msra.mxu0 %v7815_v16  ;;  %5585 = vmatpush1.bf16.msra.mxu1 %v7816_v50  ;;  %v7641_v35 = vld [vmem:[#allocation2 + $0x2a4] ss:$36 sps:$4 sm:$0xff]   ;;  %v7627_v11 = vld [vmem:[#allocation2 + $0x10] ss:$36 sps:$4 sm:$0xff]   ;;  %v7636_v43 = vld [vmem:[#allocation2 + $0x298] ss:$36 sps:$4 sm:$0xff]  }
 0x315   : > { %v7249_v34 = vpack.c.bf16 %v3841_v4, %v3841_v4  ;;  %v3750_v26 = vadd.f32 %v3749_v2, %v11466_v31  ;;  %5473 = vmatprep.subr.bf16.mxu0 %v7817_v62  ;;  %5586 = vmatprep.subr.bf16.mxu1 %v7818_v40  ;;  %v7630_v4 = vld [vmem:[#allocation2 + $0x18] ss:$36 sps:$4 sm:$0xff]   ;;  %v11479_v16 = vld [vmem:[#allocation26_spill] sm:$0xff] }
 0x316   : > { %5320 = vmatmul.mubr.bf16.gmra.mxu0 %v10209_v63  ;;  %5433 = vmatmul.mubr.bf16.gmra.mxu1 %v10209_v63  ;;  %v3751_v8 = vpop.f32.mrf.mxu1  ;;  %v7639_v50 = vld [vmem:[#allocation2 + $0x2a0] ss:$36 sps:$4 sm:$0xff]   ;;  %v7644_v23 = vld [vmem:[#allocation2 + $0x254] ss:$36 sps:$4 sm:$0xff]  }
 0x317   : > { %7103 = vmatprep.mubr.msk.bf16.mxu0 %vm5212_vm1, %v10222_v58  ;;  %4409 = vst [vmem:[#allocation2 + $0xd4] sm:$0xf] %v7249_v34  ;;  %v3850_v53 = vmax.f32 %v3750_v26, 0.0  ;;  %7111 = vmatprep.mubr.msk.bf16.mxu1 %vm5212_vm1, %v10222_v58  ;;  %v7647_v6 = vld [vmem:[#allocation2 + $0x25c] ss:$36 sps:$4 sm:$0xff]   ;;  %v11480_v34 = vld [vmem:[#allocation31_spill] sm:$0xff] }
 0x318   : > { %v3752_v1 = vpop.f32.mrf.mxu1  ;;  %5474 = vmatpush1.bf16.msra.mxu0 %v7819_v15  ;;  %5587 = vmatpush1.bf16.msra.mxu1 %v7820_v10  ;;  %v7642_v26 = vld [vmem:[#allocation2 + $0x250] ss:$36 sps:$4 sm:$0xff]   ;;  %v7645_v25 = vld [vmem:[#allocation2 + $0x258] ss:$36 sps:$4 sm:$0xff]   ;;  %v11482_v15 = vmov 0  }
 0x319   : > { %v7254_v37 = vpack.c.bf16 %v3850_v53, %v3850_v53  ;;  %v3753_v27 = vadd.f32 %v3752_v1, %v11477_v55  ;;  %5475 = vmatprep.subr.bf16.mxu0 %v7021_v48  ;;  %5588 = vmatprep.subr.bf16.mxu1 %v7023_v52  ;;  %v11484_v10 = vld [vmem:[#allocation29_spill] sm:$0xff]  ;;  %v11486_v55 = vld [vmem:[#allocation30_spill] sm:$0xff] }
 0x31a   : > { %v3754_v36 = vpop.f32.mrf.mxu1 }
 0x31b   : > { %4414 = vst [vmem:[#allocation2 + $0xf8] sm:$0xf] %v7254_v37  ;;  %v3859_v47 = vmax.f32 %v3753_v27, 0.0 }
 0x31c   : > { %v3757_v46 = vpop.f32.mrf.mxu1  ;;  %5476 = vmatpush1.bf16.msra.mxu0 %v7020_v9  ;;  %5589 = vmatpush1.bf16.msra.mxu1 %v7022_v19  ;;  %v11487_v19 = vld [vmem:[#allocation47_spill] sm:$0xff] }
 0x31d   : > { %v7259_v51 = vpack.c.bf16 %v3859_v47, %v3859_v47  ;;  %v3758_v60 = vadd.f32 %v3757_v46, %v11478_v38  ;;  %5477 = vmatprep.subr.bf16.mxu0 %v7629_v21  ;;  %5590 = vmatprep.subr.bf16.mxu1 %v7632_v17  ;;  %v11488_v21 = vld [vmem:[#allocation37_spill] sm:$0xff] }
 0x31e   : > { %5330 = vmatmul.mubr.bf16.gmra.mxu0 %v10259_v13  ;;  %5443 = vmatmul.mubr.bf16.gmra.mxu1 %v10259_v13  ;;  %v3759_v49 = vpop.f32.mrf.mxu1 }
 0x31f   : > { %7104 = vmatprep.mubr.msk.bf16.mxu0 %vm5212_vm1, %v10266_v3  ;;  %4419 = vst [vmem:[#allocation2 + $0x11c] sm:$0xf] %v7259_v51  ;;  %v3868_v0 = vmax.f32 %v3758_v60, 0.0  ;;  %7112 = vmatprep.mubr.msk.bf16.mxu1 %vm5212_vm1, %v10266_v3  ;;  %v11489_v51 = vld [vmem:[#allocation48_spill] sm:$0xff] }
 0x320   : > { %v3760_v12 = vpop.f32.mrf.mxu1  ;;  %5478 = vmatpush1.bf16.msra.mxu0 %v7627_v11  ;;  %5591 = vmatpush1.bf16.msra.mxu1 %v7630_v4 }
 0x321   : > { %v7264_v56 = vpack.c.bf16 %v3868_v0, %v3868_v0  ;;  %v3761_v59 = vadd.f32 %v3760_v12, %v11479_v16  ;;  %5491 = vmatprep.subr.bf16.mxu0 %v7638_v41  ;;  %5604 = vmatprep.subr.bf16.mxu1 %v7641_v35  ;;  %v11490_v35 = vld [vmem:[#allocation33_spill] sm:$0xff] }
 0x322   : > { %v3762_v2 = vpop.f32.mrf.mxu1  ;;  %v11491_v12 = vld [vmem:[#allocation49_spill] sm:$0xff] }
 0x323   : > { %4424 = vst [vmem:[#allocation2 + $0x140] sm:$0xf] %v7264_v56  ;;  %v3877_v62 = vmax.f32 %v3761_v59, 0.0 }
 0x324   : > { %v3765_v22 = vpop.f32.mrf.mxu1  ;;  %5492 = vmatpush2.bf16.msra.mxu0 %v7636_v43  ;;  %5605 = vmatpush2.bf16.msra.mxu1 %v7639_v50 }
 0x325   : > { %v7269_v40 = vpack.c.bf16 %v3877_v62, %v3877_v62  ;;  %v3766_v31 = vadd.f32 %v3765_v22, %v11480_v34  ;;  %5493 = vmatprep.subr.bf16.mxu0 %v7644_v23  ;;  %5606 = vmatprep.subr.bf16.mxu1 %v7647_v6  ;;  %v7653_v23 = vld [vmem:[#allocation2 + $0xb0] ss:$36 sps:$4 sm:$0xff]   ;;  %v7654_v6 = vld [vmem:[#allocation2 + $0x68] ss:$36 sps:$4 sm:$0xff]   ;;  %v7655_v62 = vld [vmem:[#allocation2 + $0x20] ss:$36 sps:$4 sm:$0xff]   ;;  %v10364_v34 = vpop.permute.xlu1 %4673 }
 0x326   : > { %5340 = vmatmul.mubr.bf16.gmra.mxu0 %v10279_v30  ;;  %5453 = vmatmul.mubr.bf16.gmra.mxu1 %v10279_v30  ;;  %v3767_v20 = vpop.f32.mrf.mxu1  ;;  %v7652_v2 = vld [vmem:[#allocation2 + $0xf8] ss:$36 sps:$4 sm:$0xff]   ;;  %v7656_v22 = vld [vmem:[#allocation2 + $0x2a8] ss:$36 sps:$4 sm:$0xff]   ;;  %11492 = vst [vmem:[#allocation45_spill] sm:$0xff] %v10364_v34 }
 0x327   : > { %7113 = vmatprep.mubr.msk.bf16.mxu0 %vm5212_vm1, %v10289_v45  ;;  %4429 = vst [vmem:[#allocation2 + $0x164] sm:$0xf] %v7269_v40  ;;  %v3886_v8 = vmax.f32 %v3766_v31, 0.0  ;;  %7121 = vmatprep.mubr.msk.bf16.mxu1 %vm5212_vm1, %v10289_v45  ;;  %v7657_v40 = vld [vmem:[#allocation2 + $0x260] ss:$36 sps:$4 sm:$0xff]   ;;  %v10371_v31 = vpop.permute.xlu0 %4677 }
 0x328   : > { %v3768_v53 = vpop.f32.mrf.mxu1  ;;  %5494 = vmatpush2.bf16.msra.mxu0 %v7642_v26  ;;  %5607 = vmatpush2.bf16.msra.mxu1 %v7645_v25 }
 0x329   : > { %v7274_v32 = vpack.c.bf16 %v3886_v8, %v3886_v8  ;;  %v3769_v44 = vadd.f32 %v3768_v53, %v11481_v18  ;;  %5689 = vmatprep.subr.bf16.mxu0 %v11482_v15 }
 0x32a   : > { %v3770_v28 = vpop.f32.mrf.mxu1 }
 0x32b   : > { %4434 = vst [vmem:[#allocation2 + $0x188] sm:$0xf] %v7274_v32  ;;  %v3895_v42 = vmax.f32 %v3769_v44, 0.0  ;;  %v10378_v25 = vpop.permute.xlu0 %4657 }
 0x32c   : > { %v3773_v5 = vpop.f32.mrf.mxu1  ;;  %11495 = vst [vmem:[#allocation39_spill] sm:$0xff] %v10378_v25 }
 0x32d   : > { %v7279_v33 = vpack.c.bf16 %v3895_v42, %v3895_v42  ;;  %v3774_v1 = vadd.f32 %v3773_v5, %v11484_v10 }
 0x32e   : > { %5496 = vmatmul.mubr.bf16.vlgmr.msra.gmra.mxu0 %v11483_v24  ;;  %5609 = vmatmul.mubr.bf16.vlgmr.msra.gmra.mxu1 %v11483_v24  ;;  %v3775_v48 = vpop.f32.mrf.mxu1  ;;  %v7651_v50 = vld [vmem:[#allocation2 + $0x140] ss:$36 sps:$4 sm:$0xff]  }
 0x32f   : > { %7114 = vmatprep.mubr.msk.bf16.mxu0 %vm5212_vm1, %v11485_v14  ;;  %7122 = vmatprep.mubr.msk.bf16.mxu1 %vm5212_vm1, %v11485_v14  ;;  %4439 = vst [vmem:[#allocation2 + $0x1ac] sm:$0xf] %v7279_v33  ;;  %v3904_v54 = vmax.f32 %v3774_v1, 0.0 }
 0x330   : > { %v3776_v52 = vpop.f32.mrf.mxu1 }
 0x331   : > { %v7284_v37 = vpack.c.bf16 %v3904_v54, %v3904_v54  ;;  %v3777_v27 = vadd.f32 %v3776_v52, %v11486_v55 }
 0x332   : > { %v3778_v36 = vpop.f32.mrf.mxu1 }
 0x333   : > { %4444 = vst [vmem:[#allocation2 + $0x1d0] sm:$0xf] %v7284_v37  ;;  %v3913_v47 = vmax.f32 %v3777_v27, 0.0 }
 0x334   : > { %v3781_v9 = vpop.f32.mrf.mxu1 }
 0x335   : > { %v7289_v46 = vpack.c.bf16 %v3913_v47, %v3913_v47  ;;  %v3782_v17 = vadd.f32 %v3781_v9, %v11488_v21 }
 0x336   : > { %5506 = vmatmul.mubr.bf16.gmra.mxu0 %v11487_v19  ;;  %5619 = vmatmul.mubr.bf16.gmra.mxu1 %v11487_v19  ;;  %v3783_v38 = vpop.f32.mrf.mxu1  ;;  %v7650_v43 = vld [vmem:[#allocation2 + $0x188] ss:$36 sps:$4 sm:$0xff]  }
 0x337   : > { %7115 = vmatprep.mubr.msk.bf16.mxu0 %vm5212_vm1, %v11489_v51  ;;  %7123 = vmatprep.mubr.msk.bf16.mxu1 %vm5212_vm1, %v11489_v51  ;;  %4449 = vst [vmem:[#allocation2 + $0x1f4] sm:$0xf] %v7289_v46  ;;  %v3922_v60 = vmax.f32 %v3782_v17, 0.0 }
 0x338   : > { %v3784_v49 = vpop.f32.mrf.mxu1 }
 0x339   : > { %v7294_v41 = vpack.c.bf16 %v3922_v60, %v3922_v60  ;;  %v3785_v0 = vadd.f32 %v3784_v49, %v11490_v35 }
 0x33a   : > { %v3786_v11 = vpop.f32.mrf.mxu1 }
 0x33b   : > { %4454 = vst [vmem:[#allocation2 + $0x218] sm:$0xf] %v7294_v41  ;;  %v3931_v4 = vmax.f32 %v3785_v0, 0.0 }
 0x33d   : > { %v7299_v56 = vpack.c.bf16 %v3931_v4, %v3931_v4 }
 0x33e   : > { %5516 = vmatmul.mubr.bf16.gmra.mxu0 %v11491_v12  ;;  %5629 = vmatmul.mubr.bf16.gmra.mxu1 %v11491_v12  ;;  %v7649_v59 = vld [vmem:[#allocation2 + $0x1d0] ss:$36 sps:$4 sm:$0xff]  }
 0x33f   : > { %7116 = vmatprep.mubr.msk.bf16.mxu0 %vm5212_vm1, %v10113_v29  ;;  %7124 = vmatprep.mubr.msk.bf16.mxu1 %vm5212_vm1, %v10113_v29  ;;  %4459 = vst [vmem:[#allocation2 + $0x23c] sm:$0xf] %v7299_v56 }
 0x346   : > { %5526 = vmatmul.mubr.bf16.gmra.mxu0 %v10129_v7  ;;  %5639 = vmatmul.mubr.bf16.gmra.mxu1 %v10129_v7  ;;  %v7648_v16 = vld [vmem:[#allocation2 + $0x218] ss:$36 sps:$4 sm:$0xff]  }
 0x347   : > { %7117 = vmatprep.mubr.msk.bf16.mxu0 %vm5212_vm1, %v10136_v39  ;;  %7125 = vmatprep.mubr.msk.bf16.mxu1 %vm5212_vm1, %v10136_v39 }
 0x348   : > { %5690 = vmatpush1.bf16.msra.mxu0 %v7648_v16 }
 0x349   : > { %5691 = vmatprep.subr.bf16.mxu0 %v11482_v15 }
 0x34c   : > { %5692 = vmatpush1.bf16.msra.mxu0 %v7649_v59 }
 0x34d   : > { %5693 = vmatprep.subr.bf16.mxu0 %v11482_v15 }
 0x34e   : > { %5649 = vmatmul.mubr.bf16.gmra.mxu1 %v10159_v61  ;;  %5536 = vmatmul.mubr.bf16.gmra.mxu0 %v10159_v61 }
 0x34f   : > { %7118 = vmatprep.mubr.msk.bf16.mxu0 %vm5212_vm1, %v10172_v57  ;;  %7126 = vmatprep.mubr.msk.bf16.mxu1 %vm5212_vm1, %v10172_v57 }
 0x350   : > { %5694 = vmatpush1.bf16.msra.mxu0 %v7650_v43 }
 0x351   : > { %5695 = vmatprep.subr.bf16.mxu0 %v11482_v15 }
 0x354   : > { %5696 = vmatpush1.bf16.msra.mxu0 %v7651_v50 }
 0x355   : > { %5697 = vmatprep.subr.bf16.mxu0 %v11482_v15 }
 0x356   : > { %5659 = vmatmul.mubr.bf16.gmra.mxu1 %v10209_v63  ;;  %5546 = vmatmul.mubr.bf16.gmra.mxu0 %v10209_v63 }
 0x357   : > { %7119 = vmatprep.mubr.msk.bf16.mxu0 %vm5212_vm1, %v10222_v58  ;;  %7127 = vmatprep.mubr.msk.bf16.mxu1 %vm5212_vm1, %v10222_v58 }
 0x358   : > { %5698 = vmatpush1.bf16.msra.mxu0 %v7652_v2 }
 0x359   : > { %5699 = vmatprep.subr.bf16.mxu0 %v11482_v15 }
 0x35c   : > { %5700 = vmatpush1.bf16.msra.mxu0 %v7653_v23 }
 0x35d   : > { %5701 = vmatprep.subr.bf16.mxu0 %v11482_v15 }
 0x35e   : > { %5669 = vmatmul.mubr.bf16.gmra.mxu1 %v10259_v13  ;;  %5556 = vmatmul.mubr.bf16.gmra.mxu0 %v10259_v13 }
 0x35f   : > { %7120 = vmatprep.mubr.msk.bf16.mxu0 %vm5212_vm1, %v10266_v3  ;;  %7128 = vmatprep.mubr.msk.bf16.mxu1 %vm5212_vm1, %v10266_v3 }
 0x360   : > { %5702 = vmatpush1.bf16.msra.mxu0 %v7654_v6 }
 0x361   : > { %5703 = vmatprep.subr.bf16.mxu0 %v11482_v15 }
 0x364   : > { %5704 = vmatpush1.bf16.msra.mxu0 %v7655_v62 }
 0x365   : > { %5717 = vmatprep.subr.bf16.mxu0 %v11482_v15 }
 0x366   : > { %5679 = vmatmul.mubr.bf16.gmra.mxu1 %v10279_v30  ;;  %5566 = vmatmul.mubr.bf16.gmra.mxu0 %v10279_v30 }
 0x367   : > { %7129 = vmatprep.mubr.msk.bf16.mxu0 %vm5212_vm1, %v10289_v45  ;;  %6039 = vmatprep.mubr.bf16.mxu1 %v11482_v15  ;;  %v10369_v45 = vpop.permute.xlu1 %4665 }
 0x368   : > { %5718 = vmatpush2.bf16.msra.mxu0 %v7656_v22  ;;  %11493 = vst [vmem:[#allocation36_spill] sm:$0xff] %v10369_v45 }
 0x369   : > { %5719 = vmatprep.subr.bf16.mxu0 %v11482_v15 }
 0x36b   : > { %v10376_v26 = vpop.permute.xlu1 %4669 }
 0x36c   : > { %5720 = vmatpush2.bf16.msra.mxu0 %v7657_v40  ;;  %11494 = vst [vmem:[#allocation35_spill] sm:$0xff] %v10376_v26 }
 0x36f   : > { %5722 = vmatmul.mubr.bf16.vlgmr.msra.gmra.mxu0 %v11483_v24  ;;  %v10381_v20 = vpop.permute.xlu1 %4661 }
 0x370   : > { %7130 = vmatprep.mubr.msk.bf16.mxu0 %vm5212_vm1, %v11485_v14  ;;  %11496 = vst [vmem:[#allocation34_spill] sm:$0xff] %v10381_v20 }
 0x373   : > { %v10387_v8 = vpop.permute.xlu1 %4653 }
 0x377   : > { %5730 = vmatmul.mubr.bf16.gmra.mxu0 %v11487_v19 }
 0x378   : > { %7131 = vmatprep.mubr.msk.bf16.mxu0 %vm5212_vm1, %v11489_v51 }
 0x37f   : > { %5738 = vmatmul.mubr.bf16.gmra.mxu0 %v11491_v12 }
 0x380   : > { %7132 = vmatprep.mubr.msk.bf16.mxu0 %vm5212_vm1, %v10113_v29  ;;  %v10385_v29 = vpop.permute.xlu0 %4649 }
 0x381   : > { %11497 = vst [vmem:[#allocation38_spill] sm:$0xff] %v10385_v29 }
 0x387   : > { %5746 = vmatmul.mubr.bf16.gmra.mxu0 %v10129_v7  ;;  %v10390_v7 = vpop.permute.xlu0 %4641 }
 0x388   : > { %7133 = vmatprep.mubr.msk.bf16.mxu0 %vm5212_vm1, %v10136_v39  ;;  %11498 = vst [vmem:[#allocation51_spill] sm:$0xff] %v10390_v7  ;;  %v10394_v39 = vpop.permute.xlu1 %4645 }
 0x389   : > { %11499 = vst [vmem:[#allocation6_spill] sm:$0xff] %v10394_v39 }
 0x38b   : > { %v10396_v53 = vpop.permute.xlu0 %4633 }
 0x38c   : > { %11500 = vst [vmem:[#allocation20_spill] sm:$0xff] %v10396_v53 }
 0x38f   : > { %5754 = vmatmul.mubr.bf16.gmra.mxu0 %v10159_v61  ;;  %v10401_v61 = vpop.permute.xlu1 %4637 }
 0x390   : > { %7134 = vmatprep.mubr.msk.bf16.mxu0 %vm5212_vm1, %v10172_v57  ;;  %11501 = vst [vmem:[#allocation50_spill] sm:$0xff] %v10401_v61  ;;  %v10403_v57 = vpop.permute.xlu0 %4625 }
 0x397   : > { %5762 = vmatmul.mubr.bf16.gmra.mxu0 %v10209_v63  ;;  %v10406_v63 = vpop.permute.xlu1 %4629 }
 0x398   : > { %7135 = vmatprep.mubr.msk.bf16.mxu0 %vm5212_vm1, %v10222_v58  ;;  %11502 = vst [vmem:[#allocation22_spill] sm:$0xff] %v10406_v63  ;;  %v10409_v58 = vpop.permute.xlu0 %4617 }
 0x39b   : > { %v10412_v28 = vpop.permute.xlu1 %4621 }
 0x39f   : > { %5770 = vmatmul.mubr.bf16.gmra.mxu0 %v10259_v13 }
 0x3a0   : > { %7136 = vmatprep.mubr.msk.bf16.mxu0 %vm5212_vm1, %v10266_v3 }
 0x3a7   : > { %5778 = vmatmul.mubr.bf16.gmra.mxu0 %v10279_v30 }
 0x3a8   : > { %6121 = vmatprep.mubr.bf16.mxu0 %v11482_v15 }
 0x3ae   : > { %v5271_v32 = vpop.f32.mrf.mxu0  ;;  %v5384_v18 = vpop.f32.mrf.mxu1 }
 0x3af   : > { %v5272_v44 = vadd.f32 %v5271_v32, %v10409_v58  ;;  %v5385_v3 = vadd.f32 %v5384_v18, %v10409_v58 }
 0x3b0   : > { %v5273_v13 = vpop.f32.mrf.mxu0  ;;  %v5386_v42 = vpop.f32.mrf.mxu1 }
 0x3b1   : > { %v5387_v24 = vadd.f32 %v5386_v42, %v10409_v58  ;;  %v5274_v33 = vadd.f32 %v5273_v13, %v10409_v58  ;;  %v5786_v1 = vmax.f32 %v5272_v44, 0.0  ;;  %v5788_v54 = vmax.f32 %v5385_v3, 0.0 }
 0x3b2   : > { %v5275_v5 = vpop.f32.mrf.mxu0  ;;  %v5388_v30 = vpop.f32.mrf.mxu1 }
 0x3b3   : > { %v5276_v10 = vadd.f32 %v5275_v5, %v10412_v28  ;;  %v5389_v48 = vadd.f32 %v5388_v30, %v10412_v28  ;;  %v5789_v47 = vmax.f32 %v5387_v24, 0.0  ;;  %v5787_v21 = vmax.f32 %v5274_v33, 0.0 }
 0x3b4   : > { %v5277_v14 = vpop.f32.mrf.mxu0  ;;  %v5390_v52 = vpop.f32.mrf.mxu1 }
 0x3b5   : > { %v5278_v37 = vadd.f32 %v5277_v14, %v10412_v28  ;;  %v5795_v55 = vmax.f32 %v5276_v10, 0.0  ;;  %v5391_v36 = vadd.f32 %v5390_v52, %v10412_v28  ;;  %v5797_v9 = vmax.f32 %v5389_v48, 0.0 }
 0x3b6   : > { %v5281_v27 = vpop.f32.mrf.mxu0  ;;  %v5394_v19 = vpop.f32.mrf.mxu1 }
 0x3b7   : > { %v5282_v46 = vadd.f32 %v5281_v27, %v10403_v57  ;;  %v5796_v17 = vmax.f32 %v5278_v37, 0.0  ;;  %v10422_v51 = vpack.c.bf16 %v5795_v55, %v5786_v1  ;;  %v5395_v60 = vadd.f32 %v5394_v19, %v10403_v57 }
 0x3b8   : > { %v5283_v38 = vpop.f32.mrf.mxu0  ;;  %v5798_v49 = vmax.f32 %v5391_v36, 0.0  ;;  %v10425_v41 = vpack.c.bf16 %v5797_v9, %v5788_v54  ;;  %v5396_v35 = vpop.f32.mrf.mxu1 }
 0x3b9   : > { %11503 = vst [vmem:[#allocation24_spill] sm:$0xff] %v10422_v51  ;;  %v10427_v0 = vpack.c.bf16 %v5796_v17, %v5787_v21  ;;  %v5397_v4 = vadd.f32 %v5396_v35, %v10403_v57  ;;  %v5284_v16 = vadd.f32 %v5283_v38, %v10403_v57  ;;  %v5804_v43 = vmax.f32 %v5282_v46, 0.0 }
 0x3ba   : > { %11504 = vst [vmem:[#allocation18_spill] sm:$0xff] %v10425_v41  ;;  %v5285_v11 = vpop.f32.mrf.mxu0  ;;  %v10430_v12 = vpack.c.bf16 %v5798_v49, %v5789_v47  ;;  %v5398_v56 = vpop.f32.mrf.mxu1  ;;  %v5806_v23 = vmax.f32 %v5395_v60, 0.0 }
 0x3bb   : > { %11505 = vst [vmem:[#allocation23_spill] sm:$0xff] %v10427_v0  ;;  %v5286_v59 = vadd.f32 %v5285_v11, %v10406_v63  ;;  %v5399_v2 = vadd.f32 %v5398_v56, %v10406_v63  ;;  %v5807_v18 = vmax.f32 %v5397_v4, 0.0  ;;  %v5805_v3 = vmax.f32 %v5284_v16, 0.0 }
 0x3bc   : > { %11506 = vst [vmem:[#allocation19_spill] sm:$0xff] %v10430_v12  ;;  %v5287_v50 = vpop.f32.mrf.mxu0  ;;  %v5400_v6 = vpop.f32.mrf.mxu1 }
 0x3bd   : > { %v5288_v62 = vadd.f32 %v5287_v50, %v10406_v63  ;;  %v5813_v22 = vmax.f32 %v5286_v59, 0.0  ;;  %v5401_v32 = vadd.f32 %v5400_v6, %v10406_v63  ;;  %v5815_v44 = vmax.f32 %v5399_v2, 0.0 }
 0x3be   : > { %v10436_v40 = vpop.f32.mrf.mxu0  ;;  %v5404_v13 = vpop.f32.mrf.mxu1 }
 0x3bf   : > { %v5814_v42 = vmax.f32 %v5288_v62, 0.0  ;;  %v10439_v5 = vpack.c.bf16 %v5813_v22, %v5804_v43  ;;  %v5405_v24 = vadd.f32 %v5404_v13, %v10396_v53  ;;  %v5816_v33 = vmax.f32 %v5401_v32, 0.0 }
 0x3c0   : > { %v10442_v30 = vpop.f32.mrf.mxu0  ;;  %v10444_v10 = vpack.c.bf16 %v5815_v44, %v5806_v23  ;;  %v5406_v1 = vpop.f32.mrf.mxu1 }
 0x3c1   : > { %v10446_v14 = vpack.c.bf16 %v5814_v42, %v5805_v3  ;;  %v5407_v48 = vadd.f32 %v5406_v1, %v10396_v53  ;;  %v10451_v52 = vpack.c.bf16 %v5816_v33, %v5807_v18  ;;  %v5824_v55 = vmax.f32 %v5405_v24, 0.0 }
 0x3c2   : > { %11507 = vst [vmem:[#allocation15_spill] sm:$0xff] %v10444_v10  ;;  %v10449_v54 = vpop.f32.mrf.mxu0  ;;  %v5408_v37 = vpop.f32.mrf.mxu1 }
 0x3c3   : > { %11508 = vst [vmem:[#allocation11_spill] sm:$0xff] %v10451_v52  ;;  %v5409_v27 = vadd.f32 %v5408_v37, %v10401_v61  ;;  %v5825_v9 = vmax.f32 %v5407_v48, 0.0  ;;  %v10511_v12 = vadd.f32 %v10449_v54, %v10401_v61 }
 0x3c4   : > { %v10454_v36 = vpop.f32.mrf.mxu0  ;;  %v5410_v47 = vpop.f32.mrf.mxu1 }
 0x3c5   : > { %v5833_v19 = vmax.f32 %v5409_v27, 0.0  ;;  %v5411_v46 = vadd.f32 %v5410_v47, %v10401_v61  ;;  %v10515_v10 = vadd.f32 %v10454_v36, %v10401_v61 }
 0x3c6   : > { %v10457_v21 = vpop.f32.mrf.mxu0  ;;  %v5414_v17 = vpop.f32.mrf.mxu1 }
 0x3c7   : > { %v10459_v38 = vpack.c.bf16 %v5833_v19, %v5824_v55  ;;  %v5834_v60 = vmax.f32 %v5411_v46, 0.0  ;;  %v5415_v49 = vadd.f32 %v5414_v17, %v10390_v7  ;;  %v10519_v52 = vadd.f32 %v10457_v21, %v10390_v7 }
 0x3c8   : > { %v5303_v35 = vpop.f32.mrf.mxu0  ;;  %v5416_v11 = vpop.f32.mrf.mxu1 }
 0x3c9   : > { %11509 = vst [vmem:[#allocation21_spill] sm:$0xff] %v10459_v38  ;;  %v10462_v4 = vpack.c.bf16 %v5834_v60, %v5825_v9  ;;  %v5417_v56 = vadd.f32 %v5416_v11, %v10390_v7  ;;  %v5842_v43 = vmax.f32 %v5415_v49, 0.0 }
 0x3ca   : > { %v5305_v16 = vpop.f32.mrf.mxu0  ;;  %v5418_v59 = vpop.f32.mrf.mxu1 }
 0x3cb   : > { %11510 = vst [vmem:[#allocation10_spill] sm:$0xff] %v10462_v4  ;;  %v5419_v50 = vadd.f32 %v5418_v59, %v10394_v39  ;;  %v5843_v6 = vmax.f32 %v5417_v56, 0.0  ;;  %v10531_v36 = vadd.f32 %v5305_v16, %v10394_v39 }
 0x3cc   : > { %v5307_v2 = vpop.f32.mrf.mxu0  ;;  %v5420_v23 = vpop.f32.mrf.mxu1 }
 0x3cd   : > { %v5851_v62 = vmax.f32 %v5419_v50, 0.0  ;;  %v5421_v22 = vadd.f32 %v5420_v23, %v10394_v39  ;;  %v10534_v21 = vadd.f32 %v5307_v2, %v10394_v39 }
 0x3ce   : > { %v5311_v32 = vpop.f32.mrf.mxu0  ;;  %v5424_v18 = vpop.f32.mrf.mxu1 }
 0x3cf   : > { %v10467_v44 = vpack.c.bf16 %v5851_v62, %v5842_v43  ;;  %v5852_v13 = vmax.f32 %v5421_v22, 0.0  ;;  %v5425_v3 = vadd.f32 %v5424_v18, %v10385_v29 }
 0x3d0   : > { %v5313_v42 = vpop.f32.mrf.mxu0  ;;  %v5426_v24 = vpop.f32.mrf.mxu1 }
 0x3d1   : > { %11511 = vst [vmem:[#allocation43_spill] sm:$0xff] %v10467_v44  ;;  %v10470_v33 = vpack.c.bf16 %v5852_v13, %v5843_v6  ;;  %v5427_v1 = vadd.f32 %v5426_v24, %v10385_v29  ;;  %v5860_v55 = vmax.f32 %v5425_v3, 0.0 }
 0x3d2   : > { %v5315_v48 = vpop.f32.mrf.mxu0  ;;  %v5428_v37 = vpop.f32.mrf.mxu1 }
 0x3d3   : > { %11512 = vst [vmem:[#allocation14_spill] sm:$0xff] %v10470_v33  ;;  %v5429_v27 = vadd.f32 %v5428_v37, %v10387_v8  ;;  %v5861_v19 = vmax.f32 %v5427_v1, 0.0 }
 0x3d4   : > { %v10474_v47 = vpop.f32.mrf.mxu0  ;;  %v5430_v9 = vpop.f32.mrf.mxu1 }
 0x3d5   : > { %v5869_v46 = vmax.f32 %v5429_v27, 0.0  ;;  %v5431_v17 = vadd.f32 %v5430_v9, %v10387_v8 }
 0x3d6   : > { %v5321_v60 = vpop.f32.mrf.mxu0  ;;  %v10477_v49 = vpop.f32.mrf.mxu1 }
 0x3d7   : > { %11513 = vst [vmem:[#allocation17_spill] sm:$0xff] %v10477_v49  ;;  %v10479_v11 = vpack.c.bf16 %v5869_v46, %v5860_v55  ;;  %v5870_v56 = vmax.f32 %v5431_v17, 0.0  ;;  %v10501_v17 = vadd.f32 %v10436_v40, %v10396_v53  ;;  %v10549_v2 = vadd.f32 %v5321_v60, %v10378_v25 }
 0x3d8   : > { %v5323_v59 = vpop.f32.mrf.mxu0  ;;  %v10481_v43 = vpop.f32.mrf.mxu1 }
 0x3d9   : > { %11514 = vst [vmem:[#allocation13_spill] sm:$0xff] %v10479_v11  ;;  %v10483_v50 = vpack.c.bf16 %v5870_v56, %v5861_v19  ;;  %v10505_v56 = vadd.f32 %v10442_v30, %v10396_v53  ;;  %v10523_v30 = vadd.f32 %v5303_v35, %v10390_v7  ;;  %v10540_v35 = vadd.f32 %v5313_v42, %v10385_v29 }
 0x3da   : > { %v5325_v23 = vpop.f32.mrf.mxu0  ;;  %v10485_v6 = vpop.f32.mrf.mxu1  ;;  %v10553_v42 = vadd.f32 %v5315_v48, %v10387_v8 }
 0x3db   : > { %11515 = vst [vmem:[#allocation16_spill] sm:$0xff] %v10483_v50  ;;  %11516 = vst [vmem:[#allocation12_spill] sm:$0xff] %v10485_v6 }
 0x3dc   : > { %v5327_v62 = vpop.f32.mrf.mxu0  ;;  %v10487_v22 = vpop.f32.mrf.mxu1 }
 0x3de   : > { %v5331_v18 = vpop.f32.mrf.mxu0  ;;  %v10489_v13 = vpop.f32.mrf.mxu1 }
 0x3e0   : > { %v5333_v3 = vpop.f32.mrf.mxu0  ;;  %v10491_v24 = vpop.f32.mrf.mxu1 }
 0x3e2   : > { %v5335_v1 = vpop.f32.mrf.mxu0  ;;  %v10493_v37 = vpop.f32.mrf.mxu1 }
 0x3e4   : > { %v5337_v55 = vpop.f32.mrf.mxu0  ;;  %v10495_v27 = vpop.f32.mrf.mxu1 }
 0x3e5   : > { %v5338_v4 = vadd.f32 %v5337_v55, %v10376_v26  ;;  %v5332_v55 = vadd.f32 %v5331_v18, %v10369_v45 }
 0x3e6   : > { %v5341_v9 = vpop.f32.mrf.mxu0  ;;  %v10497_v19 = vpop.f32.mrf.mxu1 }
 0x3e7   : > { %v5342_v40 = vadd.f32 %v5341_v9, %v10364_v34  ;;  %v10537_v9 = vadd.f32 %v5311_v32, %v10385_v29  ;;  %v5328_v32 = vadd.f32 %v5327_v62, %v10381_v20  ;;  %v5904_v29 = vmax.f32 %v5338_v4, 0.0 }
 0x3e8   : > { %v5343_v46 = vpop.f32.mrf.mxu0  ;;  %v10507_v41 = vpop.f32.mrf.mxu1  ;;  %v5894_v51 = vmax.f32 %v5332_v55, 0.0  ;;  %v5318_v4 = vadd.f32 %v10474_v47, %v10387_v8  ;;  %v7880_v47 = vmov 3  }
 0x3e9   : > { %v5344_v44 = vadd.f32 %v5343_v46, %v10364_v34  ;;  %v5334_v46 = vadd.f32 %v5333_v3, %v10369_v45  ;;  %v5912_v39 = vmax.f32 %v5342_v40, 0.0  ;;  %7442 = vset.pattern.permute.xlu0 %v7880_v47 }
 0x3ea   : > { %v5345_v38 = vpop.f32.mrf.mxu0  ;;  %v10528_v53 = vpop.f32.mrf.mxu1 }
 0x3eb   : > { %v5346_v54 = vadd.f32 %v5345_v38, %v10371_v31  ;;  %v5336_v38 = vadd.f32 %v5335_v1, %v10376_v26  ;;  %v5913_v18 = vmax.f32 %v5344_v44, 0.0  ;;  %v5324_v1 = vadd.f32 %v5323_v59, %v10378_v25 }
 0x3ec   : > { %v5347_v61 = vpop.f32.mrf.mxu0  ;;  %v10546_v16 = vpop.f32.mrf.mxu1  ;;  %v5895_v62 = vmax.f32 %v5334_v46, 0.0  ;;  %v5886_v44 = vmax.f32 %v5328_v32, 0.0 }
 0x3ed   : > { %v5348_v7 = vadd.f32 %v5347_v61, %v10371_v31  ;;  %v5921_v33 = vmax.f32 %v5346_v54, 0.0  ;;  %v5326_v61 = vadd.f32 %v5325_v23, %v10381_v20  ;;  %v5903_v40 = vmax.f32 %v5336_v38, 0.0 }
 0x3ee   : > { %v5497_v3 = vpop.f32.mrf.mxu0  ;;  %v5610_v50 = vpop.f32.mrf.mxu1  ;;  %v5985_v59 = vpack.c.bf16 %v5904_v29, %v5895_v62  ;;  %v5858_v62 = vmax.f32 %v10537_v9, 0.0 }
 0x3ef   : > { %v5922_v11 = vmax.f32 %v5348_v7, 0.0  ;;  %v5498_v15 = vadd.f32 %v5497_v3, %v10409_v58  ;;  %v5611_v60 = vadd.f32 %v5610_v50, %v10409_v58  ;;  %v5876_v7 = vmax.f32 %v10549_v2, 0.0 }
 0x3f0   : > { %v5499_v6 = vpop.f32.mrf.mxu0  ;;  %v5612_v48 = vpop.f32.mrf.mxu1  ;;  %v5993_v49 = vpack.c.bf16 %v5921_v33, %v5912_v39  ;;  %v5877_v2 = vmax.f32 %v5324_v1, 0.0  ;;  %v5885_v32 = vmax.f32 %v5326_v61, 0.0  ;;  %v5984_v39 = vpack.c.bf16 %v5903_v40, %v5894_v51 }
 0x3f1   : > { %v5994_v54 = vpack.c.bf16 %v5922_v11, %v5913_v18  ;;  %v5500_v23 = vadd.f32 %v5499_v6, %v10409_v58  ;;  %v5613_v3 = vadd.f32 %v5612_v48, %v10409_v58  ;;  %v5790_v55 = vmax.f32 %v5498_v15, 0.0  ;;  %v7712_v18 = vld [vmem:[%s10960_s7] sm:$0xff] }
 0x3f2   : > { %v5501_v0 = vpop.f32.mrf.mxu0  ;;  %v5614_v50 = vpop.f32.mrf.mxu1  ;;  %v5792_v46 = vmax.f32 %v5611_v60, 0.0  ;;  %6004 = vperm.xlu0 %7442, %v7712_v18   ;;  %v5868_v1 = vmax.f32 %v5318_v4, 0.0  ;;  %v5976_v61 = vpack.c.bf16 %v5886_v44, %v5877_v2 }
 0x3f3   : > { %6007 = vmatprep.subr.bf16.mxu1 %v5994_v54  ;;  %v5502_v11 = vadd.f32 %v5501_v0, %v10412_v28  ;;  %v5615_v38 = vadd.f32 %v5614_v50, %v10412_v28  ;;  %v5793_v29 = vmax.f32 %v5613_v3, 0.0  ;;  %v5791_v51 = vmax.f32 %v5500_v23, 0.0 }
 0x3f4   : > { %6008 = vmatpush1.bf16.msra.mxu1 %v5993_v49  ;;  %v5503_v33 = vpop.f32.mrf.mxu0  ;;  %v5616_v6 = vpop.f32.mrf.mxu1  ;;  %v5975_v23 = vpack.c.bf16 %v5885_v32, %v5876_v7  ;;  %v5841_v32 = vmax.f32 %v10523_v30, 0.0 }
 0x3f5   : > { %6009 = vmatprep.subr.bf16.mxu1 %v5985_v59  ;;  %v5799_v15 = vmax.f32 %v5502_v11, 0.0  ;;  %v5801_v60 = vmax.f32 %v5615_v38, 0.0  ;;  %v5504_v0 = vadd.f32 %v5503_v33, %v10412_v28  ;;  %v5617_v49 = vadd.f32 %v5616_v6, %v10412_v28 }
 0x3f6   : > { %v5507_v40 = vpop.f32.mrf.mxu0  ;;  %v5620_v54 = vpop.f32.mrf.mxu1  ;;  %v5859_v11 = vmax.f32 %v10540_v35, 0.0  ;;  %v5867_v38 = vmax.f32 %v10553_v42, 0.0  ;;  %v5850_v35 = vmax.f32 %v10534_v21, 0.0 }
 0x3f7   : > { %v10572_v48 = vpack.c.bf16 %v5799_v15, %v5790_v55  ;;  %v10574_v59 = vpack.c.bf16 %v5801_v60, %v5792_v46  ;;  %v5800_v3 = vmax.f32 %v5504_v0, 0.0  ;;  %v5802_v50 = vmax.f32 %v5617_v49, 0.0 }
 0x3f8   : > { %6010 = vmatpush1.bf16.msra.mxu1 %v5984_v39  ;;  %v5508_v47 = vadd.f32 %v5507_v40, %v10403_v57  ;;  %v5621_v9 = vadd.f32 %v5620_v54, %v10403_v57  ;;  %v5509_v4 = vpop.f32.mrf.mxu0  ;;  %v5622_v44 = vpop.f32.mrf.mxu1  ;;  %v5840_v39 = vmax.f32 %v10519_v52, 0.0  ;;  %v5967_v33 = vpack.c.bf16 %v5868_v1, %v5859_v11 }
 0x3f9   : > { %11517 = vst [vmem:[#allocation27_spill] sm:$0xff] %v10572_v48  ;;  %11518 = vst [vmem:[#allocation7_spill] sm:$0xff] %v10574_v59  ;;  %6011 = vmatprep.subr.bf16.mxu1 %v5976_v61  ;;  %v10580_v2 = vpack.c.bf16 %v5800_v3, %v5791_v51  ;;  %v10582_v55 = vpack.c.bf16 %v5802_v50, %v5793_v29  ;;  %v5623_v46 = vadd.f32 %v5622_v44, %v10403_v57 }
 0x3fa   : > { %v5510_v42 = vadd.f32 %v5509_v4, %v10403_v57  ;;  %v5511_v6 = vpop.f32.mrf.mxu0  ;;  %v5624_v18 = vpop.f32.mrf.mxu1  ;;  %v5808_v15 = vmax.f32 %v5508_v47, 0.0  ;;  %v5810_v60 = vmax.f32 %v5621_v9, 0.0  ;;  %v5849_v29 = vmax.f32 %v10531_v36, 0.0 }
 0x3fb   : > { %11519 = vst [vmem:[#allocation41_spill] sm:$0xff] %v10580_v2  ;;  %11520 = vst [vmem:[#allocation8_spill] sm:$0xff] %v10582_v55  ;;  %v5512_v0 = vadd.f32 %v5511_v6, %v10406_v63  ;;  %v5625_v7 = vadd.f32 %v5624_v18, %v10406_v63  ;;  %v5966_v49 = vpack.c.bf16 %v5867_v38, %v5858_v62  ;;  %v5811_v52 = vmax.f32 %v5623_v46, 0.0 }
 0x3fc   : > { %6012 = vmatpush1.bf16.msra.mxu1 %v5975_v23  ;;  %v5513_v61 = vpop.f32.mrf.mxu0  ;;  %v5626_v21 = vpop.f32.mrf.mxu1  ;;  %v5832_v3 = vmax.f32 %v10515_v10, 0.0  ;;  %v5958_v50 = vpack.c.bf16 %v5850_v35, %v5841_v32  ;;  %v5809_v11 = vmax.f32 %v5510_v42, 0.0  ;;  %v5822_v4 = vmax.f32 %v10501_v17, 0.0 }
 0x3fd   : > { %6013 = vmatprep.subr.bf16.mxu1 %v5967_v33  ;;  %v5817_v1 = vmax.f32 %v5512_v0, 0.0  ;;  %v5819_v51 = vmax.f32 %v5625_v7, 0.0  ;;  %v5514_v40 = vadd.f32 %v5513_v61, %v10406_v63  ;;  %v5627_v54 = vadd.f32 %v5626_v21, %v10406_v63 }
 0x3fe   : > { %v10595_v47 = vpop.f32.mrf.mxu0  ;;  %v10597_v30 = vpop.f32.mrf.mxu1  ;;  %v5823_v44 = vmax.f32 %v10505_v56, 0.0  ;;  %v5831_v46 = vmax.f32 %v10511_v12, 0.0  ;;  %v5957_v35 = vpack.c.bf16 %v5849_v29, %v5840_v39  ;;  %v5457_v17 = vadd.f32 %v10507_v41, %v10364_v34 }
 0x3ff   : > { %v10599_v36 = vpack.c.bf16 %v5817_v1, %v5808_v15  ;;  %v10601_v62 = vpack.c.bf16 %v5819_v51, %v5810_v60  ;;  %v5818_v38 = vmax.f32 %v5514_v40, 0.0  ;;  %v5820_v9 = vmax.f32 %v5627_v54, 0.0 }
 0x400   : > { %6014 = vmatpush1.bf16.msra.mxu1 %v5966_v49  ;;  %v10605_v23 = vpop.f32.mrf.mxu0  ;;  %v10607_v10 = vpop.f32.mrf.mxu1  ;;  %v5949_v6 = vpack.c.bf16 %v5832_v3, %v5823_v44  ;;  %v5461_v56 = vadd.f32 %v10546_v16, %v10371_v31  ;;  %v5948_v39 = vpack.c.bf16 %v5831_v46, %v5822_v4  ;;  %v5455_v32 = vadd.f32 %v10497_v19, %v10364_v34  ;;  %v11528_v4 = vld [vmem:[#allocation12_spill] sm:$0xff] }
 0x401   : > { %11521 = vst [vmem:[#allocation42_spill] sm:$0xff] %v10599_v36  ;;  %11522 = vst [vmem:[#allocation9_spill] sm:$0xff] %v10601_v62  ;;  %6015 = vmatprep.subr.bf16.mxu1 %v5958_v50  ;;  %v10610_v33 = vpack.c.bf16 %v5818_v38, %v5809_v11  ;;  %v10612_v42 = vpack.c.bf16 %v5820_v9, %v5811_v52  ;;  %v5459_v29 = vadd.f32 %v10528_v53, %v10371_v31  ;;  %v11526_v38 = vld [vmem:[#allocation23_spill] sm:$0xff]  ;;  %v11543_v36 = vld [vmem:[#allocation10_spill] sm:$0xff] }
 0x402   : > { %v10614_v18 = vpop.f32.mrf.mxu0  ;;  %v10616_v15 = vpop.f32.mrf.mxu1  ;;  %v5447_v41 = vadd.f32 %v10491_v24, %v10369_v45  ;;  %v5451_v16 = vadd.f32 %v10495_v27, %v10376_v26  ;;  %v5915_v49 = vmax.f32 %v5457_v17, 0.0  ;;  %v5924_v52 = vmax.f32 %v5461_v56, 0.0  ;;  %v10671_v17 = vld [vmem:[%s10959_s6] sm:$0xf] }
 0x403   : > { %11523 = vst [vmem:[#allocation40_spill] sm:$0xff] %v10610_v33  ;;  %11524 = vst [vmem:[#allocation28_spill] sm:$0xff] %v10612_v42  ;;  %v5437_v19 = vadd.f32 %v10481_v43, %v10378_v25  ;;  %v5445_v24 = vadd.f32 %v10489_v13, %v10369_v45  ;;  %v5449_v27 = vadd.f32 %v10493_v37, %v10376_v26  ;;  %v5914_v51 = vmax.f32 %v5455_v32, 0.0  ;;  %v11527_v13 = vld [vmem:[#allocation17_spill] sm:$0xff]  ;;  %v11544_v62 = vld [vmem:[#allocation50_spill] sm:$0xff] }
 0x404   : > { %11525 = vst [vmem:[#allocation25_spill] sm:$0xff] %v10616_v15  ;;  %6016 = vmatpush1.bf16.msra.mxu1 %v5957_v35  ;;  %v10622_v60 = vpop.f32.mrf.mxu0  ;;  %v10624_v12 = vpop.f32.mrf.mxu1  ;;  %v5923_v40 = vmax.f32 %v5459_v29, 0.0  ;;  %v5897_v54 = vmax.f32 %v5447_v41, 0.0  ;;  %v5906_v3 = vmax.f32 %v5451_v16, 0.0  ;;  %v5996_v43 = vpack.c.bf16 %v5924_v52, %v5915_v49 }
 0x405   : > { %6017 = vmatprep.subr.bf16.mxu1 %v5949_v6  ;;  %v5435_v9 = vadd.f32 %v11527_v13, %v10378_v25  ;;  %v5896_v44 = vmax.f32 %v5445_v24, 0.0  ;;  %v5905_v46 = vmax.f32 %v5449_v27, 0.0  ;;  %v11529_v6 = vld [vmem:[#allocation24_spill] sm:$0xff]  ;;  %v5879_v56 = vmax.f32 %v5437_v19, 0.0 }
 0x406   : > { %v10626_v0 = vpop.f32.mrf.mxu0  ;;  %v10628_v7 = vpop.f32.mrf.mxu1  ;;  %v5987_v32 = vpack.c.bf16 %v5906_v3, %v5897_v54 }
 0x407   : > { %v5878_v49 = vmax.f32 %v5435_v9, 0.0  ;;  %v5986_v24 = vpack.c.bf16 %v5905_v46, %v5896_v44  ;;  %v11531_v44 = vld [vmem:[#allocation16_spill] sm:$0xff] }
 0x408   : > { %6018 = vmatpush1.bf16.msra.mxu1 %v5948_v39  ;;  %v10638_v61 = vpop.f32.mrf.mxu0  ;;  %v10640_v21 = vpop.f32.mrf.mxu1 }
 0x409   : > { %6019 = vmatprep.subr.bf16.mxu1 %v10446_v14  ;;  %v5441_v14 = vadd.f32 %v10487_v22, %v10381_v20  ;;  %v5995_v22 = vpack.c.bf16 %v5923_v40, %v5914_v51  ;;  %v11530_v51 = vmov 0  }
 0x40a   : > { %v10645_v1 = vpop.f32.mrf.mxu0  ;;  %v10647_v53 = vpop.f32.mrf.mxu1 }
 0x40b   : > { %v5888_v39 = vmax.f32 %v5441_v14, 0.0 }
 0x40c   : > { %6020 = vmatpush1.bf16.msra.mxu1 %v10439_v5  ;;  %v10656_v50 = vpop.f32.mrf.mxu0  ;;  %v10658_v11 = vpop.f32.mrf.mxu1  ;;  %v5439_v5 = vadd.f32 %v11528_v4, %v10381_v20 }
 0x40d   : > { %6021 = vmatprep.subr.bf16.mxu1 %v11526_v38  ;;  %v5978_v40 = vpack.c.bf16 %v5888_v39, %v5879_v56  ;;  %v11532_v56 = vld [vmem:[#allocation13_spill] sm:$0xff] }
 0x40e   : > { %v10663_v37 = vpop.f32.mrf.mxu1  ;;  %v5537_v35 = vpop.f32.mrf.mxu0  ;;  %v5887_v52 = vmax.f32 %v5439_v5, 0.0 }
 0x410   : > { %6022 = vmatpush1.bf16.msra.mxu1 %v11529_v6  ;;  %v5652_v29 = vpop.f32.mrf.mxu1  ;;  %v5539_v41 = vpop.f32.mrf.mxu0  ;;  %v5977_v54 = vpack.c.bf16 %v5887_v52, %v5878_v49  ;;  %v11534_v49 = vld [vmem:[#allocation20_spill] sm:$0xff] }
 0x411   : > { %6048 = vmatprep.subr.bf16.mxu1 %v5996_v43  ;;  %v10686_v52 = vadd.f32 %v10607_v10, %v11534_v49  ;;  %v10695_v2 = vadd.f32 %v10595_v47, %v11534_v49  ;;  %v10703_v10 = vadd.f32 %v10605_v23, %v11534_v49  ;;  %v10712_v47 = vadd.f32 %v10624_v12, %v11544_v62  ;;  %v11549_v12 = vld [vmem:[#allocation6_spill] sm:$0xff] }
 0x412   : > { %v10673_v16 = vpop.f32.mrf.mxu1  ;;  %v10676_v27 = vpop.f32.mrf.mxu0 }
 0x413   : > { %6040 = vmatmul.mubr.bf16.vlgmr.msra.gmra.mxu1 %v10671_v17  ;;  %11535 = vst [vmem:[#allocation26_spill] sm:$0xff] %v10686_v52  ;;  %11539 = vst [vmem:[#allocation32_spill] sm:$0xff] %v10695_v2 }
 0x414   : > { %6049 = vmatpush1.bf16.msra.mxu1 %v5995_v22  ;;  %6080 = vmatprep.mubr.bf16.mxu1 %v11530_v51  ;;  %v5656_v38 = vpop.f32.mrf.mxu1  ;;  %v10679_v19 = vpop.f32.mrf.mxu0  ;;  %11541 = vst [vmem:[#allocation29_spill] sm:$0xff] %v10703_v10  ;;  %11545 = vst [vmem:[#allocation46_spill] sm:$0xff] %v10712_v47 }
 0x415   : > { %6050 = vmatprep.subr.bf16.mxu1 %v5987_v32  ;;  %v11533_v32 = vld [vmem:[#allocation14_spill] sm:$0xff]  ;;  %v10751_v52 = vadd.f32 %v5656_v38, %v10387_v8 }
 0x416   : > { %v5660_v14 = vpop.f32.mrf.mxu1  ;;  %v5547_v3 = vpop.f32.mrf.mxu0 }
 0x418   : > { %6051 = vmatpush1.bf16.msra.mxu1 %v5986_v24  ;;  %v5662_v43 = vpop.f32.mrf.mxu1  ;;  %v5549_v13 = vpop.f32.mrf.mxu0 }
 0x419   : > { %6052 = vmatprep.subr.bf16.mxu1 %v5978_v40  ;;  %v11536_v40 = vld [vmem:[#allocation51_spill] sm:$0xff]  ;;  %v10719_v33 = vadd.f32 %v5662_v43, %v10378_v25  ;;  %v10736_v43 = vadd.f32 %v10658_v11, %v11549_v12  ;;  %v10754_v11 = vadd.f32 %v5547_v3, %v10378_v25 }
 0x41a   : > { %v5664_v9 = vpop.f32.mrf.mxu1  ;;  %v5551_v4 = vpop.f32.mrf.mxu0  ;;  %v10690_v48 = vadd.f32 %v10640_v21, %v11536_v40 }
 0x41b   : > { %v10769_v3 = vadd.f32 %v5551_v4, %v10381_v20 }
 0x41c   : > { %6053 = vmatpush1.bf16.msra.mxu1 %v5977_v54  ;;  %v5666_v5 = vpop.f32.mrf.mxu1  ;;  %v5553_v46 = vpop.f32.mrf.mxu0  ;;  %11537 = vst [vmem:[#allocation31_spill] sm:$0xff] %v10690_v48 }
 0x41d   : > { %6054 = vmatprep.subr.bf16.mxu1 %v11531_v44  ;;  %v11538_v44 = vld [vmem:[#allocation43_spill] sm:$0xff]  ;;  %v10775_v10 = vadd.f32 %v5666_v5, %v10381_v20 }
 0x41e   : > { %v5670_v22 = vpop.f32.mrf.mxu1  ;;  %v5557_v6 = vpop.f32.mrf.mxu0 }
 0x420   : > { %6055 = vmatpush1.bf16.msra.mxu1 %v11532_v56  ;;  %v5672_v39 = vpop.f32.mrf.mxu1  ;;  %v5559_v24 = vpop.f32.mrf.mxu0  ;;  %v10699_v56 = vadd.f32 %v10597_v30, %v11534_v49  ;;  %v10716_v30 = vadd.f32 %v10626_v0, %v11536_v40  ;;  %v10732_v49 = vadd.f32 %v10656_v50, %v11549_v12 }
 0x421   : > { %6056 = vmatprep.subr.bf16.mxu1 %v11533_v32  ;;  %v11542_v32 = vld [vmem:[#allocation38_spill] sm:$0xff]  ;;  %v5673_v38 = vadd.f32 %v5672_v39, %v10369_v45 }
 0x422   : > { %v5674_v54 = vpop.f32.mrf.mxu1  ;;  %v5561_v59 = vpop.f32.mrf.mxu0  ;;  %11540 = vst [vmem:[#allocation44_spill] sm:$0xff] %v10699_v56  ;;  %v10706_v55 = vadd.f32 %v5652_v29, %v11542_v32  ;;  %11546 = vst [vmem:[#allocation30_spill] sm:$0xff] %v10716_v30  ;;  %v10723_v29 = vadd.f32 %v10628_v7, %v11536_v40  ;;  %v10739_v42 = vadd.f32 %v5537_v35, %v11542_v32  ;;  %v11552_v56 = vld [vmem:[#allocation15_spill] sm:$0xff] }
 0x423   : > { %v10743_v7 = vadd.f32 %v10663_v37, %v11542_v32  ;;  %v10757_v35 = vadd.f32 %v5660_v14, %v10378_v25  ;;  %v11551_v37 = vld [vmem:[#allocation11_spill] sm:$0xff]  ;;  %v10772_v14 = vadd.f32 %v5553_v46, %v10381_v20  ;;  %v5901_v30 = vmax.f32 %v5673_v38, 0.0 }
 0x424   : > { %6057 = vmatpush1.bf16.msra.mxu1 %v11538_v44  ;;  %v5676_v21 = vpop.f32.mrf.mxu1  ;;  %v5563_v23 = vpop.f32.mrf.mxu0  ;;  %11547 = vst [vmem:[#allocation47_spill] sm:$0xff] %v10723_v29 }
 0x425   : > { %6058 = vmatprep.subr.bf16.mxu1 %v11543_v36  ;;  %v10727_v36 = vadd.f32 %v10638_v61, %v11536_v40  ;;  %v10746_v61 = vadd.f32 %v5539_v41, %v11542_v32  ;;  %v11550_v40 = vld [vmem:[#allocation21_spill] sm:$0xff]  ;;  %v10761_v41 = vadd.f32 %v5549_v13, %v10378_v25  ;;  %v10778_v13 = vadd.f32 %v5670_v22, %v10369_v45 }
 0x426   : > { %v5680_v0 = vpop.f32.mrf.mxu1  ;;  %v5567_v44 = vpop.f32.mrf.mxu0  ;;  %v10781_v32 = vadd.f32 %v5557_v6, %v10369_v45  ;;  %v5564_v46 = vadd.f32 %v5563_v23, %v10376_v26  ;;  %v11553_v6 = vld [vmem:[#allocation19_spill] sm:$0xff]  ;;  %v5675_v23 = vadd.f32 %v5674_v54, %v10376_v26 }
 0x427   : > { %11548 = vst [vmem:[#allocation37_spill] sm:$0xff] %v10727_v36  ;;  %v5681_v5 = vadd.f32 %v5680_v0, %v10364_v34 }
 0x428   : > { %6059 = vmatpush1.bf16.msra.mxu1 %v11550_v40  ;;  %v5682_v2 = vpop.f32.mrf.mxu1  ;;  %v10765_v40 = vadd.f32 %v5664_v9, %v10381_v20  ;;  %v5569_v50 = vpop.f32.mrf.mxu0  ;;  %v5677_v9 = vadd.f32 %v5676_v21, %v10376_v26  ;;  %v5560_v21 = vadd.f32 %v5559_v24, %v10369_v45  ;;  %v5908_v24 = vmax.f32 %v5564_v46, 0.0 }
 0x429   : > { %6060 = vmatprep.subr.bf16.mxu1 %v11551_v37  ;;  %v5683_v39 = vadd.f32 %v5682_v2, %v10364_v34  ;;  %v5570_v22 = vadd.f32 %v5569_v50, %v10364_v34  ;;  %v5568_v2 = vadd.f32 %v5567_v44, %v10364_v34  ;;  %v5918_v38 = vmax.f32 %v5681_v5, 0.0 }
 0x42a   : > { %v5684_v37 = vpop.f32.mrf.mxu1  ;;  %v5571_v25 = vpop.f32.mrf.mxu0  ;;  %v5910_v36 = vmax.f32 %v5677_v9, 0.0  ;;  %v5892_v34 = vmax.f32 %v10775_v10, 0.0  ;;  %v5544_v10 = vadd.f32 %v10679_v19, %v10387_v8  ;;  %v5881_v19 = vmax.f32 %v10761_v41, 0.0 }
 0x42b   : > { %v5685_v4 = vadd.f32 %v5684_v37, %v10371_v31  ;;  %v5572_v20 = vadd.f32 %v5571_v25, %v10371_v31  ;;  %v5919_v25 = vmax.f32 %v5683_v39, 0.0  ;;  %v5917_v45 = vmax.f32 %v5570_v22, 0.0 }
 0x42c   : > { %6061 = vmatpush1.bf16.msra.mxu1 %v11552_v56  ;;  %v5686_v48 = vpop.f32.mrf.mxu1  ;;  %v5573_v63 = vpop.f32.mrf.mxu0  ;;  %v5562_v56 = vadd.f32 %v5561_v59, %v10376_v26  ;;  %v5916_v59 = vmax.f32 %v5568_v2, 0.0  ;;  %v5909_v26 = vmax.f32 %v5675_v23, 0.0  ;;  %v5991_v46 = vpack.c.bf16 %v5910_v36, %v5901_v30 }
 0x42d   : > { %6062 = vmatprep.subr.bf16.mxu1 %v11553_v6  ;;  %v5687_v37 = vadd.f32 %v5686_v48, %v10371_v31  ;;  %v5927_v0 = vmax.f32 %v5685_v4, 0.0  ;;  %v5574_v50 = vadd.f32 %v5573_v63, %v10371_v31  ;;  %v5925_v29 = vmax.f32 %v5572_v20, 0.0  ;;  %v11554_v6 = vld [vmem:[#allocation18_spill] sm:$0xff] }
 0x42e   : > { %v5900_v48 = vmax.f32 %v10778_v13, 0.0  ;;  %v5899_v4 = vmax.f32 %v5560_v21, 0.0  ;;  %v5898_v20 = vmax.f32 %v10781_v32, 0.0  ;;  %v5907_v39 = vmax.f32 %v5562_v56, 0.0 }
 0x42f   : > { %v5928_v47 = vmax.f32 %v5687_v37, 0.0  ;;  %v5926_v44 = vmax.f32 %v5574_v50, 0.0  ;;  %v5723_v54 = vpop.f32.mrf.mxu0  ;;  %v5999_v63 = vpack.c.bf16 %v5927_v0, %v5918_v38  ;;  %v5997_v5 = vpack.c.bf16 %v5925_v29, %v5916_v59 }
 0x430   : > { %6063 = vmatpush1.bf16.msra.mxu1 %v11554_v6  ;;  %v5989_v13 = vpack.c.bf16 %v5908_v24, %v5899_v4  ;;  %v5724_v21 = vadd.f32 %v5723_v54, %v10409_v58  ;;  %v5655_v32 = vadd.f32 %v10673_v16, %v10387_v8  ;;  %v5891_v29 = vmax.f32 %v10765_v40, 0.0  ;;  %v11558_v54 = vld [vmem:[#allocation46_spill] sm:$0xff]  ;;  %v11559_v4 = vld [vmem:[#allocation47_spill] sm:$0xff] }
 0x431   : > { %v6000_v15 = vpack.c.bf16 %v5928_v47, %v5919_v25  ;;  %v5998_v9 = vpack.c.bf16 %v5926_v44, %v5917_v45  ;;  %v5725_v22 = vpop.f32.mrf.mxu0  ;;  %v5890_v47 = vmax.f32 %v10772_v14, 0.0  ;;  %v5542_v45 = vadd.f32 %v10676_v27, %v10387_v8 }
 0x432   : > { %v5990_v58 = vpack.c.bf16 %v5909_v26, %v5900_v48  ;;  %v5880_v27 = vmax.f32 %v10754_v11, 0.0  ;;  %v5889_v14 = vmax.f32 %v10769_v3, 0.0  ;;  %v11555_v16 = vmax.f32 %v10719_v33, 0.0 }
 0x433   : > { %6081 = vmatmul.mubr.bf16.vlgmr.msra.gmra.mxu1 %v10671_v17  ;;  %6130 = vmatprep.subr.bf16.mxu1 %v6000_v15  ;;  %v5874_v15 = vmax.f32 %v10751_v52, 0.0  ;;  %v5726_v30 = vpop.f32.mrf.mxu0  ;;  %v5988_v2 = vpack.c.bf16 %v5907_v39, %v5898_v20  ;;  %v5872_v37 = vmax.f32 %v5544_v10, 0.0  ;;  %v5980_v56 = vpack.c.bf16 %v5890_v47, %v5881_v19  ;;  %v11563_v10 = vld [vmem:[#allocation31_spill] sm:$0xff]  ;;  %v11565_v19 = vld [vmem:[#allocation44_spill] sm:$0xff] }
 0x434   : > { %6162 = vmatprep.mubr.bf16.mxu1 %v11530_v51  ;;  %6089 = vmatprep.subr.bf16.mxu0 %v5998_v9  ;;  %v5882_v51 = vmax.f32 %v10757_v35, 0.0  ;;  %v5727_v36 = vadd.f32 %v5726_v30, %v10412_v28  ;;  %v5982_v52 = vpack.c.bf16 %v5892_v34, %v11555_v16  ;;  %v5794_v23 = vmax.f32 %v5724_v21, 0.0 }
 0x435   : > { %6131 = vmatpush1.bf16.msra.mxu1 %v5999_v63  ;;  %6090 = vmatpush1.bf16.msra.mxu0 %v5997_v5  ;;  %v5728_v35 = vpop.f32.mrf.mxu0  ;;  %v5532_v26 = vadd.f32 %v10645_v1, %v11549_v12  ;;  %v5645_v28 = vadd.f32 %v10647_v53, %v11549_v12  ;;  %v5856_v11 = vmax.f32 %v10736_v43, 0.0  ;;  %v5864_v41 = vmax.f32 %v10743_v7, 0.0  ;;  %v11562_v5 = vld [vmem:[#allocation30_spill] sm:$0xff] }
 0x436   : > { %6132 = vmatprep.subr.bf16.mxu1 %v5991_v46  ;;  %6091 = vmatprep.subr.bf16.mxu0 %v5989_v13  ;;  %v5803_v0 = vmax.f32 %v5727_v36, 0.0  ;;  %v5863_v34 = vmax.f32 %v10746_v61, 0.0  ;;  %v5873_v33 = vmax.f32 %v5655_v32, 0.0  ;;  %v5981_v3 = vpack.c.bf16 %v5891_v29, %v5882_v51  ;;  %v11561_v46 = vld [vmem:[#allocation22_spill] sm:$0xff]  ;;  %v11566_v36 = vld [vmem:[#allocation29_spill] sm:$0xff] }
 0x437   : > { %v5731_v40 = vpop.f32.mrf.mxu0  ;;  %v5862_v25 = vmax.f32 %v10739_v42, 0.0  ;;  %v5871_v1 = vmax.f32 %v5542_v45, 0.0  ;;  %v11556_v6 = vmax.f32 %v10706_v55, 0.0  ;;  %v5979_v24 = vpack.c.bf16 %v5889_v14, %v5880_v27  ;;  %v11557_v42 = vld [vmem:[#allocation25_spill] sm:$0xff] }
 0x438   : > { %v10828_v50 = vpack.c.bf16 %v5803_v0, %v5794_v23  ;;  %v5524_v7 = vadd.f32 %v10622_v60, %v11544_v62  ;;  %v5854_v38 = vmax.f32 %v10732_v49, 0.0  ;;  %v5971_v44 = vpack.c.bf16 %v5872_v37, %v5863_v34  ;;  %v11560_v60 = vld [vmem:[#allocation37_spill] sm:$0xff] }
 0x439   : > { %6133 = vmatpush1.bf16.msra.mxu1 %v5990_v58  ;;  %6092 = vmatpush1.bf16.msra.mxu0 %v5988_v2  ;;  %v5973_v53 = vpack.c.bf16 %v5874_v15, %v11556_v6  ;;  %v5733_v43 = vpop.f32.mrf.mxu0  ;;  %v5732_v61 = vadd.f32 %v5731_v40, %v10403_v57  ;;  %v5522_v48 = vadd.f32 %v10614_v18, %v11544_v62  ;;  %v5838_v55 = vmax.f32 %v11558_v54, 0.0  ;;  %v11567_v2 = vld [vmem:[#allocation32_spill] sm:$0xff] }
 0x43a   : > { %6134 = vmatprep.subr.bf16.mxu1 %v5982_v52  ;;  %6093 = vmatprep.subr.bf16.mxu0 %v5980_v56  ;;  %v5635_v59 = vadd.f32 %v11557_v42, %v11544_v62  ;;  %v5846_v63 = vmax.f32 %v11559_v4, 0.0  ;;  %v5845_v20 = vmax.f32 %v11560_v60, 0.0  ;;  %v5855_v49 = vmax.f32 %v5645_v28, 0.0  ;;  %v11568_v56 = vld [vmem:[#allocation26_spill] sm:$0xff]  ;;  %v11577_v42 = vld [vmem:[#allocation27_spill] sm:$0xff] }
 0x43b   : > { %v5734_v9 = vpop.f32.mrf.mxu0  ;;  %v5972_v39 = vpack.c.bf16 %v5873_v33, %v5864_v41  ;;  %v5844_v22 = vmax.f32 %v11562_v5, 0.0  ;;  %v5853_v18 = vmax.f32 %v5532_v26, 0.0  ;;  %v11564_v47 = vmax.f32 %v11563_v10, 0.0  ;;  %v11573_v43 = vld [vmem:[#allocation42_spill] sm:$0xff] }
 0x43c   : > { %v5735_v57 = vadd.f32 %v5734_v9, %v11561_v46  ;;  %v5970_v21 = vpack.c.bf16 %v5871_v1, %v5862_v25  ;;  %v5836_v32 = vmax.f32 %v5524_v7, 0.0  ;;  %v5962_v15 = vpack.c.bf16 %v5854_v38, %v5845_v20  ;;  %v11570_v25 = vld [vmem:[#allocation28_spill] sm:$0xff]  ;;  %v11575_v38 = vld [vmem:[#allocation41_spill] sm:$0xff] }
 0x43d   : > { %6135 = vmatpush1.bf16.msra.mxu1 %v5981_v3  ;;  %6094 = vmatpush1.bf16.msra.mxu0 %v5979_v24  ;;  %v5964_v13 = vpack.c.bf16 %v5856_v11, %v11564_v47  ;;  %v5736_v45 = vpop.f32.mrf.mxu0  ;;  %v5812_v51 = vmax.f32 %v5732_v61, 0.0  ;;  %v5828_v29 = vmax.f32 %v11565_v19, 0.0  ;;  %v5827_v27 = vmax.f32 %v11566_v36, 0.0  ;;  %v11571_v1 = vld [vmem:[#allocation40_spill] sm:$0xff]  ;;  %v11576_v61 = vld [vmem:[#allocation7_spill] sm:$0xff] }
 0x43e   : > { %6136 = vmatprep.subr.bf16.mxu1 %v5973_v53  ;;  %6095 = vmatprep.subr.bf16.mxu0 %v5971_v44  ;;  %v5821_v30 = vmax.f32 %v5735_v57, 0.0  ;;  %v5837_v14 = vmax.f32 %v5635_v59, 0.0  ;;  %v5963_v16 = vpack.c.bf16 %v5855_v49, %v5846_v63  ;;  %v5826_v35 = vmax.f32 %v11567_v2, 0.0  ;;  %v11572_v53 = vld [vmem:[#allocation9_spill] sm:$0xff]  ;;  %v11574_v7 = vld [vmem:[#allocation8_spill] sm:$0xff] }
 0x43f   : > { %v10849_v58 = vpop.f32.mrf.mxu0  ;;  %v5835_v37 = vmax.f32 %v5522_v48, 0.0  ;;  %v11569_v23 = vmax.f32 %v11568_v56, 0.0  ;;  %v5961_v26 = vpack.c.bf16 %v5853_v18, %v5844_v22  ;;  %v5953_v11 = vpack.c.bf16 %v5836_v32, %v5827_v27  ;;  %v11578_v18 = vld [vmem:[#allocation45_spill] sm:$0xff] }
 0x440   : > { %v10852_v52 = vpack.c.bf16 %v5821_v30, %v5812_v51  ;;  %v5954_v40 = vpack.c.bf16 %v5837_v14, %v5828_v29  ;;  %v7881_v59 = vmov 0.0   ;;  %v11581_v29 = vld [vmem:[#allocation34_spill] sm:$0xff] }
 0x441   : > { %6137 = vmatpush1.bf16.msra.mxu1 %v5972_v39  ;;  %6096 = vmatpush1.bf16.msra.mxu0 %v5970_v21  ;;  %v5955_v0 = vpack.c.bf16 %v5838_v55, %v11569_v23  ;;  %v5741_v28 = vpop.f32.mrf.mxu0  ;;  %v5952_v34 = vpack.c.bf16 %v5835_v37, %v5826_v35 }
 0x442   : > { %6138 = vmatprep.subr.bf16.mxu1 %v5964_v13  ;;  %6097 = vmatprep.subr.bf16.mxu0 %v5962_v15  ;;  %v11579_v13 = vld [vmem:[#allocation35_spill] sm:$0xff]  ;;  %v11580_v15 = vld [vmem:[#allocation36_spill] sm:$0xff] }
 0x443   : > { %v10857_v41 = vpop.f32.mrf.mxu0 }
 0x445   : > { %6139 = vmatpush1.bf16.msra.mxu1 %v5963_v16  ;;  %6098 = vmatpush1.bf16.msra.mxu0 %v5961_v26  ;;  %v5744_v33 = vpop.f32.mrf.mxu0  ;;  %v11582_v16 = vld [vmem:[#allocation39_spill] sm:$0xff] }
 0x446   : > { %6140 = vmatprep.subr.bf16.mxu1 %v5955_v0  ;;  %6099 = vmatprep.subr.bf16.mxu0 %v5953_v11 }
 0x447   : > { %v5747_v3 = vpop.f32.mrf.mxu0 }
 0x449   : > { %6141 = vmatpush1.bf16.msra.mxu1 %v5954_v40  ;;  %6100 = vmatpush1.bf16.msra.mxu0 %v5952_v34  ;;  %v5749_v6 = vpop.f32.mrf.mxu0  ;;  %v11584_v34 = vld [vmem:[#allocation51_spill] sm:$0xff] }
 0x44a   : > { %6142 = vmatprep.subr.bf16.mxu1 %v11570_v25  ;;  %6101 = vmatprep.subr.bf16.mxu0 %v11571_v1  ;;  %v5748_v33 = vadd.f32 %v5747_v3, %v11584_v34 }
 0x44b   : > { %v5750_v24 = vpop.f32.mrf.mxu0 }
 0x44c   : > { %v5751_v28 = vadd.f32 %v5750_v24, %v11549_v12 }
 0x44d   : > { %6143 = vmatpush1.bf16.msra.mxu1 %v11572_v53  ;;  %6102 = vmatpush1.bf16.msra.mxu0 %v11573_v43  ;;  %v5752_v44 = vpop.f32.mrf.mxu0  ;;  %v11585_v53 = vld [vmem:[#allocation20_spill] sm:$0xff] }
 0x44e   : > { %6144 = vmatprep.subr.bf16.mxu1 %v11574_v7  ;;  %6103 = vmatprep.subr.bf16.mxu0 %v11575_v38  ;;  %v5857_v1 = vmax.f32 %v5751_v28, 0.0  ;;  %v5740_v43 = vadd.f32 %v10849_v58, %v11585_v53  ;;  %v5848_v7 = vmax.f32 %v5748_v33, 0.0 }
 0x44f   : > { %v5755_v48 = vpop.f32.mrf.mxu0 }
 0x450   : > { %v5965_v24 = vpack.c.bf16 %v5857_v1, %v5848_v7  ;;  %v5830_v38 = vmax.f32 %v5740_v43, 0.0 }
 0x451   : > { %6145 = vmatpush1.bf16.msra.mxu1 %v11576_v61  ;;  %6104 = vmatpush1.bf16.msra.mxu0 %v11577_v42  ;;  %v5757_v54 = vpop.f32.mrf.mxu0 }
 0x452   : > { %7345 = vmatprep.subr.bf16.mxu0 %v7881_v59 }
 0x453   : > { %v5758_v55 = vpop.f32.mrf.mxu0 }
 0x454   : > { %6163 = vmatmul.mubr.bf16.vlgmr.msra.gmra.mxu1 %v10671_v17  ;;  %6122 = vmatmul.mubr.bf16.vlgmr.msra.gmra.mxu0 %v10671_v17  ;;  %v5759_v37 = vadd.f32 %v5758_v55, %v10387_v8  ;;  %v5743_v8 = vadd.f32 %v10857_v41, %v11544_v62 }
 0x455   : > { %7361 = vmatprep.mubr.msk.bf16.mxu0 %vm7882_vm2, %v7881_v59  ;;  %v5760_v4 = vpop.f32.mrf.mxu0 }
 0x456   : > { %v5875_v11 = vmax.f32 %v5759_v37, 0.0  ;;  %v5839_v12 = vmax.f32 %v5743_v8, 0.0 }
 0x457   : > { %v5763_v63 = vpop.f32.mrf.mxu0 }
 0x458   : > { %v5764_v2 = vadd.f32 %v5763_v63, %v11582_v16  ;;  %v5956_v3 = vpack.c.bf16 %v5839_v12, %v5830_v38 }
 0x459   : > { %v5765_v9 = vpop.f32.mrf.mxu0 }
 0x45a   : > { %v5884_v26 = vmax.f32 %v5764_v2, 0.0 }
 0x45b   : > { %v5766_v60 = vpop.f32.mrf.mxu0 }
 0x45c   : > { %v5767_v36 = vadd.f32 %v5766_v60, %v11581_v29 }
 0x45d   : > { %v5768_v20 = vpop.f32.mrf.mxu0 }
 0x45e   : > { %v5893_v56 = vmax.f32 %v5767_v36, 0.0 }
 0x45f   : > { %v5771_v49 = vpop.f32.mrf.mxu0 }
 0x460   : > { %v5772_v51 = vadd.f32 %v5771_v49, %v11580_v15  ;;  %v5983_v40 = vpack.c.bf16 %v5893_v56, %v5884_v26 }
 0x461   : > { %v5773_v39 = vpop.f32.mrf.mxu0 }
 0x462   : > { %v5902_v35 = vmax.f32 %v5772_v51, 0.0 }
 0x463   : > { %v5774_v46 = vpop.f32.mrf.mxu0 }
 0x464   : > { %v5775_v21 = vadd.f32 %v5774_v46, %v11579_v13 }
 0x465   : > { %v5776_v57 = vpop.f32.mrf.mxu0 }
 0x466   : > { %v5911_v27 = vmax.f32 %v5775_v21, 0.0 }
 0x467   : > { %v5779_v5 = vpop.f32.mrf.mxu0 }
 0x468   : > { %v5780_v10 = vadd.f32 %v5779_v5, %v11578_v18  ;;  %v5992_v23 = vpack.c.bf16 %v5911_v27, %v5902_v35 }
 0x469   : > { %v5781_v22 = vpop.f32.mrf.mxu0 }
 0x46a   : > { %v5920_v30 = vmax.f32 %v5780_v10, 0.0 }
 0x46b   : > { %v5782_v47 = vpop.f32.mrf.mxu0 }
 0x46c   : > { %v5783_v45 = vadd.f32 %v5782_v47, %v10371_v31  ;;  %v11583_v31 = vld [vmem:[#allocation38_spill] sm:$0xff] }
 0x46d   : > { %v5784_v32 = vpop.f32.mrf.mxu0  ;;  %v5756_v0 = vadd.f32 %v5755_v48, %v11583_v31  ;;  %v10895_v62 = vpop.permute.xlu0 %6004 }
 0x46e   : > { %v5929_v19 = vmax.f32 %v5783_v45, 0.0 }
 0x46f   : > { %v5866_v25 = vmax.f32 %v5756_v0, 0.0 }
 0x470   : > { %v6001_v14 = vpack.c.bf16 %v5929_v19, %v5920_v30 }
 0x471   : > { %v5974_v6 = vpack.c.bf16 %v5875_v11, %v5866_v25 }
 0x472   : > { %7346 = vmatpush3.bf16.msra.mxu0 %v6001_v14 }
 0x473   : > { %7347 = vmatprep.subr.bf16.mxu0 %v7881_v59 }
 0x476   : > { %7348 = vmatpush3.bf16.msra.mxu0 %v5992_v23 }
 0x477   : > { %7349 = vmatprep.subr.bf16.mxu0 %v7881_v59 }
 0x47a   : > { %7350 = vmatpush3.bf16.msra.mxu0 %v5983_v40 }
 0x47b   : > { %7351 = vmatprep.subr.bf16.mxu0 %v7881_v59 }
 0x47e   : > { %7352 = vmatpush3.bf16.msra.mxu0 %v5974_v6 }
 0x47f   : > { %7353 = vmatprep.subr.bf16.mxu0 %v7881_v59 }
 0x482   : > { %7354 = vmatpush3.bf16.msra.mxu0 %v5965_v24 }
 0x483   : > { %7355 = vmatprep.subr.bf16.mxu0 %v7881_v59 }
 0x486   : > { %7356 = vmatpush3.bf16.msra.mxu0 %v5956_v3 }
 0x487   : > { %7357 = vmatprep.subr.bf16.mxu0 %v7881_v59 }
 0x48a   : > { %7358 = vmatpush3.bf16.msra.mxu0 %v10852_v52 }
 0x48b   : > { %7359 = vmatprep.subr.bf16.mxu0 %v7881_v59 }
 0x48e   : > { %7360 = vmatpush3.bf16.msra.mxu0 %v10828_v50 }
 0x491   : > { %7362 = vmatmul.mubr.bf16.vlgmr.msra.gmra.mxu0 %v10671_v17 }
 0x4d3   : > { %v6041_v58 = vpop.f32.mrf.mxu1 }
 0x4d4   : > { %v6042_v41 = vadd.f32 %v6041_v58, %v10895_v62 }
 0x4d5   : > { %v6043_v44 = vpop.f32.mrf.mxu1 }
 0x4d6   : > { %v6211_v61 = vrot.slane %v6042_v41, 4  ;;  %v6044_v48 = vadd.f32 %v6043_v44, %v10895_v62 }
 0x4d7   : > { %v6045_v42 = vpop.f32.mrf.mxu1 }
 0x4d8   : > { %v6212_v54 = vmax.f32 %v6042_v41, %v6211_v61  ;;  %v6217_v55 = vrot.slane %v6044_v48, 4 }
 0x4d9   : > { %v6046_v4 = vpop.f32.mrf.mxu1 }
 0x4da   : > { %v6213_v52 = vrot.slane %v6212_v54, 2  ;;  %v6218_v63 = vmax.f32 %v6044_v48, %v6217_v55 }
 0x4dc   : > { %v6214_v59 = vmax.f32 %v6212_v54, %v6213_v52  ;;  %v6219_v9 = vrot.slane %v6218_v63, 2 }
 0x4de   : > { %v6215_v50 = vrot.slane %v6214_v59, 1  ;;  %v6220_v60 = vmax.f32 %v6218_v63, %v6219_v9 }
 0x4e0   : > { %v6216_v17 = vmax.f32 %v6214_v59, %v6215_v50  ;;  %v6221_v20 = vrot.slane %v6220_v60, 1 }
 0x4e2   : > { %v6265_v49 = vsub.f32 %v6042_v41, %v6216_v17  ;;  %v6222_v39 = vmax.f32 %v6220_v60, %v6221_v20 }
 0x4e4   : > { %v6274_v46 = vmul.f32 1.442695, %v6265_v49  ;;  %v6266_v57 = vsub.f32 %v6044_v48, %v6222_v39 }
 0x4e6   : > { %7658 = vpow2.f32 %v6274_v46  ;;  %v6276_v5 = vmul.f32 1.442695, %v6266_v57 }
 0x4e8   : > { %7660 = vpow2.f32 %v6276_v5 }
 0x4f3   : > { %v7659_v22 = vpop.eup %7658  ;;  %v6082_v18 = vpop.f32.mrf.mxu1 }
 0x4f4   : > { %v6292_v10 = vrot.slane %v7659_v22, 4  ;;  %v6083_v47 = vadd.f32 %v6082_v18, %v10895_v62 }
 0x4f5   : > { %v7661_v13 = vpop.eup %7660  ;;  %v6084_v21 = vpop.f32.mrf.mxu1 }
 0x4f6   : > { %v6293_v45 = vadd.f32 %v7659_v22, %v6292_v10  ;;  %v6298_v32 = vrot.slane %v7661_v13, 4  ;;  %v6223_v15 = vrot.slane %v6083_v47, 4  ;;  %v6085_v51 = vadd.f32 %v6084_v21, %v10895_v62 }
 0x4f7   : > { %v6086_v30 = vpop.f32.mrf.mxu1 }
 0x4f8   : > { %v6294_v19 = vrot.slane %v6293_v45, 2  ;;  %v6299_v29 = vadd.f32 %v7661_v13, %v6298_v32  ;;  %v6224_v36 = vmax.f32 %v6083_v47, %v6223_v15  ;;  %v6229_v27 = vrot.slane %v6085_v51, 4 }
 0x4f9   : > { %v6087_v14 = vpop.f32.mrf.mxu1 }
 0x4fa   : > { %v6295_v16 = vadd.f32 %v6294_v19, %v6293_v45  ;;  %v6300_v2 = vrot.slane %v6299_v29, 2  ;;  %v6225_v35 = vrot.slane %v6224_v36, 2  ;;  %v6230_v37 = vmax.f32 %v6085_v51, %v6229_v27 }
 0x4fc   : > { %v6296_v56 = vrot.slane %v6295_v16, 1  ;;  %v6301_v23 = vadd.f32 %v6300_v2, %v6299_v29  ;;  %v6226_v31 = vmax.f32 %v6224_v36, %v6225_v35  ;;  %v6231_v0 = vrot.slane %v6230_v37, 2 }
 0x4fe   : > { %v6297_v26 = vadd.f32 %v6296_v56, %v6295_v16  ;;  %v6302_v28 = vrot.slane %v6301_v23, 1  ;;  %v6227_v11 = vrot.slane %v6226_v31, 1  ;;  %v6232_v40 = vmax.f32 %v6230_v37, %v6231_v0 }
 0x500   : > { %7662 = vrcp.f32 %v6297_v26  ;;  %v6303_v34 = vadd.f32 %v6302_v28, %v6301_v23  ;;  %v6228_v33 = vmax.f32 %v6226_v31, %v6227_v11  ;;  %v6233_v25 = vrot.slane %v6232_v40, 1 }
 0x502   : > { %7664 = vrcp.f32 %v6303_v34  ;;  %v6267_v8 = vsub.f32 %v6083_v47, %v6228_v33  ;;  %v6234_v1 = vmax.f32 %v6232_v40, %v6233_v25 }
 0x504   : > { %v6278_v6 = vmul.f32 1.442695, %v6267_v8  ;;  %v6268_v53 = vsub.f32 %v6085_v51, %v6234_v1 }
 0x506   : > { %7666 = vpow2.f32 %v6278_v6  ;;  %v6280_v43 = vmul.f32 1.442695, %v6268_v53 }
 0x508   : > { %7668 = vpow2.f32 %v6280_v43 }
 0x50d   : > { %v7663_v7 = vpop.eup %7662 }
 0x50e   : > { %v6347_v12 = vmul.f32 %v7663_v7, %v7659_v22 }
 0x50f   : > { %v7665_v24 = vpop.eup %7664 }
 0x510   : > { %6364 = vst [vmem:[%s10906_s25] sm:$0xff] %v6347_v12  ;;  %v6349_v38 = vmul.f32 %v7665_v24, %v7661_v13 }
 0x512   : > { %6365 = vst [vmem:[%s10906_s25 + $0x8] sm:$0xff] %v6349_v38 }
 0x513   : > { %v10910_v3 = vpop.eup %7666 }
 0x514   : > { %v6304_v58 = vrot.slane %v10910_v3, 4  ;;  %v6164_v41 = vpop.f32.mrf.mxu1  ;;  %v6123_v61 = vpop.f32.mrf.mxu0 }
 0x515   : > { %v10913_v44 = vpop.eup %7668  ;;  %v6165_v48 = vadd.f32 %v6164_v41, %v10895_v62  ;;  %v6124_v55 = vadd.f32 %v6123_v61, %v10895_v62 }
 0x516   : > { %v6305_v42 = vadd.f32 %v10910_v3, %v6304_v58  ;;  %v6310_v54 = vrot.slane %v10913_v44, 4  ;;  %v6166_v4 = vpop.f32.mrf.mxu1  ;;  %v6125_v52 = vpop.f32.mrf.mxu0 }
 0x517   : > { %v6247_v63 = vrot.slane %v6165_v48, 4  ;;  %v6167_v59 = vadd.f32 %v6166_v4, %v10895_v62  ;;  %v6235_v60 = vrot.slane %v6124_v55, 4  ;;  %v6126_v17 = vadd.f32 %v6125_v52, %v10895_v62 }
 0x518   : > { %v6306_v9 = vrot.slane %v6305_v42, 2  ;;  %v6311_v50 = vadd.f32 %v10913_v44, %v6310_v54  ;;  %v6168_v20 = vpop.f32.mrf.mxu1  ;;  %v6127_v46 = vpop.f32.mrf.mxu0 }
 0x519   : > { %v6248_v49 = vmax.f32 %v6165_v48, %v6247_v63  ;;  %v6253_v39 = vrot.slane %v6167_v59, 4  ;;  %v6236_v22 = vmax.f32 %v6124_v55, %v6235_v60  ;;  %v6241_v18 = vrot.slane %v6126_v17, 4 }
 0x51a   : > { %v6307_v57 = vadd.f32 %v6306_v9, %v6305_v42  ;;  %v6312_v5 = vrot.slane %v6311_v50, 2  ;;  %v6169_v10 = vpop.f32.mrf.mxu1  ;;  %v6128_v21 = vpop.f32.mrf.mxu0 }
 0x51b   : > { %v6249_v47 = vrot.slane %v6248_v49, 2  ;;  %v6254_v13 = vmax.f32 %v6167_v59, %v6253_v39  ;;  %v6237_v15 = vrot.slane %v6236_v22, 2  ;;  %v6242_v51 = vmax.f32 %v6126_v17, %v6241_v18 }
 0x51c   : > { %v6308_v45 = vrot.slane %v6307_v57, 1  ;;  %v6313_v32 = vadd.f32 %v6312_v5, %v6311_v50 }
 0x51d   : > { %v6250_v30 = vmax.f32 %v6248_v49, %v6249_v47  ;;  %v6255_v19 = vrot.slane %v6254_v13, 2  ;;  %v6238_v27 = vmax.f32 %v6236_v22, %v6237_v15  ;;  %v6243_v14 = vrot.slane %v6242_v51, 2 }
 0x51e   : > { %v6309_v29 = vadd.f32 %v6308_v45, %v6307_v57  ;;  %v6314_v36 = vrot.slane %v6313_v32, 1 }
 0x51f   : > { %v6251_v16 = vrot.slane %v6250_v30, 1  ;;  %v6256_v2 = vmax.f32 %v6254_v13, %v6255_v19  ;;  %v6239_v37 = vrot.slane %v6238_v27, 1  ;;  %v6244_v56 = vmax.f32 %v6242_v51, %v6243_v14 }
 0x520   : > { %7670 = vrcp.f32 %v6309_v29  ;;  %v6315_v35 = vadd.f32 %v6314_v36, %v6313_v32 }
 0x521   : > { %v6252_v23 = vmax.f32 %v6250_v30, %v6251_v16  ;;  %v6257_v31 = vrot.slane %v6256_v2, 1  ;;  %v6240_v0 = vmax.f32 %v6238_v27, %v6239_v37  ;;  %v6245_v26 = vrot.slane %v6244_v56, 1 }
 0x522   : > { %7672 = vrcp.f32 %v6315_v35 }
 0x523   : > { %v6271_v28 = vsub.f32 %v6165_v48, %v6252_v23  ;;  %v6258_v11 = vmax.f32 %v6256_v2, %v6257_v31  ;;  %v6269_v40 = vsub.f32 %v6124_v55, %v6240_v0  ;;  %v6246_v34 = vmax.f32 %v6244_v56, %v6245_v26 }
 0x525   : > { %v6286_v33 = vmul.f32 1.442695, %v6271_v28  ;;  %v6272_v25 = vsub.f32 %v6167_v59, %v6258_v11  ;;  %v6282_v8 = vmul.f32 1.442695, %v6269_v40  ;;  %v6270_v1 = vsub.f32 %v6126_v17, %v6246_v34 }
 0x527   : > { %7674 = vpow2.f32 %v6286_v33  ;;  %v6288_v6 = vmul.f32 1.442695, %v6272_v25  ;;  %v6284_v53 = vmul.f32 1.442695, %v6270_v1 }
 0x528   : > { %7676 = vpow2.f32 %v6282_v8 }
 0x529   : > { %7678 = vpow2.f32 %v6288_v6 }
 0x52a   : > { %7680 = vpow2.f32 %v6284_v53 }
 0x52d   : > { %v7671_v43 = vpop.eup %7670 }
 0x52e   : > { %v6351_v7 = vmul.f32 %v7671_v43, %v10910_v3 }
 0x52f   : > { %v7673_v12 = vpop.eup %7672 }
 0x530   : > { %6366 = vst [vmem:[%s10906_s25 + $0x10] sm:$0xff] %v6351_v7  ;;  %v6353_v24 = vmul.f32 %v7673_v12, %v10913_v44 }
 0x532   : > { %6367 = vst [vmem:[%s10906_s25 + $0x18] sm:$0xff] %v6353_v24 }
 0x534   : > { %v7675_v38 = vpop.eup %7674 }
 0x535   : > { %v7677_v58 = vpop.eup %7676  ;;  %v6328_v41 = vrot.slane %v7675_v38, 4 }
 0x536   : > { %v7679_v61 = vpop.eup %7678  ;;  %v6316_v48 = vrot.slane %v7677_v58, 4 }
 0x537   : > { %v7681_v42 = vpop.eup %7680  ;;  %v6329_v54 = vadd.f32 %v7675_v38, %v6328_v41  ;;  %v6334_v55 = vrot.slane %v7679_v61, 4 }
 0x538   : > { %v6317_v4 = vadd.f32 %v7677_v58, %v6316_v48  ;;  %v6322_v52 = vrot.slane %v7681_v42, 4 }
 0x539   : > { %v6330_v63 = vrot.slane %v6329_v54, 2  ;;  %v6335_v59 = vadd.f32 %v7679_v61, %v6334_v55 }
 0x53a   : > { %v6318_v9 = vrot.slane %v6317_v4, 2  ;;  %v6323_v50 = vadd.f32 %v7681_v42, %v6322_v52 }
 0x53b   : > { %v6331_v3 = vadd.f32 %v6330_v63, %v6329_v54  ;;  %v6336_v60 = vrot.slane %v6335_v59, 2 }
 0x53c   : > { %v6319_v17 = vadd.f32 %v6318_v9, %v6317_v4  ;;  %v6324_v20 = vrot.slane %v6323_v50, 2 }
 0x53d   : > { %v6332_v44 = vrot.slane %v6331_v3, 1  ;;  %v6337_v49 = vadd.f32 %v6336_v60, %v6335_v59 }
 0x53e   : > { %v6320_v39 = vrot.slane %v6319_v17, 1  ;;  %v6325_v46 = vadd.f32 %v6324_v20, %v6323_v50 }
 0x53f   : > { %v6333_v57 = vadd.f32 %v6332_v44, %v6331_v3  ;;  %v6338_v5 = vrot.slane %v6337_v49, 1 }
 0x540   : > { %v6321_v22 = vadd.f32 %v6320_v39, %v6319_v17  ;;  %v6326_v18 = vrot.slane %v6325_v46, 1 }
 0x541   : > { %7682 = vrcp.f32 %v6333_v57  ;;  %v6339_v10 = vadd.f32 %v6338_v5, %v6337_v49 }
 0x542   : > { %7684 = vrcp.f32 %v6321_v22  ;;  %v6327_v47 = vadd.f32 %v6326_v18, %v6325_v46 }
 0x543   : > { %7686 = vrcp.f32 %v6339_v10 }
 0x544   : > { %7688 = vrcp.f32 %v6327_v47 }
 0x54e   : > { %v7683_v13 = vpop.eup %7682 }
 0x54f   : > { %v7685_v21 = vpop.eup %7684  ;;  %v6359_v45 = vmul.f32 %v7683_v13, %v7675_v38 }
 0x550   : > { %v7687_v32 = vpop.eup %7686  ;;  %v6355_v15 = vmul.f32 %v7685_v21, %v7677_v58 }
 0x551   : > { %v7689_v51 = vpop.eup %7688  ;;  %6370 = vst [vmem:[%s10906_s25 + $0x30] sm:$0xff] %v6359_v45  ;;  %v6361_v30 = vmul.f32 %v7687_v32, %v7679_v61  ;;  %v6205_v29 = vpop.f32.mrf.mxu0 }
 0x552   : > { %6368 = vst [vmem:[%s10906_s25 + $0x20] sm:$0xff] %v6355_v15  ;;  %v6357_v19 = vmul.f32 %v7689_v51, %v7681_v42  ;;  %v6206_v36 = vadd.f32 %v6205_v29, %v10895_v62 }
 0x553   : > { %6371 = vst [vmem:[%s10906_s25 + $0x38] sm:$0xff] %v6361_v30  ;;  %v7363_v27 = vpop.f32.mrf.mxu0 }
 0x554   : > { %6369 = vst [vmem:[%s10906_s25 + $0x28] sm:$0xff] %v6357_v19  ;;  %v6259_v14 = vrot.slane %v6206_v36, 4 }
 0x555   : > { %v6208_v16 = vpop.f32.mrf.mxu0 }
 0x556   : > { %v6260_v2 = vmax.f32 %v6206_v36, %v6259_v14 }
 0x557   : > { %v7364_v35 = vpop.f32.mrf.mxu0 }
 0x558   : > { %v6261_v37 = vrot.slane %v6260_v2, 2 }
 0x55a   : > { %v6262_v56 = vmax.f32 %v6260_v2, %v6261_v37 }
 0x55c   : > { %v6263_v23 = vrot.slane %v6262_v56, 1 }
 0x55e   : > { %v6264_v31 = vmax.f32 %v6262_v56, %v6263_v23 }
 0x560   : > { %v6273_v0 = vsub.f32 %v6206_v36, %v6264_v31 }
 0x562   : > { %v6290_v26 = vmul.f32 1.442695, %v6273_v0 }
 0x564   : > { %7690 = vpow2.f32 %v6290_v26 }
 0x571   : > { %v7691_v28 = vpop.eup %7690 }
 0x572   : > { %v6340_v11 = vrot.slane %v7691_v28, 4 }
 0x574   : > { %v6341_v40 = vadd.f32 %v7691_v28, %v6340_v11 }
 0x576   : > { %v6342_v34 = vrot.slane %v6341_v40, 2 }
 0x578   : > { %v6343_v33 = vadd.f32 %v6342_v34, %v6341_v40 }
 0x57a   : > { %v6344_v25 = vrot.slane %v6343_v33, 1 }
 0x57c   : > { %v6345_v62 = vadd.f32 %v6344_v25, %v6343_v33 }
 0x57e   : > { %7692 = vrcp.f32 %v6345_v62 }
 0x58b   : > { %v7693_v8 = vpop.eup %7692 }
 0x58c   : > { %v6363_v1 = vmul.f32 %v7693_v8, %v7691_v28 }
 0x58e   : > { %6372 = vst [vmem:[%s10906_s25 + $0x40] sm:$0xff] %v6363_v1 }
 0x58f PF: > { %s18_s11 = sadd.s32 1, %s7875_s11   ;;  %s11586_s27 = smov %s7855_s28 }
 0x590   : > { %p15_p12 = scmp.ge.s32.totalorder %s18_s11, 6   ;;  %s11587_s28 = smov %s7983_s19 }
 0x591   : > { %s11588_s29 = smov %s7867_s9  ;;  %s11589_s30 = smov %s7871_s10 }
 0x592   : > { %s11590_s9 = smov %s11593_s12  ;;  %s11591_s10 = smov %s11597_s13 }
 0x593   :  { %17 = sbr.rel (!%p15_p12) target bundleno = 4 (0x4), region = 202 }

</bundles_post_ra>
